<compile_context>
chip_gen: v7x
topology: tpu7x:2x2x1
jax: 0.10.0
libtpu: 0.0.40
codegen_flags: <defaults>
</compile_context>

<pallas_src>
import numpy as np

import jax
import jax.numpy as jnp
from jax.experimental import pallas as pl
from jax.experimental.pallas import tpu as pltpu

# ----------------------------- configuration --------------------------------
VOCAB_SIZE = 50
EMBED_SIZE = 16                        # embedding dim (two embeddings -> 32 channels)
NUM_CHANNEL = [64, 64, 128, 128, 128]  # NUM_CHANNEL[0] must be 64 (BatchNorm1d(64))
NUM_RESIDUAL = [1, 1, 1, 1]
SEQ_LEN = 64
BATCH = 2
BN_EPS = 1e-5
MM_DTYPE = jnp.bfloat16                # MXU input dtype; accumulation/epilogue f32

_VMEM = pl.BlockSpec(memory_space=pltpu.MemorySpace.VMEM)


# ----------------------------- the fused kernel ------------------------------
def _make_kernel(meta):
    """Builds the single fused-network kernel; `meta` is static geometry."""
    k_stem = meta["K_stem"]
    m_stem = meta["M_stem"]
    blocks = meta["blocks"]

    def kernel(*refs):
        out_ref = refs[-1]
        it = iter(refs[:-1])

        def load():
            return next(it)[...]

        # ---------------- stem: conv_ini + BN(64) + ReLU + MaxPool(3,2,1) -----
        x = load()                                   # (B*Lp0, C0) bf16, padded slab
        w0 = load()                                  # (K*C0, 64) bf16 (BN folded)
        b0 = load()                                  # (1, 64)    f32
        p0 = load(); p1 = load(); p2 = load()        # (B*(L1+2), M_stem) bf16 0/1

        # conv_ini evaluated at every stride-1 flat position (stride-2 + the
        # maxpool stride are folded into the selection matrices below).
        slab = jnp.concatenate([x[k:k + m_stem] for k in range(k_stem)], axis=-1)
        y = jnp.dot(slab, w0, preferred_element_type=jnp.float32) + b0
        y = jnp.maximum(y, 0.0).astype(MM_DTYPE)     # BN + ReLU, cast once
        # MaxPool1d(3,2,1): three 0/1 row-selection matmuls + elementwise max.
        # All-zero selection rows realize the pool padding; valid since y >= 0.
        m = jnp.maximum(jnp.dot(p0, y, preferred_element_type=jnp.float32),
                        jnp.dot(p1, y, preferred_element_type=jnp.float32))
        m = jnp.maximum(m, jnp.dot(p2, y, preferred_element_type=jnp.float32))
        act = m.astype(MM_DTYPE)                     # (B*(L1+2), 64) padded slab

        # ---------------- residual blocks -------------------------------------
        for blk in blocks:
            w1 = load(); b1 = load()                 # (3*C_in, C_out) bf16 / (1,C_out) f32
            w2 = load(); b2 = load()                 # (3*C_out, C_out) bf16 / (1,C_out) f32
            s1 = load(); s2 = load()                 # selection matrices, bf16 0/1
            if blk["has_proj"]:
                w3 = load(); b3 = load()             # (C_in, C_out) bf16 / (1,C_out) f32
            m1 = blk["M1"]
            m2 = blk["M2"]

            # conv1 + bn1 + relu (evaluated at all stride-1 flat positions)
            slab1 = jnp.concatenate([act[k:k + m1] for k in range(3)], axis=-1)
            y1 = jnp.maximum(
                jnp.dot(slab1, w1, preferred_element_type=jnp.float32) + b1, 0.0
            ).astype(MM_DTYPE)
            # stride-s downsample + per-batch zero re-pad in one selection matmul
            y1p = jnp.dot(s1, y1, preferred_element_type=jnp.float32).astype(MM_DTYPE)

            # conv2 + bn2
            slab2 = jnp.concatenate([y1p[k:k + m2] for k in range(3)], axis=-1)
            y2 = jnp.dot(slab2, w2, preferred_element_type=jnp.float32) + b2

            # shortcut
            if blk["has_proj"]:                      # 1x1 conv, stride s, no BN
                xs = jnp.dot(s1, act[1:1 + m1],
                             preferred_element_type=jnp.float32).astype(MM_DTYPE)
                proj = jnp.dot(xs, w3, preferred_element_type=jnp.float32) + b3
                short = proj[1:1 + m2]
            else:                                    # identity (s=1, C_in==C_out)
                short = act[1:1 + m2].astype(jnp.float32)

            z = jnp.maximum(y2 + short, 0.0).astype(MM_DTYPE)
            # re-pad (shift + zero boundary rows) for the next stage / head
            act = jnp.dot(s2, z, preferred_element_type=jnp.float32).astype(MM_DTYPE)

        # ---------------- head: AvgPool(1)+Flatten+ReLU+(Dropout=id)+Linear+Sigmoid
        a = load()                                   # (B, B*Lp_last) bf16, rows sum to 1
        dw = load()                                  # (C_last, 50) bf16
        db = load()                                  # (1, 50) f32
        enc = jnp.maximum(jnp.dot(a, act, preferred_element_type=jnp.float32), 0.0)
        logits = jnp.dot(enc.astype(MM_DTYPE), dw,
                         preferred_element_type=jnp.float32) + db
        out_ref[...] = jax.nn.sigmoid(logits)

    return kernel


# ----------------------------- host-side packing ------------------------------
def _bn_affine(bn):
    scale = bn["gamma"] / jnp.sqrt(bn["var"] + BN_EPS)
    shift = bn["beta"] - bn["mean"] * scale
    return scale, shift


def _pack_network_inputs(x, params, B, L):
    """Fold BN, reshape weights, build constant selection matrices.

    Returns (flat input list, static geometry meta).  All of this is trace-time
    work on closure constants -> constant-folded under jit.
    """
    C0 = x.shape[-1]

    # ---- stem geometry ----
    pad0, K0, s0 = 3, 7, 2
    Lp0 = L + 2 * pad0
    Lc = (Lp0 - K0) // s0 + 1                   # conv_ini output length
    L1 = (Lc + 2 - 3) // 2 + 1                  # maxpool output length
    M_stem = B * Lp0 - (K0 - 1)                 # stride-1 conv positions, flat

    s, sh = _bn_affine(params["bn_ini"])        # nn.BatchNorm1d(64) running stats
    w0 = (params["conv_ini_w"] * s[None, None, :]).reshape(K0 * C0, -1).astype(MM_DTYPE)
    b0 = (params["conv_ini_b"] * s + sh).reshape(1, -1).astype(jnp.float32)

    # MaxPool(3,2,1) selection matrices, emitting block-1's padded layout directly.
    Lp1 = L1 + 2
    p_mats = []
    for k in range(3):
        P = np.zeros((B * Lp1, M_stem), np.float32)
        for b in range(B):
            for i in range(L1):
                c = 2 * i - 1 + k               # conv-grid position inside the window
                if 0 <= c < Lc:
                    P[b * Lp1 + 1 + i, b * Lp0 + s0 * c] = 1.0
        p_mats.append(jnp.asarray(P, dtype=MM_DTYPE))

    # Padded, flattened, bf16 stem input (cast exactly once).
    xpad = jnp.pad(x, ((0, 0), (pad0, pad0), (0, 0)))
    xpad = xpad.reshape(B * Lp0, C0).astype(MM_DTYPE)

    inputs = [xpad, w0, b0] + p_mats
    meta_blocks = []

    # ---- residual blocks ----
    L_in = L1
    for stage in params["blocks"]:
        for p in stage:
            stride = p["stride"]
            C_in = p["w1"].shape[1]
            C_out = p["w1"].shape[-1]
            has_proj = "w3" in p
            if not has_proj:
                assert stride == 1 and C_in == C_out, \
                    "identity shortcut requires stride == 1 and C_in == C_out"

            Lp_in = L_in + 2
            L_out = (L_in - 1) // stride + 1
            Lp2 = L_out + 2
            M1 = B * Lp_in - 2                  # stride-1 conv1 positions, flat
            M2 = B * Lp2 - 2                    # conv2 positions, flat

            s1f, sh1 = _bn_affine(p["bn1"])
            s2f, sh2 = _bn_affine(p["bn2"])
            W1 = (p["w1"] * s1f[None, None, :]).reshape(3 * C_in, C_out).astype(MM_DTYPE)
            b1 = (p["b1"] * s1f + sh1).reshape(1, C_out).astype(jnp.float32)
            W2 = (p["w2"] * s2f[None, None, :]).reshape(3 * C_out, C_out).astype(MM_DTYPE)
            b2 = (p["b2"] * s2f + sh2).reshape(1, C_out).astype(jnp.float32)

            # S1: pick conv1 output at stride*j and drop it into a fresh padded
            #     slab (also reused to gather x[b, stride*j] for the 1x1 shortcut).
            # S2: shift-by-one + zero boundary rows (re-pad the block output).
            S1 = np.zeros((B * Lp2, M1), np.float32)
            S2 = np.zeros((B * Lp2, M2), np.float32)
            for b in range(B):
                for j in range(L_out):
                    S1[b * Lp2 + 1 + j, b * Lp_in + stride * j] = 1.0
                    S2[b * Lp2 + 1 + j, b * Lp2 + j] = 1.0

            blk_inputs = [W1, b1, W2, b2,
                          jnp.asarray(S1, dtype=MM_DTYPE),
                          jnp.asarray(S2, dtype=MM_DTYPE)]
            if has_proj:
                blk_inputs += [p["w3"].reshape(C_in, C_out).astype(MM_DTYPE),
                               p["b3"].reshape(1, C_out).astype(jnp.float32)]
            inputs += blk_inputs
            meta_blocks.append(dict(M1=M1, M2=M2, has_proj=has_proj))
            L_in = L_out

    # ---- head ----
    Lp_last = L_in + 2
    A = np.zeros((B, B * Lp_last), np.float32)
    for b in range(B):
        A[b, b * Lp_last + 1: b * Lp_last + 1 + L_in] = 1.0 / L_in   # exact for L_in=2
    inputs += [jnp.asarray(A, dtype=MM_DTYPE),
               params["dec_w"].astype(MM_DTYPE),
               params["dec_b"].reshape(1, -1).astype(jnp.float32)]

    meta = dict(K_stem=K0, M_stem=M_stem, blocks=meta_blocks)
    return inputs, meta


# ----------------------------- forward ---------------------------------------
def text_resnet_forward(token_ids, params):
    B, L = token_ids.shape
    # 1. Embedding + constant embedding, concatenated along the feature axis.
    e1 = jnp.take(params["emb1"], token_ids, axis=0)
    e2 = jnp.take(params["emb2"], token_ids, axis=0)
    x = jnp.concatenate([e1, e2], axis=-1)           # (B, L, 2E) channels-last

    inputs, meta = _pack_network_inputs(x, params, B, L)
    kernel = _make_kernel(meta)
    n_out = params["dec_w"].shape[-1]

    # Single gridless pallas_call: all weights/constants/activations are VMEM
    # resident (<1 MiB total, far under v7x's 64 MiB); only (B, 50) hits HBM.
    return pl.pallas_call(
        kernel,
        out_shape=jax.ShapeDtypeStruct((B, n_out), jnp.float32),
        in_specs=[_VMEM] * len(inputs),
        out_specs=_VMEM,
    )(*inputs)


# ----------------------------- parameter init --------------------------------
def _normal(key, shape, scale=0.05):
    return scale * jax.random.normal(key, shape, dtype=jnp.float32)


def _init_bn(key, c):
    k1, k2, k3, k4 = jax.random.split(key, 4)
    return {
        "gamma": 1.0 + 0.1 * jax.random.normal(k1, (c,), jnp.float32),
        "beta": 0.1 * jax.random.normal(k2, (c,), jnp.float32),
        "mean": 0.1 * jax.random.normal(k3, (c,), jnp.float32),
        "var": 1.0 + 0.1 * jnp.abs(jax.random.normal(k4, (c,), jnp.float32)),
    }


def _init_residual(key, c_in, c_out, use_1x1, stride):
    ks = jax.random.split(key, 8)
    p = {
        "stride": stride,
        "w1": _normal(ks[0], (3, c_in, c_out)),    # conv1 weight (K, C_in, C_out)
        "b1": _normal(ks[1], (c_out,)),
        "bn1": _init_bn(ks[2], c_out),
        "w2": _normal(ks[3], (3, c_out, c_out)),   # conv2 weight
        "b2": _normal(ks[4], (c_out,)),
        "bn2": _init_bn(ks[5], c_out),
    }
    if use_1x1:
        p["w3"] = _normal(ks[6], (1, c_in, c_out))  # 1x1 conv weight
        p["b3"] = _normal(ks[7], (c_out,))
    return p


def _make_stage(key, input_channels, num_channels, num_residuals, first_block):
    ks = jax.random.split(key, num_residuals)
    stage = []
    for i in range(num_residuals):
        if i == 0 and (not first_block):
            stage.append(_init_residual(ks[i], input_channels, num_channels,
                                        use_1x1=True, stride=2))
        else:
            stage.append(_init_residual(ks[i], num_channels, num_channels,
                                        use_1x1=False, stride=1))
    return stage


def init_params(key):
    ks = jax.random.split(key, 10)
    return {
        "emb1": _normal(ks[0], (VOCAB_SIZE, EMBED_SIZE), scale=0.5),
        "emb2": _normal(ks[1], (VOCAB_SIZE, EMBED_SIZE), scale=0.5),
        "conv_ini_w": _normal(ks[2], (7, 2 * EMBED_SIZE, NUM_CHANNEL[0])),
        "conv_ini_b": _normal(ks[3], (NUM_CHANNEL[0],)),
        "bn_ini": _init_bn(ks[4], NUM_CHANNEL[0]),   # nn.BatchNorm1d(64)
        "blocks": [
            _make_stage(ks[5], NUM_CHANNEL[0], NUM_CHANNEL[1], NUM_RESIDUAL[0], True),
            _make_stage(ks[6], NUM_CHANNEL[1], NUM_CHANNEL[2], NUM_RESIDUAL[1], False),
            _make_stage(ks[7], NUM_CHANNEL[2], NUM_CHANNEL[3], NUM_RESIDUAL[2], False),
            _make_stage(ks[8], NUM_CHANNEL[3], NUM_CHANNEL[4], NUM_RESIDUAL[3], False),
        ],
        "dec_w": _normal(ks[9], (NUM_CHANNEL[-1], 50)),
        "dec_b": jnp.zeros((50,), jnp.float32),
    }


# ----------------------------- main -------------------------------------------
if __name__ == "__main__":
    key = jax.random.PRNGKey(0)
    pkey, ikey = jax.random.split(key)
    params = init_params(pkey)
    tokens = jax.random.randint(ikey, (BATCH, SEQ_LEN), 0, VOCAB_SIZE, dtype=jnp.int32)

    fwd = jax.jit(lambda t: text_resnet_forward(t, params))
    out = jax.block_until_ready(fwd(tokens))

    assert out.shape == (BATCH, 50), out.shape
    assert out.dtype == jnp.float32
    assert bool(jnp.all(jnp.isfinite(out)))
    assert bool(jnp.all((out >= 0.0) & (out <= 1.0)))   # sigmoid range
    print("KERNEL_OK")
</pallas_src>

<mosaic_0001>
module attributes {stable_mosaic.version = 11 : i64} {
  func.func @kernel(%arg0: memref<140x32xbf16, #tpu.memory_space<vmem>>, %arg1: memref<224x64xbf16, #tpu.memory_space<vmem>>, %arg2: memref<1x64xf32, #tpu.memory_space<vmem>>, %arg3: memref<36x134xbf16, #tpu.memory_space<vmem>>, %arg4: memref<36x134xbf16, #tpu.memory_space<vmem>>, %arg5: memref<36x134xbf16, #tpu.memory_space<vmem>>, %arg6: memref<192x64xbf16, #tpu.memory_space<vmem>>, %arg7: memref<1x64xf32, #tpu.memory_space<vmem>>, %arg8: memref<192x64xbf16, #tpu.memory_space<vmem>>, %arg9: memref<1x64xf32, #tpu.memory_space<vmem>>, %arg10: memref<36x34xbf16, #tpu.memory_space<vmem>>, %arg11: memref<36x34xbf16, #tpu.memory_space<vmem>>, %arg12: memref<192x128xbf16, #tpu.memory_space<vmem>>, %arg13: memref<1x128xf32, #tpu.memory_space<vmem>>, %arg14: memref<384x128xbf16, #tpu.memory_space<vmem>>, %arg15: memref<1x128xf32, #tpu.memory_space<vmem>>, %arg16: memref<20x34xbf16, #tpu.memory_space<vmem>>, %arg17: memref<20x18xbf16, #tpu.memory_space<vmem>>, %arg18: memref<64x128xbf16, #tpu.memory_space<vmem>>, %arg19: memref<1x128xf32, #tpu.memory_space<vmem>>, %arg20: memref<384x128xbf16, #tpu.memory_space<vmem>>, %arg21: memref<1x128xf32, #tpu.memory_space<vmem>>, %arg22: memref<384x128xbf16, #tpu.memory_space<vmem>>, %arg23: memref<1x128xf32, #tpu.memory_space<vmem>>, %arg24: memref<12x18xbf16, #tpu.memory_space<vmem>>, %arg25: memref<12x10xbf16, #tpu.memory_space<vmem>>, %arg26: memref<128x128xbf16, #tpu.memory_space<vmem>>, %arg27: memref<1x128xf32, #tpu.memory_space<vmem>>, %arg28: memref<384x128xbf16, #tpu.memory_space<vmem>>, %arg29: memref<1x128xf32, #tpu.memory_space<vmem>>, %arg30: memref<384x128xbf16, #tpu.memory_space<vmem>>, %arg31: memref<1x128xf32, #tpu.memory_space<vmem>>, %arg32: memref<8x10xbf16, #tpu.memory_space<vmem>>, %arg33: memref<8x6xbf16, #tpu.memory_space<vmem>>, %arg34: memref<128x128xbf16, #tpu.memory_space<vmem>>, %arg35: memref<1x128xf32, #tpu.memory_space<vmem>>, %arg36: memref<2x8xbf16, #tpu.memory_space<vmem>>, %arg37: memref<128x50xbf16, #tpu.memory_space<vmem>>, %arg38: memref<1x50xf32, #tpu.memory_space<vmem>>, %arg39: memref<2x50xf32, #tpu.memory_space<vmem>>) attributes {dimension_semantics = [], scalar_prefetch = 0 : i64, scratch_operands = 0 : i64, tpu.core_type = #tpu.core_type<tc>} {
    %c0 = arith.constant 0 : index
    %c0_0 = arith.constant 0 : index
    %0 = vector.load %arg0[%c0, %c0_0] : memref<140x32xbf16, #tpu.memory_space<vmem>>, vector<140x32xbf16>
    %c0_1 = arith.constant 0 : index
    %c0_2 = arith.constant 0 : index
    %1 = vector.load %arg1[%c0_1, %c0_2] : memref<224x64xbf16, #tpu.memory_space<vmem>>, vector<224x64xbf16>
    %c0_3 = arith.constant 0 : index
    %c0_4 = arith.constant 0 : index
    %2 = vector.load %arg2[%c0_3, %c0_4] : memref<1x64xf32, #tpu.memory_space<vmem>>, vector<1x64xf32>
    %c0_5 = arith.constant 0 : index
    %c0_6 = arith.constant 0 : index
    %3 = vector.load %arg3[%c0_5, %c0_6] : memref<36x134xbf16, #tpu.memory_space<vmem>>, vector<36x134xbf16>
    %c0_7 = arith.constant 0 : index
    %c0_8 = arith.constant 0 : index
    %4 = vector.load %arg4[%c0_7, %c0_8] : memref<36x134xbf16, #tpu.memory_space<vmem>>, vector<36x134xbf16>
    %c0_9 = arith.constant 0 : index
    %c0_10 = arith.constant 0 : index
    %5 = vector.load %arg5[%c0_9, %c0_10] : memref<36x134xbf16, #tpu.memory_space<vmem>>, vector<36x134xbf16>
    %6 = vector.extract_strided_slice %0 {offsets = [0, 0], sizes = [134, 32], strides = [1, 1]} : vector<140x32xbf16> to vector<134x32xbf16>
    %7 = vector.extract_strided_slice %0 {offsets = [1, 0], sizes = [134, 32], strides = [1, 1]} : vector<140x32xbf16> to vector<134x32xbf16>
    %8 = vector.extract_strided_slice %0 {offsets = [2, 0], sizes = [134, 32], strides = [1, 1]} : vector<140x32xbf16> to vector<134x32xbf16>
    %9 = vector.extract_strided_slice %0 {offsets = [3, 0], sizes = [134, 32], strides = [1, 1]} : vector<140x32xbf16> to vector<134x32xbf16>
    %10 = vector.extract_strided_slice %0 {offsets = [4, 0], sizes = [134, 32], strides = [1, 1]} : vector<140x32xbf16> to vector<134x32xbf16>
    %11 = vector.extract_strided_slice %0 {offsets = [5, 0], sizes = [134, 32], strides = [1, 1]} : vector<140x32xbf16> to vector<134x32xbf16>
    %12 = vector.extract_strided_slice %0 {offsets = [6, 0], sizes = [134, 32], strides = [1, 1]} : vector<140x32xbf16> to vector<134x32xbf16>
    %13 = tpu.concatenate %6, %7, %8, %9, %10, %11, %12 in 1 : vector<134x32xbf16>, vector<134x32xbf16>, vector<134x32xbf16>, vector<134x32xbf16>, vector<134x32xbf16>, vector<134x32xbf16>, vector<134x32xbf16> -> vector<134x224xbf16>
    %cst = arith.constant dense<0.000000e+00> : vector<134x64xf32>
    %14 = tpu.matmul %13, %1, %cst {dimension_numbers = #tpu.dot_dimension_numbers<[1], [0], [0], [1], [0, 0, 1, 1], [], []>} : vector<134x224xbf16>, vector<224x64xbf16>, vector<134x64xf32> -> vector<134x64xf32>
    %15 = vector.broadcast %2 : vector<1x64xf32> to vector<134x64xf32>
    %16 = arith.addf %14, %15 : vector<134x64xf32>
    %cst_11 = arith.constant 0.000000e+00 : f32
    %17 = vector.broadcast %cst_11 : f32 to vector<134x64xf32>
    %18 = arith.maximumf %16, %17 : vector<134x64xf32>
    %19 = arith.truncf %18 : vector<134x64xf32> to vector<134x64xbf16>
    %cst_12 = arith.constant dense<0.000000e+00> : vector<36x64xf32>
    %20 = tpu.matmul %3, %19, %cst_12 {dimension_numbers = #tpu.dot_dimension_numbers<[1], [0], [0], [1], [0, 0, 1, 1], [], []>} : vector<36x134xbf16>, vector<134x64xbf16>, vector<36x64xf32> -> vector<36x64xf32>
    %cst_13 = arith.constant dense<0.000000e+00> : vector<36x64xf32>
    %21 = tpu.matmul %4, %19, %cst_13 {dimension_numbers = #tpu.dot_dimension_numbers<[1], [0], [0], [1], [0, 0, 1, 1], [], []>} : vector<36x134xbf16>, vector<134x64xbf16>, vector<36x64xf32> -> vector<36x64xf32>
    %22 = arith.maximumf %20, %21 : vector<36x64xf32>
    %cst_14 = arith.constant dense<0.000000e+00> : vector<36x64xf32>
    %23 = tpu.matmul %5, %19, %cst_14 {dimension_numbers = #tpu.dot_dimension_numbers<[1], [0], [0], [1], [0, 0, 1, 1], [], []>} : vector<36x134xbf16>, vector<134x64xbf16>, vector<36x64xf32> -> vector<36x64xf32>
    %24 = arith.maximumf %22, %23 : vector<36x64xf32>
    %25 = arith.truncf %24 : vector<36x64xf32> to vector<36x64xbf16>
    %c0_15 = arith.constant 0 : index
    %c0_16 = arith.constant 0 : index
    %26 = vector.load %arg6[%c0_15, %c0_16] : memref<192x64xbf16, #tpu.memory_space<vmem>>, vector<192x64xbf16>
    %c0_17 = arith.constant 0 : index
    %c0_18 = arith.constant 0 : index
    %27 = vector.load %arg7[%c0_17, %c0_18] : memref<1x64xf32, #tpu.memory_space<vmem>>, vector<1x64xf32>
    %c0_19 = arith.constant 0 : index
    %c0_20 = arith.constant 0 : index
    %28 = vector.load %arg8[%c0_19, %c0_20] : memref<192x64xbf16, #tpu.memory_space<vmem>>, vector<192x64xbf16>
    %c0_21 = arith.constant 0 : index
    %c0_22 = arith.constant 0 : index
    %29 = vector.load %arg9[%c0_21, %c0_22] : memref<1x64xf32, #tpu.memory_space<vmem>>, vector<1x64xf32>
    %c0_23 = arith.constant 0 : index
    %c0_24 = arith.constant 0 : index
    %30 = vector.load %arg10[%c0_23, %c0_24] : memref<36x34xbf16, #tpu.memory_space<vmem>>, vector<36x34xbf16>
    %c0_25 = arith.constant 0 : index
    %c0_26 = arith.constant 0 : index
    %31 = vector.load %arg11[%c0_25, %c0_26] : memref<36x34xbf16, #tpu.memory_space<vmem>>, vector<36x34xbf16>
    %32 = vector.extract_strided_slice %25 {offsets = [0, 0], sizes = [34, 64], strides = [1, 1]} : vector<36x64xbf16> to vector<34x64xbf16>
    %33 = vector.extract_strided_slice %25 {offsets = [1, 0], sizes = [34, 64], strides = [1, 1]} : vector<36x64xbf16> to vector<34x64xbf16>
    %34 = vector.extract_strided_slice %25 {offsets = [2, 0], sizes = [34, 64], strides = [1, 1]} : vector<36x64xbf16> to vector<34x64xbf16>
    %35 = tpu.concatenate %32, %33, %34 in 1 : vector<34x64xbf16>, vector<34x64xbf16>, vector<34x64xbf16> -> vector<34x192xbf16>
    %cst_27 = arith.constant dense<0.000000e+00> : vector<34x64xf32>
    %36 = tpu.matmul %35, %26, %cst_27 {dimension_numbers = #tpu.dot_dimension_numbers<[1], [0], [0], [1], [0, 0, 1, 1], [], []>} : vector<34x192xbf16>, vector<192x64xbf16>, vector<34x64xf32> -> vector<34x64xf32>
    %37 = vector.broadcast %27 : vector<1x64xf32> to vector<34x64xf32>
    %38 = arith.addf %36, %37 : vector<34x64xf32>
    %cst_28 = arith.constant 0.000000e+00 : f32
    %39 = vector.broadcast %cst_28 : f32 to vector<34x64xf32>
    %40 = arith.maximumf %38, %39 : vector<34x64xf32>
    %41 = arith.truncf %40 : vector<34x64xf32> to vector<34x64xbf16>
    %cst_29 = arith.constant dense<0.000000e+00> : vector<36x64xf32>
    %42 = tpu.matmul %30, %41, %cst_29 {dimension_numbers = #tpu.dot_dimension_numbers<[1], [0], [0], [1], [0, 0, 1, 1], [], []>} : vector<36x34xbf16>, vector<34x64xbf16>, vector<36x64xf32> -> vector<36x64xf32>
    %43 = arith.truncf %42 : vector<36x64xf32> to vector<36x64xbf16>
    %44 = vector.extract_strided_slice %43 {offsets = [0, 0], sizes = [34, 64], strides = [1, 1]} : vector<36x64xbf16> to vector<34x64xbf16>
    %45 = vector.extract_strided_slice %43 {offsets = [1, 0], sizes = [34, 64], strides = [1, 1]} : vector<36x64xbf16> to vector<34x64xbf16>
    %46 = vector.extract_strided_slice %43 {offsets = [2, 0], sizes = [34, 64], strides = [1, 1]} : vector<36x64xbf16> to vector<34x64xbf16>
    %47 = tpu.concatenate %44, %45, %46 in 1 : vector<34x64xbf16>, vector<34x64xbf16>, vector<34x64xbf16> -> vector<34x192xbf16>
    %cst_30 = arith.constant dense<0.000000e+00> : vector<34x64xf32>
    %48 = tpu.matmul %47, %28, %cst_30 {dimension_numbers = #tpu.dot_dimension_numbers<[1], [0], [0], [1], [0, 0, 1, 1], [], []>} : vector<34x192xbf16>, vector<192x64xbf16>, vector<34x64xf32> -> vector<34x64xf32>
    %49 = vector.broadcast %29 : vector<1x64xf32> to vector<34x64xf32>
    %50 = arith.addf %48, %49 : vector<34x64xf32>
    %51 = vector.extract_strided_slice %25 {offsets = [1, 0], sizes = [34, 64], strides = [1, 1]} : vector<36x64xbf16> to vector<34x64xbf16>
    %52 = arith.extf %51 : vector<34x64xbf16> to vector<34x64xf32>
    %53 = arith.addf %50, %52 : vector<34x64xf32>
    %cst_31 = arith.constant 0.000000e+00 : f32
    %54 = vector.broadcast %cst_31 : f32 to vector<34x64xf32>
    %55 = arith.maximumf %53, %54 : vector<34x64xf32>
    %56 = arith.truncf %55 : vector<34x64xf32> to vector<34x64xbf16>
    %cst_32 = arith.constant dense<0.000000e+00> : vector<36x64xf32>
    %57 = tpu.matmul %31, %56, %cst_32 {dimension_numbers = #tpu.dot_dimension_numbers<[1], [0], [0], [1], [0, 0, 1, 1], [], []>} : vector<36x34xbf16>, vector<34x64xbf16>, vector<36x64xf32> -> vector<36x64xf32>
    %58 = arith.truncf %57 : vector<36x64xf32> to vector<36x64xbf16>
    %c0_33 = arith.constant 0 : index
    %c0_34 = arith.constant 0 : index
    %59 = vector.load %arg12[%c0_33, %c0_34] : memref<192x128xbf16, #tpu.memory_space<vmem>>, vector<192x128xbf16>
    %c0_35 = arith.constant 0 : index
    %c0_36 = arith.constant 0 : index
    %60 = vector.load %arg13[%c0_35, %c0_36] : memref<1x128xf32, #tpu.memory_space<vmem>>, vector<1x128xf32>
    %c0_37 = arith.constant 0 : index
    %c0_38 = arith.constant 0 : index
    %61 = vector.load %arg14[%c0_37, %c0_38] : memref<384x128xbf16, #tpu.memory_space<vmem>>, vector<384x128xbf16>
    %c0_39 = arith.constant 0 : index
    %c0_40 = arith.constant 0 : index
    %62 = vector.load %arg15[%c0_39, %c0_40] : memref<1x128xf32, #tpu.memory_space<vmem>>, vector<1x128xf32>
    %c0_41 = arith.constant 0 : index
    %c0_42 = arith.constant 0 : index
    %63 = vector.load %arg16[%c0_41, %c0_42] : memref<20x34xbf16, #tpu.memory_space<vmem>>, vector<20x34xbf16>
    %c0_43 = arith.constant 0 : index
    %c0_44 = arith.constant 0 : index
    %64 = vector.load %arg17[%c0_43, %c0_44] : memref<20x18xbf16, #tpu.memory_space<vmem>>, vector<20x18xbf16>
    %c0_45 = arith.constant 0 : index
    %c0_46 = arith.constant 0 : index
    %65 = vector.load %arg18[%c0_45, %c0_46] : memref<64x128xbf16, #tpu.memory_space<vmem>>, vector<64x128xbf16>
    %c0_47 = arith.constant 0 : index
    %c0_48 = arith.constant 0 : index
    %66 = vector.load %arg19[%c0_47, %c0_48] : memref<1x128xf32, #tpu.memory_space<vmem>>, vector<1x128xf32>
    %67 = vector.extract_strided_slice %58 {offsets = [0, 0], sizes = [34, 64], strides = [1, 1]} : vector<36x64xbf16> to vector<34x64xbf16>
    %68 = vector.extract_strided_slice %58 {offsets = [1, 0], sizes = [34, 64], strides = [1, 1]} : vector<36x64xbf16> to vector<34x64xbf16>
    %69 = vector.extract_strided_slice %58 {offsets = [2, 0], sizes = [34, 64], strides = [1, 1]} : vector<36x64xbf16> to vector<34x64xbf16>
    %70 = tpu.concatenate %67, %68, %69 in 1 : vector<34x64xbf16>, vector<34x64xbf16>, vector<34x64xbf16> -> vector<34x192xbf16>
    %cst_49 = arith.constant dense<0.000000e+00> : vector<34x128xf32>
    %71 = tpu.matmul %70, %59, %cst_49 {dimension_numbers = #tpu.dot_dimension_numbers<[1], [0], [0], [1], [0, 0, 1, 1], [], []>} : vector<34x192xbf16>, vector<192x128xbf16>, vector<34x128xf32> -> vector<34x128xf32>
    %72 = vector.broadcast %60 : vector<1x128xf32> to vector<34x128xf32>
    %73 = arith.addf %71, %72 : vector<34x128xf32>
    %cst_50 = arith.constant 0.000000e+00 : f32
    %74 = vector.broadcast %cst_50 : f32 to vector<34x128xf32>
    %75 = arith.maximumf %73, %74 : vector<34x128xf32>
    %76 = arith.truncf %75 : vector<34x128xf32> to vector<34x128xbf16>
    %cst_51 = arith.constant dense<0.000000e+00> : vector<20x128xf32>
    %77 = tpu.matmul %63, %76, %cst_51 {dimension_numbers = #tpu.dot_dimension_numbers<[1], [0], [0], [1], [0, 0, 1, 1], [], []>} : vector<20x34xbf16>, vector<34x128xbf16>, vector<20x128xf32> -> vector<20x128xf32>
    %78 = arith.truncf %77 : vector<20x128xf32> to vector<20x128xbf16>
    %79 = vector.extract_strided_slice %78 {offsets = [0, 0], sizes = [18, 128], strides = [1, 1]} : vector<20x128xbf16> to vector<18x128xbf16>
    %80 = vector.extract_strided_slice %78 {offsets = [1, 0], sizes = [18, 128], strides = [1, 1]} : vector<20x128xbf16> to vector<18x128xbf16>
    %81 = vector.extract_strided_slice %78 {offsets = [2, 0], sizes = [18, 128], strides = [1, 1]} : vector<20x128xbf16> to vector<18x128xbf16>
    %82 = tpu.concatenate %79, %80, %81 in 1 : vector<18x128xbf16>, vector<18x128xbf16>, vector<18x128xbf16> -> vector<18x384xbf16>
    %cst_52 = arith.constant dense<0.000000e+00> : vector<18x128xf32>
    %83 = tpu.matmul %82, %61, %cst_52 {dimension_numbers = #tpu.dot_dimension_numbers<[1], [0], [0], [1], [0, 0, 1, 1], [], []>} : vector<18x384xbf16>, vector<384x128xbf16>, vector<18x128xf32> -> vector<18x128xf32>
    %84 = vector.broadcast %62 : vector<1x128xf32> to vector<18x128xf32>
    %85 = arith.addf %83, %84 : vector<18x128xf32>
    %86 = vector.extract_strided_slice %58 {offsets = [1, 0], sizes = [34, 64], strides = [1, 1]} : vector<36x64xbf16> to vector<34x64xbf16>
    %cst_53 = arith.constant dense<0.000000e+00> : vector<20x64xf32>
    %87 = tpu.matmul %63, %86, %cst_53 {dimension_numbers = #tpu.dot_dimension_numbers<[1], [0], [0], [1], [0, 0, 1, 1], [], []>} : vector<20x34xbf16>, vector<34x64xbf16>, vector<20x64xf32> -> vector<20x64xf32>
    %88 = arith.truncf %87 : vector<20x64xf32> to vector<20x64xbf16>
    %cst_54 = arith.constant dense<0.000000e+00> : vector<20x128xf32>
    %89 = tpu.matmul %88, %65, %cst_54 {dimension_numbers = #tpu.dot_dimension_numbers<[1], [0], [0], [1], [0, 0, 1, 1], [], []>} : vector<20x64xbf16>, vector<64x128xbf16>, vector<20x128xf32> -> vector<20x128xf32>
    %90 = vector.broadcast %66 : vector<1x128xf32> to vector<20x128xf32>
    %91 = arith.addf %89, %90 : vector<20x128xf32>
    %92 = vector.extract_strided_slice %91 {offsets = [1, 0], sizes = [18, 128], strides = [1, 1]} : vector<20x128xf32> to vector<18x128xf32>
    %93 = arith.addf %85, %92 : vector<18x128xf32>
    %cst_55 = arith.constant 0.000000e+00 : f32
    %94 = vector.broadcast %cst_55 : f32 to vector<18x128xf32>
    %95 = arith.maximumf %93, %94 : vector<18x128xf32>
    %96 = arith.truncf %95 : vector<18x128xf32> to vector<18x128xbf16>
    %cst_56 = arith.constant dense<0.000000e+00> : vector<20x128xf32>
    %97 = tpu.matmul %64, %96, %cst_56 {dimension_numbers = #tpu.dot_dimension_numbers<[1], [0], [0], [1], [0, 0, 1, 1], [], []>} : vector<20x18xbf16>, vector<18x128xbf16>, vector<20x128xf32> -> vector<20x128xf32>
    %98 = arith.truncf %97 : vector<20x128xf32> to vector<20x128xbf16>
    %c0_57 = arith.constant 0 : index
    %c0_58 = arith.constant 0 : index
    %99 = vector.load %arg20[%c0_57, %c0_58] : memref<384x128xbf16, #tpu.memory_space<vmem>>, vector<384x128xbf16>
    %c0_59 = arith.constant 0 : index
    %c0_60 = arith.constant 0 : index
    %100 = vector.load %arg21[%c0_59, %c0_60] : memref<1x128xf32, #tpu.memory_space<vmem>>, vector<1x128xf32>
    %c0_61 = arith.constant 0 : index
    %c0_62 = arith.constant 0 : index
    %101 = vector.load %arg22[%c0_61, %c0_62] : memref<384x128xbf16, #tpu.memory_space<vmem>>, vector<384x128xbf16>
    %c0_63 = arith.constant 0 : index
    %c0_64 = arith.constant 0 : index
    %102 = vector.load %arg23[%c0_63, %c0_64] : memref<1x128xf32, #tpu.memory_space<vmem>>, vector<1x128xf32>
    %c0_65 = arith.constant 0 : index
    %c0_66 = arith.constant 0 : index
    %103 = vector.load %arg24[%c0_65, %c0_66] : memref<12x18xbf16, #tpu.memory_space<vmem>>, vector<12x18xbf16>
    %c0_67 = arith.constant 0 : index
    %c0_68 = arith.constant 0 : index
    %104 = vector.load %arg25[%c0_67, %c0_68] : memref<12x10xbf16, #tpu.memory_space<vmem>>, vector<12x10xbf16>
    %c0_69 = arith.constant 0 : index
    %c0_70 = arith.constant 0 : index
    %105 = vector.load %arg26[%c0_69, %c0_70] : memref<128x128xbf16, #tpu.memory_space<vmem>>, vector<128x128xbf16>
    %c0_71 = arith.constant 0 : index
    %c0_72 = arith.constant 0 : index
    %106 = vector.load %arg27[%c0_71, %c0_72] : memref<1x128xf32, #tpu.memory_space<vmem>>, vector<1x128xf32>
    %107 = vector.extract_strided_slice %98 {offsets = [0, 0], sizes = [18, 128], strides = [1, 1]} : vector<20x128xbf16> to vector<18x128xbf16>
    %108 = vector.extract_strided_slice %98 {offsets = [1, 0], sizes = [18, 128], strides = [1, 1]} : vector<20x128xbf16> to vector<18x128xbf16>
    %109 = vector.extract_strided_slice %98 {offsets = [2, 0], sizes = [18, 128], strides = [1, 1]} : vector<20x128xbf16> to vector<18x128xbf16>
    %110 = tpu.concatenate %107, %108, %109 in 1 : vector<18x128xbf16>, vector<18x128xbf16>, vector<18x128xbf16> -> vector<18x384xbf16>
    %cst_73 = arith.constant dense<0.000000e+00> : vector<18x128xf32>
    %111 = tpu.matmul %110, %99, %cst_73 {dimension_numbers = #tpu.dot_dimension_numbers<[1], [0], [0], [1], [0, 0, 1, 1], [], []>} : vector<18x384xbf16>, vector<384x128xbf16>, vector<18x128xf32> -> vector<18x128xf32>
    %112 = vector.broadcast %100 : vector<1x128xf32> to vector<18x128xf32>
    %113 = arith.addf %111, %112 : vector<18x128xf32>
    %cst_74 = arith.constant 0.000000e+00 : f32
    %114 = vector.broadcast %cst_74 : f32 to vector<18x128xf32>
    %115 = arith.maximumf %113, %114 : vector<18x128xf32>
    %116 = arith.truncf %115 : vector<18x128xf32> to vector<18x128xbf16>
    %cst_75 = arith.constant dense<0.000000e+00> : vector<12x128xf32>
    %117 = tpu.matmul %103, %116, %cst_75 {dimension_numbers = #tpu.dot_dimension_numbers<[1], [0], [0], [1], [0, 0, 1, 1], [], []>} : vector<12x18xbf16>, vector<18x128xbf16>, vector<12x128xf32> -> vector<12x128xf32>
    %118 = arith.truncf %117 : vector<12x128xf32> to vector<12x128xbf16>
    %119 = vector.extract_strided_slice %118 {offsets = [0, 0], sizes = [10, 128], strides = [1, 1]} : vector<12x128xbf16> to vector<10x128xbf16>
    %120 = vector.extract_strided_slice %118 {offsets = [1, 0], sizes = [10, 128], strides = [1, 1]} : vector<12x128xbf16> to vector<10x128xbf16>
    %121 = vector.extract_strided_slice %118 {offsets = [2, 0], sizes = [10, 128], strides = [1, 1]} : vector<12x128xbf16> to vector<10x128xbf16>
    %122 = tpu.concatenate %119, %120, %121 in 1 : vector<10x128xbf16>, vector<10x128xbf16>, vector<10x128xbf16> -> vector<10x384xbf16>
    %cst_76 = arith.constant dense<0.000000e+00> : vector<10x128xf32>
    %123 = tpu.matmul %122, %101, %cst_76 {dimension_numbers = #tpu.dot_dimension_numbers<[1], [0], [0], [1], [0, 0, 1, 1], [], []>} : vector<10x384xbf16>, vector<384x128xbf16>, vector<10x128xf32> -> vector<10x128xf32>
    %124 = vector.broadcast %102 : vector<1x128xf32> to vector<10x128xf32>
    %125 = arith.addf %123, %124 : vector<10x128xf32>
    %126 = vector.extract_strided_slice %98 {offsets = [1, 0], sizes = [18, 128], strides = [1, 1]} : vector<20x128xbf16> to vector<18x128xbf16>
    %cst_77 = arith.constant dense<0.000000e+00> : vector<12x128xf32>
    %127 = tpu.matmul %103, %126, %cst_77 {dimension_numbers = #tpu.dot_dimension_numbers<[1], [0], [0], [1], [0, 0, 1, 1], [], []>} : vector<12x18xbf16>, vector<18x128xbf16>, vector<12x128xf32> -> vector<12x128xf32>
    %128 = arith.truncf %127 : vector<12x128xf32> to vector<12x128xbf16>
    %cst_78 = arith.constant dense<0.000000e+00> : vector<12x128xf32>
    %129 = tpu.matmul %128, %105, %cst_78 {dimension_numbers = #tpu.dot_dimension_numbers<[1], [0], [0], [1], [0, 0, 1, 1], [], []>} : vector<12x128xbf16>, vector<128x128xbf16>, vector<12x128xf32> -> vector<12x128xf32>
    %130 = vector.broadcast %106 : vector<1x128xf32> to vector<12x128xf32>
    %131 = arith.addf %129, %130 : vector<12x128xf32>
    %132 = vector.extract_strided_slice %131 {offsets = [1, 0], sizes = [10, 128], strides = [1, 1]} : vector<12x128xf32> to vector<10x128xf32>
    %133 = arith.addf %125, %132 : vector<10x128xf32>
    %cst_79 = arith.constant 0.000000e+00 : f32
    %134 = vector.broadcast %cst_79 : f32 to vector<10x128xf32>
    %135 = arith.maximumf %133, %134 : vector<10x128xf32>
    %136 = arith.truncf %135 : vector<10x128xf32> to vector<10x128xbf16>
    %cst_80 = arith.constant dense<0.000000e+00> : vector<12x128xf32>
    %137 = tpu.matmul %104, %136, %cst_80 {dimension_numbers = #tpu.dot_dimension_numbers<[1], [0], [0], [1], [0, 0, 1, 1], [], []>} : vector<12x10xbf16>, vector<10x128xbf16>, vector<12x128xf32> -> vector<12x128xf32>
    %138 = arith.truncf %137 : vector<12x128xf32> to vector<12x128xbf16>
    %c0_81 = arith.constant 0 : index
    %c0_82 = arith.constant 0 : index
    %139 = vector.load %arg28[%c0_81, %c0_82] : memref<384x128xbf16, #tpu.memory_space<vmem>>, vector<384x128xbf16>
    %c0_83 = arith.constant 0 : index
    %c0_84 = arith.constant 0 : index
    %140 = vector.load %arg29[%c0_83, %c0_84] : memref<1x128xf32, #tpu.memory_space<vmem>>, vector<1x128xf32>
    %c0_85 = arith.constant 0 : index
    %c0_86 = arith.constant 0 : index
    %141 = vector.load %arg30[%c0_85, %c0_86] : memref<384x128xbf16, #tpu.memory_space<vmem>>, vector<384x128xbf16>
    %c0_87 = arith.constant 0 : index
    %c0_88 = arith.constant 0 : index
    %142 = vector.load %arg31[%c0_87, %c0_88] : memref<1x128xf32, #tpu.memory_space<vmem>>, vector<1x128xf32>
    %c0_89 = arith.constant 0 : index
    %c0_90 = arith.constant 0 : index
    %143 = vector.load %arg32[%c0_89, %c0_90] : memref<8x10xbf16, #tpu.memory_space<vmem>>, vector<8x10xbf16>
    %c0_91 = arith.constant 0 : index
    %c0_92 = arith.constant 0 : index
    %144 = vector.load %arg33[%c0_91, %c0_92] : memref<8x6xbf16, #tpu.memory_space<vmem>>, vector<8x6xbf16>
    %c0_93 = arith.constant 0 : index
    %c0_94 = arith.constant 0 : index
    %145 = vector.load %arg34[%c0_93, %c0_94] : memref<128x128xbf16, #tpu.memory_space<vmem>>, vector<128x128xbf16>
    %c0_95 = arith.constant 0 : index
    %c0_96 = arith.constant 0 : index
    %146 = vector.load %arg35[%c0_95, %c0_96] : memref<1x128xf32, #tpu.memory_space<vmem>>, vector<1x128xf32>
    %147 = vector.extract_strided_slice %138 {offsets = [0, 0], sizes = [10, 128], strides = [1, 1]} : vector<12x128xbf16> to vector<10x128xbf16>
    %148 = vector.extract_strided_slice %138 {offsets = [1, 0], sizes = [10, 128], strides = [1, 1]} : vector<12x128xbf16> to vector<10x128xbf16>
    %149 = vector.extract_strided_slice %138 {offsets = [2, 0], sizes = [10, 128], strides = [1, 1]} : vector<12x128xbf16> to vector<10x128xbf16>
    %150 = tpu.concatenate %147, %148, %149 in 1 : vector<10x128xbf16>, vector<10x128xbf16>, vector<10x128xbf16> -> vector<10x384xbf16>
    %cst_97 = arith.constant dense<0.000000e+00> : vector<10x128xf32>
    %151 = tpu.matmul %150, %139, %cst_97 {dimension_numbers = #tpu.dot_dimension_numbers<[1], [0], [0], [1], [0, 0, 1, 1], [], []>} : vector<10x384xbf16>, vector<384x128xbf16>, vector<10x128xf32> -> vector<10x128xf32>
    %152 = vector.broadcast %140 : vector<1x128xf32> to vector<10x128xf32>
    %153 = arith.addf %151, %152 : vector<10x128xf32>
    %cst_98 = arith.constant 0.000000e+00 : f32
    %154 = vector.broadcast %cst_98 : f32 to vector<10x128xf32>
    %155 = arith.maximumf %153, %154 : vector<10x128xf32>
    %156 = arith.truncf %155 : vector<10x128xf32> to vector<10x128xbf16>
    %cst_99 = arith.constant dense<0.000000e+00> : vector<8x128xf32>
    %157 = tpu.matmul %143, %156, %cst_99 {dimension_numbers = #tpu.dot_dimension_numbers<[1], [0], [0], [1], [0, 0, 1, 1], [], []>} : vector<8x10xbf16>, vector<10x128xbf16>, vector<8x128xf32> -> vector<8x128xf32>
    %158 = arith.truncf %157 : vector<8x128xf32> to vector<8x128xbf16>
    %159 = vector.extract_strided_slice %158 {offsets = [0, 0], sizes = [6, 128], strides = [1, 1]} : vector<8x128xbf16> to vector<6x128xbf16>
    %160 = vector.extract_strided_slice %158 {offsets = [1, 0], sizes = [6, 128], strides = [1, 1]} : vector<8x128xbf16> to vector<6x128xbf16>
    %161 = vector.extract_strided_slice %158 {offsets = [2, 0], sizes = [6, 128], strides = [1, 1]} : vector<8x128xbf16> to vector<6x128xbf16>
    %162 = tpu.concatenate %159, %160, %161 in 1 : vector<6x128xbf16>, vector<6x128xbf16>, vector<6x128xbf16> -> vector<6x384xbf16>
    %cst_100 = arith.constant dense<0.000000e+00> : vector<6x128xf32>
    %163 = tpu.matmul %162, %141, %cst_100 {dimension_numbers = #tpu.dot_dimension_numbers<[1], [0], [0], [1], [0, 0, 1, 1], [], []>} : vector<6x384xbf16>, vector<384x128xbf16>, vector<6x128xf32> -> vector<6x128xf32>
    %164 = vector.broadcast %142 : vector<1x128xf32> to vector<6x128xf32>
    %165 = arith.addf %163, %164 : vector<6x128xf32>
    %166 = vector.extract_strided_slice %138 {offsets = [1, 0], sizes = [10, 128], strides = [1, 1]} : vector<12x128xbf16> to vector<10x128xbf16>
    %cst_101 = arith.constant dense<0.000000e+00> : vector<8x128xf32>
    %167 = tpu.matmul %143, %166, %cst_101 {dimension_numbers = #tpu.dot_dimension_numbers<[1], [0], [0], [1], [0, 0, 1, 1], [], []>} : vector<8x10xbf16>, vector<10x128xbf16>, vector<8x128xf32> -> vector<8x128xf32>
    %168 = arith.truncf %167 : vector<8x128xf32> to vector<8x128xbf16>
    %cst_102 = arith.constant dense<0.000000e+00> : vector<8x128xf32>
    %169 = tpu.matmul %168, %145, %cst_102 {dimension_numbers = #tpu.dot_dimension_numbers<[1], [0], [0], [1], [0, 0, 1, 1], [], []>} : vector<8x128xbf16>, vector<128x128xbf16>, vector<8x128xf32> -> vector<8x128xf32>
    %170 = vector.broadcast %146 : vector<1x128xf32> to vector<8x128xf32>
    %171 = arith.addf %169, %170 : vector<8x128xf32>
    %172 = vector.extract_strided_slice %171 {offsets = [1, 0], sizes = [6, 128], strides = [1, 1]} : vector<8x128xf32> to vector<6x128xf32>
    %173 = arith.addf %165, %172 : vector<6x128xf32>
    %cst_103 = arith.constant 0.000000e+00 : f32
    %174 = vector.broadcast %cst_103 : f32 to vector<6x128xf32>
    %175 = arith.maximumf %173, %174 : vector<6x128xf32>
    %176 = arith.truncf %175 : vector<6x128xf32> to vector<6x128xbf16>
    %cst_104 = arith.constant dense<0.000000e+00> : vector<8x128xf32>
    %177 = tpu.matmul %144, %176, %cst_104 {dimension_numbers = #tpu.dot_dimension_numbers<[1], [0], [0], [1], [0, 0, 1, 1], [], []>} : vector<8x6xbf16>, vector<6x128xbf16>, vector<8x128xf32> -> vector<8x128xf32>
    %178 = arith.truncf %177 : vector<8x128xf32> to vector<8x128xbf16>
    %c0_105 = arith.constant 0 : index
    %c0_106 = arith.constant 0 : index
    %179 = vector.load %arg36[%c0_105, %c0_106] : memref<2x8xbf16, #tpu.memory_space<vmem>>, vector<2x8xbf16>
    %c0_107 = arith.constant 0 : index
    %c0_108 = arith.constant 0 : index
    %180 = vector.load %arg37[%c0_107, %c0_108] : memref<128x50xbf16, #tpu.memory_space<vmem>>, vector<128x50xbf16>
    %c0_109 = arith.constant 0 : index
    %c0_110 = arith.constant 0 : index
    %181 = vector.load %arg38[%c0_109, %c0_110] : memref<1x50xf32, #tpu.memory_space<vmem>>, vector<1x50xf32>
    %cst_111 = arith.constant dense<0.000000e+00> : vector<2x128xf32>
    %182 = tpu.matmul %179, %178, %cst_111 {dimension_numbers = #tpu.dot_dimension_numbers<[1], [0], [0], [1], [0, 0, 1, 1], [], []>} : vector<2x8xbf16>, vector<8x128xbf16>, vector<2x128xf32> -> vector<2x128xf32>
    %cst_112 = arith.constant 0.000000e+00 : f32
    %183 = vector.broadcast %cst_112 : f32 to vector<2x128xf32>
    %184 = arith.maximumf %182, %183 : vector<2x128xf32>
    %185 = arith.truncf %184 : vector<2x128xf32> to vector<2x128xbf16>
    %cst_113 = arith.constant dense<0.000000e+00> : vector<2x50xf32>
    %186 = tpu.matmul %185, %180, %cst_113 {dimension_numbers = #tpu.dot_dimension_numbers<[1], [0], [0], [1], [0, 0, 1, 1], [], []>} : vector<2x128xbf16>, vector<128x50xbf16>, vector<2x50xf32> -> vector<2x50xf32>
    %187 = vector.broadcast %181 : vector<1x50xf32> to vector<2x50xf32>
    %188 = arith.addf %186, %187 : vector<2x50xf32>
    %189 = arith.negf %188 : vector<2x50xf32>
    %190 = math.exp %189 : vector<2x50xf32>
    %cst_114 = arith.constant 1.000000e+00 : f32
    %191 = vector.broadcast %cst_114 : f32 to vector<2x50xf32>
    %192 = arith.addf %191, %190 : vector<2x50xf32>
    %193 = arith.divf %191, %192 : vector<2x50xf32>
    %c0_115 = arith.constant 0 : index
    %c0_116 = arith.constant 0 : index
    %194 = vector.load %arg39[%c0_115, %c0_116] : memref<2x50xf32, #tpu.memory_space<vmem>>, vector<2x50xf32>
    tpu.vector_store %arg39[%c0_115, %c0_116], %193 {strides = array<i32>} : memref<2x50xf32, #tpu.memory_space<vmem>>, vector<2x50xf32>,
    return
  }
}

</mosaic_0001>

<bundles_post_ra>
// kernel: _lambda_.1
= control target key start
LH: loop header
LB: loop body
LE: loop exit
PB: predicated region body
PF: predicated region fallthrough
CT: control target
= control target key end

     0   :  { %s6440_s6 = smov 1   ;;  %s6441_s10 = smov 2   ;;  %s7757_s0 = inlined_call_operand.smem [shape: u32[40], index: -1, kind: input, shape index: {}] }
   0x1   :  { %s6514_s5 = sld [smem:[%s7757_s0]]   ;;  %s6442_s14 = smov 3  }
   0x2   :  { %s6519_s9 = sld [smem:[%s7757_s0 + %s6440_s6]]   ;;  %s6443_s18 = smov 4  }
   0x3   :  { %s6524_s13 = sld [smem:[%s7757_s0 + %s6441_s10]]   ;;  %s6444_s22 = smov 5  }
   0x4   :  { %s6529_s17 = sld [smem:[%s7757_s0 + %s6442_s14]]   ;;  %s6445_s26 = smov 6  }
   0x5   :  { %s6534_s21 = sld [smem:[%s7757_s0 + %s6443_s18]]   ;;  %s6446_s30 = smov 7  }
   0x6   :  { %s6539_s25 = sld [smem:[%s7757_s0 + %s6444_s22]]   ;;  %s6447_s4 = smov 8  }
   0x7   :  { %7778 = sst [smem:[#allocation40_spill]] %s6514_s5  ;;  %s6448_s10 = smov 9  }
   0x8   :  { %7779 = sst [smem:[#allocation41_spill]] %s6519_s9  ;;  %s6449_s15 = smov 10  }
   0x9   :  { %s6544_s29 = sld [smem:[%s7757_s0 + %s6445_s26]]   ;;  %s6450_s20 = smov 11  }
   0xa   :  { %7780 = sst [smem:[#allocation42_spill]] %s6529_s17  ;;  %s6451_s26 = smov 12  }
   0xb   :  { %7781 = sst [smem:[#allocation43_spill]] %s6534_s21  ;;  %s6452_s1 = smov 13  }
   0xc   :  { %s6549_s3 = sld [smem:[%s7757_s0 + %s6446_s30]]   ;;  %s6453_s7 = smov 14  }
   0xd   :  { %s6554_s8 = sld [smem:[%s7757_s0 + %s6447_s4]]   ;;  %s6455_s22 = smov 16  }
   0xe   :  { %s6559_s14 = sld [smem:[%s7757_s0 + %s6448_s10]]   ;;  %s6456_s28 = smov 17  }
   0xf   :  { %7782 = sst [smem:[#allocation44_spill]] %s6544_s29 }
  0x10   :  { %s6564_s19 = sld [smem:[%s7757_s0 + %s6449_s15]]   ;;  %s6454_s15 = smov 15  }
  0x11   :  { %s6569_s24 = sld [smem:[%s7757_s0 + %s6450_s20]]  }
  0x12   :  { %s6574_s30 = sld [smem:[%s7757_s0 + %s6451_s26]]  }
  0x13   :  { %7783 = sst [smem:[#allocation45_spill]] %s6554_s8 }
  0x14   :  { %s6579_s6 = sld [smem:[%s7757_s0 + %s6452_s1]]  }
  0x15   :  { %s6584_s12 = sld [smem:[%s7757_s0 + %s6453_s7]]   ;;  %s6457_s7 = smov 18  }
  0x16   :  { %7784 = sst [smem:[#allocation46_spill]] %s6564_s19 }
  0x17   :  { %7785 = sst [smem:[#allocation47_spill]] %s6569_s24 }
  0x18   :  { %7786 = sst [smem:[#allocation48_spill]] %s6574_s30 }
  0x19   :  { %s6589_s20 = sld [smem:[%s7757_s0 + %s6454_s15]]   ;;  %s6458_s15 = smov 19  }
  0x1a   :  { %s6594_s27 = sld [smem:[%s7757_s0 + %s6455_s22]]   ;;  %s6459_s22 = smov 20  }
  0x1b   :  { %7787 = sst [smem:[#allocation49_spill]] %s6584_s12 }
  0x1c   :  { %s6599_s4 = sld [smem:[%s7757_s0 + %s6456_s28]]   ;;  %s6460_s28 = smov 21  }
  0x1d   :  { %s6604_s12 = sld [smem:[%s7757_s0 + %s6457_s7]]   ;;  %s6461_s7 = smov 22  }
  0x1e   :  { %s6609_s30 = sld [smem:[%s7757_s0 + %s6458_s15]]   ;;  %s6462_s15 = smov 23  }
  0x1f   :  { %s6614_s24 = sld [smem:[%s7757_s0 + %s6459_s22]]   ;;  %s6463_s22 = smov 24  }
  0x20   :  { %s6629_s8 = sld [smem:[%s7757_s0 + %s6462_s15]]   ;;  %s6466_s15 = smov 27  }
  0x21   :  { %s6649_s29 = sld [smem:[%s7757_s0 + %s6466_s15]]   ;;  %s6470_s15 = smov 31  }
  0x22   :  { %7788 = sst [smem:[#allocation50_spill]] %s6599_s4 }
  0x23   :  { %7789 = sst [smem:[#allocation51_spill]] %s6604_s12 }
  0x24   :  { %s6619_s4 = sld [smem:[%s7757_s0 + %s6460_s28]]   ;;  %s6464_s28 = smov 25  }
  0x25   :  { %7790 = sst [smem:[#allocation52_spill]] %s6614_s24 }
  0x26   :  { %s6624_s12 = sld [smem:[%s7757_s0 + %s6461_s7]]   ;;  %s6465_s7 = smov 26  }
  0x27   :  { %s6634_s24 = sld [smem:[%s7757_s0 + %s6463_s22]]   ;;  %s6467_s22 = smov 28  }
  0x28   :  { %s6639_s19 = sld [smem:[%s7757_s0 + %s6464_s28]]   ;;  %s6468_s28 = smov 29  }
  0x29   :  { %s6669_s21 = sld [smem:[%s7757_s0 + %s6470_s15]]   ;;  %s6474_s15 = smov 35  }
  0x2a   :  { %s6689_s9 = sld [smem:[%s7757_s0 + %s6474_s15]]   ;;  %s6478_s15 = smov 39  }
  0x2c   :  { %7791 = sst [smem:[#allocation53_spill]] %s6624_s12 }
  0x2d   :  { %7792 = sst [smem:[#allocation54_spill]] %s6634_s24 }
  0x2e   :  { %7793 = sst [smem:[#allocation55_spill]] %s6639_s19 }
  0x2f   :  { %s6644_s12 = sld [smem:[%s7757_s0 + %s6465_s7]]   ;;  %s6469_s7 = smov 30  }
  0x30   :  { %s6654_s24 = sld [smem:[%s7757_s0 + %s6467_s22]]   ;;  %s6471_s22 = smov 32  }
  0x31   :  { %s6659_s19 = sld [smem:[%s7757_s0 + %s6468_s28]]   ;;  %s6472_s28 = smov 33  }
  0x32   :  { %7797 = sst [smem:[#allocation59_spill]] %s6669_s21 }
  0x33   :  { %s6679_s17 = sld [smem:[%s7757_s0 + %s6472_s28]]   ;;  %s6476_s28 = smov 37  }
  0x34   :  { %s6709_s21 = sld [smem:[%s7757_s0 + %s6478_s15]]  }
  0x35   :  { %7794 = sst [smem:[#allocation56_spill]] %s6644_s12 }
  0x36   :  { %7795 = sst [smem:[#allocation57_spill]] %s6654_s24 }
  0x37   :  { %s6664_s12 = sld [smem:[%s7757_s0 + %s6469_s7]]   ;;  %s6473_s7 = smov 34  }
  0x38   :  { %s6674_s24 = sld [smem:[%s7757_s0 + %s6471_s22]]   ;;  %s6475_s22 = smov 36  }
  0x39   :  { %7798 = sst [smem:[#allocation60_spill]] %s6679_s17 }
  0x3a   :  { %s6694_s5 = sld [smem:[%s7757_s0 + %s6475_s22]]  }
  0x3b   :  { %s6699_s17 = sld [smem:[%s7757_s0 + %s6476_s28]]  }
  0x3d   :  { %7796 = sst [smem:[#allocation58_spill]] %s6664_s12 }
  0x3e   :  { %s6684_s12 = sld [smem:[%s7757_s0 + %s6473_s7]]   ;;  %s6477_s7 = smov 38  }
  0x44   :  { %7799 = sst [smem:[#allocation61_spill]] %s6684_s12 }
  0x45   :  { %s6704_s12 = sld [smem:[%s7757_s0 + %s6477_s7]]  }
  0x46   :  { %84 = vsyncpa [#allocation3], 0 }
  0x47   :  { %85 = vsyncpa [#allocation6], 0 }
  0x48   :  { %86 = vsyncpa [#allocation9], 0 }
  0x49   :  { %87 = vsyncpa [#allocation12], 0 }
  0x4a   :  { %88 = vsyncpa [#allocation15], 0 }
  0x4b   :  { %89 = vsyncpa [#allocation18], 0 }
  0x4c   :  { %90 = vsyncpa [#allocation21], 0 }
  0x4d   :  { %91 = vsyncpa [#allocation24], 0 }
  0x4e   :  { %92 = vsyncpa [#allocation27], 0 }
  0x4f   :  { %93 = vsyncpa [#allocation4], 0  ;;  %s6479_s22 = smov [#allocation5]   ;;  %s6024_s26 = scalar_lea.hbm %s6539_s25, 640 }
  0x50   :  { %s117_s23 = sshll.u32 %s6479_s22, 4  ;;  %p6025_p0 = scmp.ne.s32.totalorder %s6539_s25, %s6024_s26  ;;  %s118_s23 = int_to_ptr.vmem [resolvable:$true] %s117_s23 }
  0x51   :  { %p6028_p1 = scmp.lt.u32.totalorder %s6024_s26, %s6539_s25 }
  0x53   :  { %p6030_p2 = pnand %p6028_p1, %p6025_p0 }
  0x55   :  { %6033 = shalt.err (!%p6030_p2)
}
  0x56   :  { %s6034_s0 = scalar_lea.vmem %s118_s23, 640  ;;  %p6039_p4 = scmp.lt.s32.totalorder %s118_s23, %s118_s23 }
  0x57   :  { %p6035_p3 = scmp.ne.s32.totalorder %s118_s23, %s6034_s0  ;;  %p6040_p5 = scmp.lt.s32.totalorder %s6034_s0, %s6034_s0 }
  0x59   :  { %p6041_p6 = por %p6040_p5, %p6039_p4 }
  0x5b   :  { %p6042_p7 = pnand %p6041_p6, %p6035_p3 }
  0x5d   :  { %6045 = shalt.err (!%p6042_p7)
}
  0x5e   :  { %s6480_s28 = smov 128   ;;  %s6481_s1 = smov 8  }
  0x5f   :  { %123 = dma.hbm_to_vmem [thread:$0]  %s6539_s25, 640, %s118_s23, [#allocation6], %s6480_s28, %s6480_s28, %s6481_s1  }
  0x60   :  { %s6482_s2 = smov [#allocation8]   ;;  %s6483_s10 = smov [#allocation11]  }
  0x61   :  { %s144_s7 = sshll.u32 %s6482_s2, 4  ;;  %s172_s11 = sshll.u32 %s6483_s10, 4  ;;  %s145_s7 = int_to_ptr.vmem [resolvable:$true] %s144_s7  ;;  %s173_s11 = int_to_ptr.vmem [resolvable:$true] %s172_s11 }
  0x62   :  { %s6046_s15 = scalar_lea.hbm %s6559_s14, 16 }
  0x63   :  { %p6047_p8 = scmp.ne.s32.totalorder %s6559_s14, %s6046_s15  ;;  %p6050_p9 = scmp.lt.u32.totalorder %s6046_s15, %s6559_s14 }
  0x65   :  { %p6052_p10 = pnand %p6050_p9, %p6047_p8 }
  0x67   :  { %6055 = shalt.err (!%p6052_p10)
}
  0x68   :  { %s6056_s16 = scalar_lea.vmem %s145_s7, 16  ;;  %s6060_s18 = scalar_lea.vmem %s145_s7, 32 }
  0x69   :  { %p6057_p11 = scmp.ne.s32.totalorder %s145_s7, %s6056_s16  ;;  %p6061_p12 = scmp.lt.s32.totalorder %s145_s7, %s145_s7 }
  0x6a   :  { %p6062_p13 = scmp.lt.s32.totalorder %s6060_s18, %s6056_s16 }
  0x6c   :  { %p6063_p0 = por %p6062_p13, %p6061_p12 }
  0x6e   :  { %p6064_p1 = pnand %p6063_p0, %p6057_p11 }
  0x70   :  { %6067 = shalt.err (!%p6064_p1)
}
  0x71   :  { %147 = dma.hbm_to_vmem [thread:$0]  %s6559_s14, 16, %s145_s7, [#allocation9]  }
  0x72   :  { %s6068_s25 = scalar_lea.hbm %s6589_s20, 16 }
  0x73   :  { %p6069_p2 = scmp.ne.s32.totalorder %s6589_s20, %s6068_s25  ;;  %p6072_p3 = scmp.lt.u32.totalorder %s6068_s25, %s6589_s20 }
  0x75   :  { %p6074_p4 = pnand %p6072_p3, %p6069_p2 }
  0x77   :  { %6077 = shalt.err (!%p6074_p4)
}
  0x78   :  { %s6078_s22 = scalar_lea.vmem %s173_s11, 16  ;;  %s6082_s23 = scalar_lea.vmem %s173_s11, 32 }
  0x79   :  { %p6079_p5 = scmp.ne.s32.totalorder %s173_s11, %s6078_s22  ;;  %p6083_p6 = scmp.lt.s32.totalorder %s173_s11, %s173_s11 }
  0x7a   :  { %p6084_p7 = scmp.lt.s32.totalorder %s6082_s23, %s6078_s22 }
  0x7c   :  { %p6085_p8 = por %p6084_p7, %p6083_p6 }
  0x7e   :  { %p6086_p9 = pnand %p6085_p8, %p6079_p5 }
  0x80   :  { %6089 = shalt.err (!%p6086_p9)
}
  0x81   :  { %175 = dma.hbm_to_vmem [thread:$0]  %s6589_s20, 16, %s173_s11, [#allocation12]  }
  0x82   :  { %s6484_s14 = smov [#allocation14]   ;;  %s6485_s0 = smov [#allocation17]  }
  0x83   :  { %s198_s26 = sshll.u32 %s6484_s14, 4  ;;  %s222_s28 = sshll.u32 %s6485_s0, 4  ;;  %s199_s26 = int_to_ptr.vmem [resolvable:$true] %s198_s26  ;;  %s223_s28 = int_to_ptr.vmem [resolvable:$true] %s222_s28 }
  0x84   :  { %s6090_s1 = scalar_lea.hbm %s6609_s30, 16 }
  0x85   :  { %p6091_p10 = scmp.ne.s32.totalorder %s6609_s30, %s6090_s1  ;;  %p6094_p11 = scmp.lt.u32.totalorder %s6090_s1, %s6609_s30 }
  0x87   :  { %p6096_p12 = pnand %p6094_p11, %p6091_p10 }
  0x89   :  { %6099 = shalt.err (!%p6096_p12)
}
  0x8a   :  { %s6100_s2 = scalar_lea.vmem %s199_s26, 16  ;;  %s6104_s7 = scalar_lea.vmem %s199_s26, 32 }
  0x8b   :  { %p6101_p13 = scmp.ne.s32.totalorder %s199_s26, %s6100_s2  ;;  %p6105_p0 = scmp.lt.s32.totalorder %s199_s26, %s199_s26 }
  0x8c   :  { %p6106_p1 = scmp.lt.s32.totalorder %s6104_s7, %s6100_s2 }
  0x8e   :  { %p6107_p2 = por %p6106_p1, %p6105_p0 }
  0x90   :  { %p6108_p3 = pnand %p6107_p2, %p6101_p13 }
  0x92   :  { %6111 = shalt.err (!%p6108_p3)
}
  0x93   :  { %201 = dma.hbm_to_vmem [thread:$0]  %s6609_s30, 16, %s199_s26, [#allocation15]  }
  0x94   :  { %s6112_s20 = scalar_lea.hbm %s6629_s8, 16 }
  0x95   :  { %p6113_p4 = scmp.ne.s32.totalorder %s6629_s8, %s6112_s20  ;;  %p6116_p5 = scmp.lt.u32.totalorder %s6112_s20, %s6629_s8 }
  0x97   :  { %p6118_p6 = pnand %p6116_p5, %p6113_p4 }
  0x99   :  { %6121 = shalt.err (!%p6118_p6)
}
  0x9a   :  { %s6122_s10 = scalar_lea.vmem %s223_s28, 16  ;;  %s6126_s11 = scalar_lea.vmem %s223_s28, 32 }
  0x9b   :  { %p6123_p7 = scmp.ne.s32.totalorder %s223_s28, %s6122_s10  ;;  %p6127_p8 = scmp.lt.s32.totalorder %s223_s28, %s223_s28 }
  0x9c   :  { %p6128_p9 = scmp.lt.s32.totalorder %s6126_s11, %s6122_s10 }
  0x9e   :  { %p6129_p10 = por %p6128_p9, %p6127_p8 }
  0xa0   :  { %p6130_p11 = pnand %p6129_p10, %p6123_p7 }
  0xa2   :  { %6133 = shalt.err (!%p6130_p11)
}
  0xa3   :  { %225 = dma.hbm_to_vmem [thread:$0]  %s6629_s8, 16, %s223_s28, [#allocation18]  }
  0xa4   :  { %s6486_s30 = smov [#allocation20]   ;;  %s6487_s16 = smov [#allocation23]  }
  0xa5   :  { %s250_s15 = sshll.u32 %s6486_s30, 4  ;;  %s272_s18 = sshll.u32 %s6487_s16, 4  ;;  %s251_s15 = int_to_ptr.vmem [resolvable:$true] %s250_s15  ;;  %s273_s18 = int_to_ptr.vmem [resolvable:$true] %s272_s18 }
  0xa6   :  { %s6134_s25 = scalar_lea.hbm %s6659_s19, 16 }
  0xa7   :  { %p6135_p12 = scmp.ne.s32.totalorder %s6659_s19, %s6134_s25  ;;  %p6138_p13 = scmp.lt.u32.totalorder %s6134_s25, %s6659_s19 }
  0xa9   :  { %p6140_p0 = pnand %p6138_p13, %p6135_p12 }
  0xab   :  { %6143 = shalt.err (!%p6140_p0)
}
  0xac   :  { %s6144_s22 = scalar_lea.vmem %s251_s15, 16  ;;  %s6148_s23 = scalar_lea.vmem %s251_s15, 32 }
  0xad   :  { %p6145_p1 = scmp.ne.s32.totalorder %s251_s15, %s6144_s22  ;;  %p6149_p2 = scmp.lt.s32.totalorder %s251_s15, %s251_s15 }
  0xae   :  { %p6150_p3 = scmp.lt.s32.totalorder %s6148_s23, %s6144_s22 }
  0xb0   :  { %p6151_p4 = por %p6150_p3, %p6149_p2 }
  0xb2   :  { %p6152_p5 = pnand %p6151_p4, %p6145_p1 }
  0xb4   :  { %6155 = shalt.err (!%p6152_p5)
}
  0xb5   :  { %253 = dma.hbm_to_vmem [thread:$0]  %s6659_s19, 16, %s251_s15, [#allocation21]  }
  0xb6   :  { %s6156_s8 = scalar_lea.hbm %s6674_s24, 64 }
  0xb7   :  { %p6157_p6 = scmp.ne.s32.totalorder %s6674_s24, %s6156_s8  ;;  %p6160_p7 = scmp.lt.u32.totalorder %s6156_s8, %s6674_s24 }
  0xb9   :  { %p6162_p8 = pnand %p6160_p7, %p6157_p6 }
  0xbb   :  { %6165 = shalt.err (!%p6162_p8)
}
  0xbc   :  { %s6166_s14 = scalar_lea.vmem %s273_s18, 64  ;;  %p6171_p10 = scmp.lt.s32.totalorder %s273_s18, %s273_s18 }
  0xbd   :  { %p6167_p9 = scmp.ne.s32.totalorder %s273_s18, %s6166_s14  ;;  %p6172_p11 = scmp.lt.s32.totalorder %s6166_s14, %s6166_s14 }
  0xbf   :  { %p6173_p12 = por %p6172_p11, %p6171_p10 }
  0xc1   :  { %p6174_p13 = pnand %p6173_p12, %p6167_p9 }
  0xc3   :  { %6177 = shalt.err (!%p6174_p13)
}
  0xc4   :  { %275 = dma.hbm_to_vmem [thread:$0]  %s6674_s24, 64, %s273_s18, [#allocation24]  }
  0xc5   :  { %s6488_s26 = smov [#allocation26]   ;;  %s6489_s0 = smov [#allocation2]  }
  0xc6   :  { %s294_s19 = sshll.u32 %s6488_s26, 4  ;;  %s104_s28 = sshll.u32 %s6489_s0, 4  ;;  %s295_s19 = int_to_ptr.vmem [resolvable:$true] %s294_s19  ;;  %s105_s28 = int_to_ptr.vmem [resolvable:$true] %s104_s28 }
  0xc7   :  { %s6178_s1 = scalar_lea.hbm %s6689_s9, 16 }
  0xc8   :  { %p6179_p0 = scmp.ne.s32.totalorder %s6689_s9, %s6178_s1  ;;  %p6182_p1 = scmp.lt.u32.totalorder %s6178_s1, %s6689_s9 }
  0xca   :  { %p6184_p2 = pnand %p6182_p1, %p6179_p0 }
  0xcc   :  { %6187 = shalt.err (!%p6184_p2)
}
  0xcd   :  { %s6188_s2 = scalar_lea.vmem %s295_s19, 16  ;;  %s6192_s7 = scalar_lea.vmem %s295_s19, 32 }
  0xce   :  { %p6189_p3 = scmp.ne.s32.totalorder %s295_s19, %s6188_s2  ;;  %p6193_p4 = scmp.lt.s32.totalorder %s295_s19, %s295_s19 }
  0xcf   :  { %p6194_p5 = scmp.lt.s32.totalorder %s6192_s7, %s6188_s2 }
  0xd1   :  { %p6195_p6 = por %p6194_p5, %p6193_p4 }
  0xd3   :  { %p6196_p7 = pnand %p6195_p6, %p6189_p3 }
  0xd5   :  { %6199 = shalt.err (!%p6196_p7)
}
  0xd6   :  { %297 = dma.hbm_to_vmem [thread:$0]  %s6689_s9, 16, %s295_s19, [#allocation27]  }
  0xd7   :  { %s6200_s24 = scalar_lea.hbm %s6524_s13, 16 }
  0xd8   :  { %p6201_p8 = scmp.ne.s32.totalorder %s6524_s13, %s6200_s24  ;;  %p6204_p9 = scmp.lt.u32.totalorder %s6200_s24, %s6524_s13 }
  0xda   :  { %p6206_p10 = pnand %p6204_p9, %p6201_p8 }
  0xdc   :  { %6209 = shalt.err (!%p6206_p10)
}
  0xdd   :  { %s6210_s20 = scalar_lea.vmem %s105_s28, 16  ;;  %s6214_s10 = scalar_lea.vmem %s105_s28, 32 }
  0xde   :  { %p6211_p11 = scmp.ne.s32.totalorder %s105_s28, %s6210_s20  ;;  %p6215_p12 = scmp.lt.s32.totalorder %s105_s28, %s105_s28 }
  0xdf   :  { %p6216_p13 = scmp.lt.s32.totalorder %s6214_s10, %s6210_s20 }
  0xe1   :  { %p6217_p0 = por %p6216_p13, %p6215_p12 }
  0xe3   :  { %p6218_p1 = pnand %p6217_p0, %p6211_p11 }
  0xe5   :  { %6221 = shalt.err (!%p6218_p1)
}
  0xe6   :  { %107 = dma.hbm_to_vmem [thread:$0]  %s6524_s13, 16, %s105_s28, [#allocation3]  }
  0xe7   :  { %s6490_s9 = smov [#allocation7]   ;;  %s6491_s30 = smov [#allocation10]  }
  0xe8   :  { %s132_s11 = sshll.u32 %s6490_s9, 4  ;;  %s160_s15 = sshll.u32 %s6491_s30, 4  ;;  %s133_s11 = int_to_ptr.vmem [resolvable:$true] %s132_s11  ;;  %s161_s15 = int_to_ptr.vmem [resolvable:$true] %s160_s15 }
  0xe9   :  { %s6222_s16 = scalar_lea.hbm %s6549_s3, 16 }
  0xea   :  { %p6223_p2 = scmp.ne.s32.totalorder %s6549_s3, %s6222_s16  ;;  %p6226_p3 = scmp.lt.u32.totalorder %s6222_s16, %s6549_s3 }
  0xec   :  { %p6228_p4 = pnand %p6226_p3, %p6223_p2 }
  0xee   :  { %6231 = shalt.err (!%p6228_p4)
}
  0xef   :  { %s6232_s18 = scalar_lea.vmem %s133_s11, 16  ;;  %s6236_s25 = scalar_lea.vmem %s133_s11, 32 }
  0xf0   :  { %p6233_p5 = scmp.ne.s32.totalorder %s133_s11, %s6232_s18  ;;  %p6237_p6 = scmp.lt.s32.totalorder %s133_s11, %s133_s11 }
  0xf1   :  { %p6238_p7 = scmp.lt.s32.totalorder %s6236_s25, %s6232_s18 }
  0xf3   :  { %p6239_p8 = por %p6238_p7, %p6237_p6 }
  0xf5   :  { %p6240_p9 = pnand %p6239_p8, %p6233_p5 }
  0xf7   :  { %6243 = shalt.err (!%p6240_p9)
}
  0xf8   :  { %135 = dma.hbm_to_vmem [thread:$0]  %s6549_s3, 16, %s133_s11, [#allocation6]  }
  0xf9   :  { %s6244_s13 = scalar_lea.hbm %s6579_s6, 16 }
  0xfa   :  { %p6245_p10 = scmp.ne.s32.totalorder %s6579_s6, %s6244_s13  ;;  %p6248_p11 = scmp.lt.u32.totalorder %s6244_s13, %s6579_s6 }
  0xfc   :  { %p6250_p12 = pnand %p6248_p11, %p6245_p10 }
  0xfe   :  { %6253 = shalt.err (!%p6250_p12)
}
  0xff   :  { %s6254_s22 = scalar_lea.vmem %s161_s15, 16  ;;  %s6258_s23 = scalar_lea.vmem %s161_s15, 32 }
 0x100   :  { %p6255_p13 = scmp.ne.s32.totalorder %s161_s15, %s6254_s22  ;;  %p6259_p0 = scmp.lt.s32.totalorder %s161_s15, %s161_s15 }
 0x101   :  { %p6260_p1 = scmp.lt.s32.totalorder %s6258_s23, %s6254_s22 }
 0x103   :  { %p6261_p2 = por %p6260_p1, %p6259_p0 }
 0x105   :  { %p6262_p3 = pnand %p6261_p2, %p6255_p13 }
 0x107   :  { %6265 = shalt.err (!%p6262_p3)
}
 0x108   :  { %163 = dma.hbm_to_vmem [thread:$0]  %s6579_s6, 16, %s161_s15, [#allocation9]  }
 0x109   :  { %s6492_s3 = smov [#allocation13]   ;;  %s6266_s14 = scalar_lea.hbm %s6594_s27, 192 }
 0x10a   :  { %s181_s8 = sshll.u32 %s6492_s3, 4  ;;  %p6267_p4 = scmp.ne.s32.totalorder %s6594_s27, %s6266_s14  ;;  %s182_s8 = int_to_ptr.vmem [resolvable:$true] %s181_s8 }
 0x10b   :  { %p6270_p5 = scmp.lt.u32.totalorder %s6266_s14, %s6594_s27 }
 0x10d   :  { %p6272_p6 = pnand %p6270_p5, %p6267_p4 }
 0x10f   :  { %6275 = shalt.err (!%p6272_p6)
}
 0x110   :  { %s6276_s26 = scalar_lea.vmem %s182_s8, 192  ;;  %p6281_p8 = scmp.lt.s32.totalorder %s182_s8, %s182_s8 }
 0x111   :  { %p6277_p7 = scmp.ne.s32.totalorder %s182_s8, %s6276_s26  ;;  %p6282_p9 = scmp.lt.s32.totalorder %s6276_s26, %s6276_s26 }
 0x113   :  { %p6283_p10 = por %p6282_p9, %p6281_p8 }
 0x115   :  { %p6284_p11 = pnand %p6283_p10, %p6277_p7 }
 0x117   :  { %6287 = shalt.err (!%p6284_p11)
}
 0x118   :  { %s6493_s19 = smov 64   ;;  %s6494_s6 = smov 4  }
 0x119   :  { %187 = dma.hbm_to_vmem [thread:$0]  %s6594_s27, 192, %s182_s8, [#allocation12], %s6493_s19, %s6493_s19, %s6494_s6  }
 0x11a   :  { %s6495_s0 = smov [#allocation16]   ;;  %s6496_s1 = smov [#allocation19]  }
 0x11b   :  { %s210_s28 = sshll.u32 %s6495_s0, 4  ;;  %s238_s2 = sshll.u32 %s6496_s1, 4  ;;  %s211_s28 = int_to_ptr.vmem [resolvable:$true] %s210_s28  ;;  %s239_s2 = int_to_ptr.vmem [resolvable:$true] %s238_s2 }
 0x11c   :  { %s6288_s7 = scalar_lea.hbm %s6619_s4, 16 }
 0x11d   :  { %p6289_p12 = scmp.ne.s32.totalorder %s6619_s4, %s6288_s7  ;;  %p6292_p13 = scmp.lt.u32.totalorder %s6288_s7, %s6619_s4 }
 0x11f   :  { %p6294_p0 = pnand %p6292_p13, %p6289_p12 }
 0x121   :  { %6297 = shalt.err (!%p6294_p0)
}
 0x122   :  { %s6298_s24 = scalar_lea.vmem %s211_s28, 16  ;;  %s6302_s20 = scalar_lea.vmem %s211_s28, 32 }
 0x123   :  { %p6299_p1 = scmp.ne.s32.totalorder %s211_s28, %s6298_s24  ;;  %p6303_p2 = scmp.lt.s32.totalorder %s211_s28, %s211_s28 }
 0x124   :  { %p6304_p3 = scmp.lt.s32.totalorder %s6302_s20, %s6298_s24 }
 0x126   :  { %p6305_p4 = por %p6304_p3, %p6303_p2 }
 0x128   :  { %p6306_p5 = pnand %p6305_p4, %p6299_p1 }
 0x12a   :  { %6309 = shalt.err (!%p6306_p5)
}
 0x12b   :  { %213 = dma.hbm_to_vmem [thread:$0]  %s6619_s4, 16, %s211_s28, [#allocation15]  }
 0x12c   :  { %s6310_s27 = scalar_lea.hbm %s6649_s29, 16 }
 0x12d   :  { %p6311_p6 = scmp.ne.s32.totalorder %s6649_s29, %s6310_s27  ;;  %p6314_p7 = scmp.lt.u32.totalorder %s6310_s27, %s6649_s29 }
 0x12f   :  { %p6316_p8 = pnand %p6314_p7, %p6311_p6 }
 0x131   :  { %6319 = shalt.err (!%p6316_p8)
}
 0x132   :  { %s6320_s10 = scalar_lea.vmem %s239_s2, 16  ;;  %s6324_s9 = scalar_lea.vmem %s239_s2, 32 }
 0x133   :  { %p6321_p9 = scmp.ne.s32.totalorder %s239_s2, %s6320_s10  ;;  %p6325_p10 = scmp.lt.s32.totalorder %s239_s2, %s239_s2 }
 0x134   :  { %p6326_p11 = scmp.lt.s32.totalorder %s6324_s9, %s6320_s10 }
 0x136   :  { %p6327_p12 = por %p6326_p11, %p6325_p10 }
 0x138   :  { %p6328_p13 = pnand %p6327_p12, %p6321_p9 }
 0x13a   :  { %6331 = shalt.err (!%p6328_p13)
}
 0x13b   :  { %s7800_s11 = sld [smem:[#allocation59_spill]]  ;;  %s6497_s30 = smov [#allocation22]  }
 0x13c   :  { %241 = dma.hbm_to_vmem [thread:$0]  %s6649_s29, 16, %s239_s2, [#allocation18]  }
 0x13d   :  { %s262_s4 = sshll.u32 %s6497_s30, 4  ;;  %s6498_s15 = smov [#allocation25]   ;;  %s263_s4 = int_to_ptr.vmem [resolvable:$true] %s262_s4 }
 0x13e   :  { %s282_s16 = sshll.u32 %s6498_s15, 4  ;;  %s283_s16 = int_to_ptr.vmem [resolvable:$true] %s282_s16 }
 0x141   :  { %s6332_s18 = scalar_lea.hbm %s7800_s11, 16 }
 0x142   :  { %p6333_p0 = scmp.ne.s32.totalorder %s7800_s11, %s6332_s18  ;;  %p6336_p1 = scmp.lt.u32.totalorder %s6332_s18, %s7800_s11 }
 0x144   :  { %p6338_p2 = pnand %p6336_p1, %p6333_p0 }
 0x146   :  { %6341 = shalt.err (!%p6338_p2)
}
 0x147   :  { %s6342_s25 = scalar_lea.vmem %s263_s4, 16  ;;  %s6346_s13 = scalar_lea.vmem %s263_s4, 32 }
 0x148   :  { %p6343_p3 = scmp.ne.s32.totalorder %s263_s4, %s6342_s25  ;;  %p6347_p4 = scmp.lt.s32.totalorder %s263_s4, %s263_s4 }
 0x149   :  { %p6348_p5 = scmp.lt.s32.totalorder %s6346_s13, %s6342_s25 }
 0x14b   :  { %p6349_p6 = por %p6348_p5, %p6347_p4 }
 0x14d   :  { %p6350_p7 = pnand %p6349_p6, %p6343_p3 }
 0x14f   :  { %6353 = shalt.err (!%p6350_p7)
}
 0x150   :  { %s7801_s29 = sld [smem:[#allocation60_spill]] }
 0x151   :  { %265 = dma.hbm_to_vmem [thread:$0]  %s7800_s11, 16, %s263_s4, [#allocation21]  }
 0x156   :  { %s6354_s22 = scalar_lea.hbm %s7801_s29, 64 }
 0x157   :  { %p6355_p8 = scmp.ne.s32.totalorder %s7801_s29, %s6354_s22  ;;  %p6358_p9 = scmp.lt.u32.totalorder %s6354_s22, %s7801_s29 }
 0x159   :  { %p6360_p10 = pnand %p6358_p9, %p6355_p8 }
 0x15b   :  { %6363 = shalt.err (!%p6360_p10)
}
 0x15c   :  { %s6364_s23 = scalar_lea.vmem %s283_s16, 64  ;;  %p6369_p12 = scmp.lt.s32.totalorder %s283_s16, %s283_s16 }
 0x15d   :  { %p6365_p11 = scmp.ne.s32.totalorder %s283_s16, %s6364_s23  ;;  %p6370_p13 = scmp.lt.s32.totalorder %s6364_s23, %s6364_s23 }
 0x15f   :  { %p6371_p0 = por %p6370_p13, %p6369_p12 }
 0x161   :  { %p6372_p1 = pnand %p6371_p0, %p6365_p11 }
 0x163   :  { %6375 = shalt.err (!%p6372_p1)
}
 0x164   :  { %285 = dma.hbm_to_vmem [thread:$0]  %s7801_s29, 64, %s283_s16, [#allocation24]  }
 0x165   :  { %s6499_s3 = smov [#allocation28]   ;;  %s6376_s14 = scalar_lea.hbm %s6694_s5, 16 }
 0x166   :  { %s304_s8 = sshll.u32 %s6499_s3, 4  ;;  %p6377_p2 = scmp.ne.s32.totalorder %s6694_s5, %s6376_s14  ;;  %s305_s8 = int_to_ptr.vmem [resolvable:$true] %s304_s8 }
 0x167   :  { %p6380_p3 = scmp.lt.u32.totalorder %s6376_s14, %s6694_s5 }
 0x169   :  { %p6382_p4 = pnand %p6380_p3, %p6377_p2 }
 0x16b   :  { %6385 = shalt.err (!%p6382_p4)
}
 0x16c   :  { %s6386_s26 = scalar_lea.vmem %s305_s8, 16  ;;  %s6390_s6 = scalar_lea.vmem %s305_s8, 32 }
 0x16d   :  { %p6387_p5 = scmp.ne.s32.totalorder %s305_s8, %s6386_s26  ;;  %p6391_p6 = scmp.lt.s32.totalorder %s305_s8, %s305_s8 }
 0x16e   :  { %p6392_p7 = scmp.lt.s32.totalorder %s6390_s6, %s6386_s26 }
 0x170   :  { %p6393_p8 = por %p6392_p7, %p6391_p6 }
 0x172   :  { %p6394_p9 = pnand %p6393_p8, %p6387_p5 }
 0x174   :  { %6397 = shalt.err (!%p6394_p9)
}
 0x175   :  { %307 = dma.hbm_to_vmem [thread:$0]  %s6694_s5, 16, %s305_s8, [#allocation27]  }
 0x176   :  { %6420 = dma.done.wait [#allocation3], 16  }
 0x177   :  { %6421 = vsyncadd [#allocation3], 4294967280 }
 0x178   :  { %6422 = dma.done.wait [#allocation6], 656  }
 0x179   :  { %6423 = vsyncadd [#allocation6], 4294966640 }
 0x17a   :  { %6424 = dma.done.wait [#allocation9], 32  }
 0x17b   :  { %6425 = vsyncadd [#allocation9], 4294967264 }
 0x17c   :  { %6426 = dma.done.wait [#allocation12], 208  }
 0x17d   :  { %6427 = vsyncadd [#allocation12], 4294967088 }
 0x17e   :  { %6428 = dma.done.wait [#allocation15], 32  }
 0x17f   :  { %6429 = vsyncadd [#allocation15], 4294967264 }
 0x180   :  { %6430 = dma.done.wait [#allocation18], 32  }
 0x181   :  { %6431 = vsyncadd [#allocation18], 4294967264 }
 0x182   :  { %6432 = dma.done.wait [#allocation21], 32  }
 0x183   :  { %6433 = vsyncadd [#allocation21], 4294967264 }
 0x184   :  { %6434 = dma.done.wait [#allocation24], 128  }
 0x185   :  { %6435 = vsyncadd [#allocation24], 4294967168 }
 0x186   :  { %6436 = dma.done.wait [#allocation27], 32  }
 0x187   :  { %6437 = vsyncadd [#allocation27], 4294967264  ;;  %s7802_s0 = sld [smem:[#allocation40_spill]]  ;;  %v6500_v0 = vmov 0   ;;  %vm729_vm0 = vcmask 1044480   ;;  %vm559_vm3 = vcmask 1046528  }
 0x188   :  { %984 = vmatprep.subr.bf16.mxu0 %v6500_v0  ;;  %1152 = vmatprep.subr.bf16.mxu1 %v6500_v0  ;;  %vm469_vm1 = vsmask.f32 7424  ;;  %vm675_vm2 = vsmask.f32 5376  ;;  %vm598_vm4 = vsmask.f32 6400 }
 0x189   :  { %s7803_s5 = sld [smem:[#allocation41_spill]]  ;;  %s6501_s28 = smov 32   ;;  %vm657_vm5 = vcmask 1045504   ;;  %vm765_vm6 = vcmask 261120   ;;  %vm803_vm7 = vcmask 785408   ;;  %vm784_vm8 = vcmask 523264  }
 0x18a   :  { %s6502_s1 = smov 96   ;;  %s7804_s2 = sld [smem:[#allocation42_spill]]  ;;  %vm1138_vm9 = vcmask 48128   ;;  %vm1148_vm10 = vcmask 1042432   ;;  %vm6504_vm11 = vmmov 0   ;;  %vm1679_vm12 = vcmask 1040384  }
 0x18b   :  { %s7805_s7 = sld [smem:[#allocation43_spill]]  ;;  %s7806_s24 = sld [smem:[#allocation44_spill]]  ;;  %vm1669_vm13 = vcmask 277504   ;;  %vm2842_vm14 = vcmask 146432   ;;  %vm3749_vm15 = vcmask 80896  }
 0x18c   :  { %s7807_s20 = sld [smem:[#allocation46_spill]]  ;;  %s7808_s27 = sld [smem:[#allocation45_spill]] }
 0x18d   :  { %v6784_v1 = vld [vmem:[%s7802_s0 + $0x8] sm:$0xff]   ;;  %v6787_v2 = vld [vmem:[%s7802_s0 + $0x10] sm:$0xff]   ;;  %v6790_v3 = vld [vmem:[%s7802_s0] sm:$0xff]   ;;  %s7809_s10 = sld [smem:[#allocation47_spill]]  ;;  %s7810_s9 = sld [smem:[#allocation48_spill]] }
 0x18e   :  { %v731_v4 = vrot.slane %v6784_v1, 3  ;;  %v733_v5 = vrot.slane %v6787_v2, 3  ;;  %v561_v6 = vrot.slane %v6784_v1, 1  ;;  %v478_v7 = vshll.u32 %v6784_v1, 16  ;;  %v6810_v23 = vld [vmem:[%s7802_s0 + $0x18] sm:$0xff]   ;;  %v6833_v55 = vld [vmem:[%s7802_s0 + $0x20] sm:$0xff]  }
 0x18f   :  { %v560_v8 = vrot.slane %v6790_v3, 1  ;;  %v730_v9 = vrot.slane %v6790_v3, 3  ;;  %v471_v10 = vshrl.u32 %v6790_v3, 16  ;;  %v473_v11 = vshll.u32 %v6790_v3, 16  ;;  %v5778_v46 = vld [vmem:[%s7803_s5] sm:$0xff]   ;;  %v5779_v49 = vld [vmem:[%s7803_s5 + $0x8] sm:$0xff]  }
 0x190   :  { %v734_v12 = vsel %vm729_vm0, %v731_v4, %v733_v5  ;;  %v563_v13 = vrot.slane %v6787_v2, 1  ;;  %v482_v14 = vshrl.u32 %v6784_v1, 16  ;;  %v480_v17 = vrot.slane %v478_v7, 1  ;;  %985 = vmatpush1.bf16.msra.mxu0 %v5778_v46  ;;  %v5780_v60 = vld [vmem:[%s7803_s5 + $0x10] sm:$0xff]   ;;  %s7811_s11 = sld [smem:[#allocation49_spill]]  ;;  %s7813_s30 = sld [smem:[#allocation50_spill]] }
 0x191   :  { %749 = vrot.lane.b32.xlu0 %v734_v12, %s6493_s19  ;;  %v562_v15 = vsel %vm559_vm3, %v560_v8, %v561_v6  ;;  %v475_v16 = vrot.slane %v473_v11, 1  ;;  %v676_v18 = vrot.slane %v471_v10, 2  ;;  %v732_v19 = vsel %vm729_vm0, %v730_v9, %v731_v4  ;;  %986 = vmatprep.subr.bf16.mxu0 %v6500_v0  ;;  %s7814_s4 = sld [smem:[#allocation52_spill]]  ;;  %s7815_s15 = sld [smem:[#allocation53_spill]] }
 0x192   :  { %577 = vrot.lane.b32.xlu1 %v562_v15, %s6493_s19  ;;  %v677_v20 = vrot.slane %v473_v11, 3  ;;  %v679_v21 = vrot.slane %v482_v14, 2  ;;  %v680_v22 = vrot.slane %v478_v7, 3  ;;  %v564_v25 = vsel %vm559_vm3, %v561_v6, %v563_v13  ;;  %v5781_v6 = vld [vmem:[%s7803_s5 + $0x18] sm:$0xff]   ;;  %s7816_s16 = sld [smem:[#allocation54_spill]]  ;;  %s7817_s18 = sld [smem:[#allocation56_spill]] }
 0x193   :  { %v476_v24 = vor.u32 %v475_v16, %v471_v10  ;;  %v486_v26 = vshll.u32 %v6787_v2, 16  ;;  %v599_v27 = vrot.slane %v471_v10, 1  ;;  %v600_v30 = vrot.slane %v473_v11, 2  ;;  %v6850_v11 = vld [vmem:[%s7802_s0 + $0x28] sm:$0xff]   ;;  %v6860_v16 = vld [vmem:[%s7802_s0 + $0x30] sm:$0xff]   ;;  %s7818_s25 = sld [smem:[#allocation57_spill]] }
 0x194   :  { %v678_v28 = vor.u32 %v677_v20, %v676_v18  ;;  %v681_v29 = vor.u32 %v680_v22, %v679_v21  ;;  %v602_v31 = vrot.slane %v482_v14, 1  ;;  %v484_v33 = vor.u32 %v482_v14, %v480_v17  ;;  %987 = vmatpush1.bf16.msra.mxu0 %v5779_v49  ;;  %v5782_v21 = vld [vmem:[%s7803_s5 + $0x20] sm:$0xff]   ;;  %s7819_s13 = sld [smem:[#allocation55_spill]]  ;;  %s7820_s29 = sld [smem:[#allocation58_spill]] }
 0x195   :  { %v481_v32 = vsel %vm469_vm1, %v476_v24, %v480_v17  ;;  %v603_v34 = vrot.slane %v478_v7, 2  ;;  %v490_v35 = vshrl.u32 %v6787_v2, 16  ;;  %v488_v36 = vrot.slane %v486_v26, 1  ;;  %988 = vmatprep.subr.bf16.mxu0 %v6500_v0  ;;  %s7821_s22 = sld [smem:[#allocation61_spill]] }
 0x196   :  { %747 = vrot.lane.b32.xlu1 %v732_v19, %s6493_s19  ;;  %541 = vrot.lane.b32.xlu0 %v481_v32, %s6501_s28  ;;  %v601_v37 = vor.u32 %v600_v30, %v599_v27  ;;  %v607_v38 = vrot.slane %v486_v26, 2  ;;  %v684_v39 = vrot.slane %v486_v26, 3  ;;  %v682_v40 = vsel %vm675_vm2, %v678_v28, %v681_v29  ;;  %v6872_v26 = vld [vmem:[%s7802_s0 + $0x38] sm:$0xff]   ;;  %v5783_v27 = vld [vmem:[%s7803_s5 + $0x28] sm:$0xff]  }
 0x197   :  { %v604_v41 = vor.u32 %v603_v34, %v602_v31  ;;  %v606_v42 = vrot.slane %v490_v35, 1  ;;  %v683_v43 = vrot.slane %v490_v35, 2  ;;  %v494_v44 = vshll.u32 %v6810_v23, 16  ;;  %v6886_v32 = vld [vmem:[%s7802_s0 + $0x40] sm:$0xf] }
 0x198   :  { %v498_v45 = vshrl.u32 %v6810_v23, 16  ;;  %v489_v47 = vsel %vm469_vm1, %v484_v33, %v488_v36  ;;  %v492_v54 = vor.u32 %v490_v35, %v488_v36  ;;  %v735_v61 = vrot.slane %v6810_v23, 3  ;;  %989 = vmatpush1.bf16.msra.mxu0 %v5780_v60 }
 0x199   :  { %v605_v48 = vsel %vm598_vm4, %v601_v37, %v604_v41  ;;  %v608_v50 = vor.u32 %v607_v38, %v606_v42  ;;  %v685_v51 = vor.u32 %v684_v39, %v683_v43  ;;  %v688_v53 = vrot.slane %v494_v44, 3  ;;  %990 = vmatprep.subr.bf16.mxu0 %v6500_v0  ;;  %v5784_v42 = vld [vmem:[%s7803_s5 + $0x30] sm:$0xff]  }
 0x19a   :  { %579 = vrot.lane.b32.xlu1 %v564_v25, %s6493_s19  ;;  %711 = vrot.lane.b32.xlu0 %v682_v40, %s6501_s28  ;;  %v687_v52 = vrot.slane %v498_v45, 2  ;;  %v496_v59 = vrot.slane %v494_v44, 1  ;;  %v565_v62 = vrot.slane %v6810_v23, 1  ;;  %v502_v63 = vshll.u32 %v6833_v55, 16 }
 0x19b   :  { %v609_v56 = vsel %vm598_vm4, %v604_v41, %v608_v50  ;;  %v686_v57 = vsel %vm675_vm2, %v681_v29, %v685_v51  ;;  %v506_v4 = vshrl.u32 %v6833_v55, 16  ;;  %v610_v9 = vrot.slane %v498_v45, 1 }
 0x19c   :  { %v689_v58 = vor.u32 %v688_v53, %v687_v52  ;;  %v497_v8 = vsel %vm469_vm1, %v492_v54, %v496_v59  ;;  %v611_v10 = vrot.slane %v494_v44, 2  ;;  %v736_v12 = vsel %vm729_vm0, %v733_v5, %v735_v61  ;;  %991 = vmatpush1.bf16.msra.mxu0 %v5781_v6  ;;  %v5785_v54 = vld [vmem:[%s7803_s5 + $0x38] sm:$0xff]  }
 0x19d   :  { %v691_v14 = vrot.slane %v506_v4, 2  ;;  %v692_v15 = vrot.slane %v502_v63, 3  ;;  %v566_v17 = vsel %vm559_vm3, %v563_v13, %v565_v62  ;;  %v500_v18 = vor.u32 %v498_v45, %v496_v59  ;;  %992 = vmatprep.subr.bf16.mxu0 %v6500_v0 }
 0x19e   :  { %543 = vrot.lane.b32.xlu1 %v489_v47, %s6501_s28  ;;  %639 = vrot.lane.b32.xlu0 %v605_v48, %s6502_s1  ;;  %v690_v7 = vsel %vm675_vm2, %v685_v51, %v689_v58  ;;  %v504_v19 = vrot.slane %v502_v63, 1  ;;  %v612_v20 = vor.u32 %v611_v10, %v610_v9  ;;  %v567_v22 = vrot.slane %v6833_v55, 1  ;;  %v5786_v9 = vld [vmem:[%s7803_s5 + $0x40] sm:$0xff]  }
 0x19f   :  { %v615_v24 = vrot.slane %v502_v63, 2  ;;  %v614_v5 = vrot.slane %v506_v4, 1  ;;  %v6869_v25 = vshrl.u32 %v6850_v11, 16  ;;  %v693_v13 = vor.u32 %v692_v15, %v691_v14 }
 0x1a0   :  { %v6878_v28 = vshll.u32 %v6850_v11, 16  ;;  %v505_v29 = vsel %vm469_vm1, %v500_v18, %v504_v19  ;;  %v613_v30 = vsel %vm598_vm4, %v608_v50, %v612_v20  ;;  %v6883_v31 = vshll.u32 %v6860_v16, 16  ;;  %993 = vmatpush1.bf16.msra.mxu0 %v5782_v21 }
 0x1a1   :  { %v737_v33 = vrot.slane %v6833_v55, 3  ;;  %v739_v34 = vrot.slane %v6850_v11, 3  ;;  %994 = vmatprep.subr.bf16.mxu0 %v6500_v0  ;;  %v568_v35 = vsel %vm559_vm3, %v565_v62, %v567_v22  ;;  %v6894_v36 = vor.u32 %v615_v24, %v614_v5  ;;  %v381_v24 = vld [vmem:[%s7802_s0 + $0x44] sm:$0x3]  ;;  %v5788_v5 = vld [vmem:[%s7803_s5 + $0x50] sm:$0xff]  }
 0x1a2   :  { %641 = vrot.lane.b32.xlu1 %v609_v56, %s6502_s1  ;;  %713 = vrot.lane.b32.xlu0 %v686_v57, %s6501_s28  ;;  %v695_v37 = vrot.slane %v6869_v25, 2  ;;  %v694_v38 = vsel %vm675_vm2, %v689_v58, %v693_v13  ;;  %v696_v39 = vrot.slane %v6878_v28, 3  ;;  %v512_v40 = vrot.slane %v6878_v28, 1 }
 0x1a3   :  { %v6903_v41 = vshrl.u32 %v6860_v16, 16  ;;  %v569_v43 = vrot.slane %v6850_v11, 1  ;;  %v520_v44 = vrot.slane %v6883_v31, 1  ;;  %v618_v45 = vrot.slane %v6869_v25, 1 }
 0x1a4   :  { %v6910_v46 = vshll.u32 %v6872_v26, 16  ;;  %995 = vmatpush1.bf16.msra.mxu0 %v5783_v27  ;;  %v619_v47 = vrot.slane %v6878_v28, 2  ;;  %v6914_v48 = vshrl.u32 %v6872_v26, 16  ;;  %v6918_v49 = vcombine.low %v6886_v32, %v6886_v32 }
 0x1a5   :  { %996 = vmatprep.subr.bf16.mxu0 %v6500_v0  ;;  %v738_v50 = vsel %vm729_vm0, %v735_v61, %v737_v33  ;;  %v508_v51 = vor.u32 %v506_v4, %v504_v19  ;;  %v571_v52 = vrot.slane %v6860_v16, 1  ;;  %v700_v53 = vrot.slane %v6883_v31, 3 }
 0x1a6   :  { %715 = vrot.lane.b32.xlu1 %v690_v7, %s6501_s28  ;;  %545 = vrot.lane.b32.xlu0 %v497_v8, %s6501_s28  ;;  %v699_v56 = vrot.slane %v6903_v41, 2  ;;  %v622_v57 = vrot.slane %v6903_v41, 1  ;;  %v623_v58 = vrot.slane %v6883_v31, 2  ;;  %v741_v59 = vrot.slane %v6860_v16, 3 }
 0x1a7   :  { %v617_v60 = vsel %vm598_vm4, %v612_v20, %v6894_v36  ;;  %v697_v61 = vor.u32 %v696_v39, %v695_v37  ;;  %v704_v62 = vrot.slane %v6910_v46, 3  ;;  %v528_v63 = vrot.slane %v6910_v46, 1  ;;  %v5790_v37 = vld [vmem:[%s7803_s5 + $0x60] sm:$0xff]  }
 0x1a8   :  { %997 = vmatpush1.bf16.msra.mxu0 %v5784_v42  ;;  %v703_v4 = vrot.slane %v6914_v48, 2  ;;  %v743_v6 = vrot.slane %v6872_v26, 3  ;;  %v573_v7 = vrot.slane %v6872_v26, 1  ;;  %v534_v8 = vshll.u32 %v6918_v49, 16 }
 0x1a9   :  { %998 = vmatprep.subr.bf16.mxu0 %v6500_v0  ;;  %v626_v10 = vrot.slane %v6914_v48, 1  ;;  %v698_v14 = vsel %vm675_vm2, %v693_v13, %v697_v61  ;;  %v513_v15 = vsel %vm469_vm1, %v508_v51, %v512_v40  ;;  %v516_v18 = vor.u32 %v6869_v25, %v512_v40 }
 0x1aa   :  { %751 = vrot.lane.b32.xlu1 %v736_v12, %s6493_s19  ;;  %581 = vrot.lane.b32.xlu0 %v566_v17, %s6493_s19  ;;  %v627_v12 = vrot.slane %v6910_v46, 2  ;;  %v5787_v17 = vld [vmem:[%s7803_s5 + $0x48] sm:$0xff]   ;;  %v740_v19 = vsel %vm729_vm0, %v737_v33, %v739_v34  ;;  %v570_v20 = vsel %vm559_vm3, %v567_v22, %v569_v43  ;;  %v620_v21 = vor.u32 %v619_v47, %v618_v45 }
 0x1ab   :  { %v521_v25 = vsel %vm469_vm1, %v516_v18, %v520_v44  ;;  %v701_v13 = vor.u32 %v700_v53, %v699_v56  ;;  %v6972_v22 = vrot.slane %v534_v8, 1  ;;  %v575_v28 = vrot.slane %v6918_v49, 1  ;;  %v5791_v45 = vld [vmem:[%s7803_s5 + $0x68] sm:$0xff]  }
 0x1ac   :  { %999 = vmatpush1.bf16.msra.mxu0 %v5785_v54  ;;  %v621_v27 = vsel %vm598_vm4, %v6894_v36, %v620_v21  ;;  %v572_v33 = vsel %vm559_vm3, %v569_v43, %v571_v52  ;;  %v624_v36 = vor.u32 %v623_v58, %v622_v57  ;;  %v742_v40 = vsel %vm729_vm0, %v739_v34, %v741_v59 }
 0x1ad   :  { %1000 = vmatprep.subr.bf16.mxu0 %v6500_v0  ;;  %v705_v42 = vor.u32 %v704_v62, %v703_v4  ;;  %v524_v43 = vor.u32 %v6903_v41, %v520_v44  ;;  %v671_v47 = vrot.slane %v6872_v26, 2  ;;  %v744_v53 = vsel %vm729_vm0, %v741_v59, %v743_v6 }
 0x1ae   :  { %547 = vrot.lane.b32.xlu1 %v505_v29, %s6501_s28  ;;  %643 = vrot.lane.b32.xlu0 %v613_v30, %s6502_s1  ;;  %v5789_v29 = vld [vmem:[%s7803_s5 + $0x58] sm:$0xff]   ;;  %v6980_v30 = vcombine.low %v6886_v32, %v381_v24  ;;  %v625_v39 = vsel %vm598_vm4, %v620_v21, %v624_v36  ;;  %v574_v54 = vsel %vm559_vm3, %v571_v52, %v573_v7  ;;  %v538_v4 = vshrl.u32 %v6918_v49, 16  ;;  %v6016_v24 = vld [vmem:[%s7802_s0] sm:$0xff]  }
 0x1af   :  { %v706_v51 = vsel %vm675_vm2, %v701_v13, %v705_v42  ;;  %v529_v31 = vsel %vm469_vm1, %v524_v43, %v528_v63  ;;  %v532_v56 = vor.u32 %v6914_v48, %v528_v63  ;;  %v628_v57 = vor.u32 %v627_v12, %v626_v10 }
 0x1b0   :  { %1001 = vmatpush1.bf16.msra.mxu0 %v5786_v9  ;;  %v631_v32 = vshrl.u32 %v6980_v30, 16  ;;  %v745_v46 = vrot.slane %v6980_v30, 3  ;;  %v576_v48 = vsel %vm559_vm3, %v573_v7, %v575_v28  ;;  %v658_v8 = vrot.slane %v6790_v3, 2 }
 0x1b1   :  { %1002 = vmatprep.subr.bf16.mxu0 %v6500_v0  ;;  %v537_v52 = vsel %vm469_vm1, %v532_v56, %v6972_v22  ;;  %v540_v7 = vor.u32 %v538_v4, %v6972_v22  ;;  %v659_v12 = vrot.slane %v6784_v1, 2  ;;  %v663_v3 = vrot.slane %v6810_v23, 2 }
 0x1b2   :  { %583 = vrot.lane.b32.xlu1 %v568_v35, %s6493_s19  ;;  %717 = vrot.lane.b32.xlu0 %v694_v38, %s6501_s28  ;;  %v702_v35 = vsel %vm675_vm2, %v697_v61, %v701_v13  ;;  %v634_v38 = vshll.u32 %v6980_v30, 16  ;;  %v707_v41 = vrot.slane %v631_v32, 2  ;;  %v633_v58 = vrot.slane %v631_v32, 1 }
 0x1b3   :  { %v746_v10 = vsel %vm729_vm0, %v743_v6, %v745_v46  ;;  %v667_v6 = vrot.slane %v6850_v11, 2  ;;  %v669_v1 = vrot.slane %v6860_v16, 2 }
 0x1b4   :  { %1003 = vmatpush1.bf16.msra.mxu0 %v5787_v17  ;;  %v708_v44 = vrot.slane %v634_v38, 3  ;;  %v636_v59 = vrot.slane %v634_v38, 2 }
 0x1b5   :  { %1004 = vmatprep.subr.bf16.mxu0 %v6500_v0  ;;  %v672_v11 = vsel %vm657_vm5, %v669_v1, %v671_v47 }
 0x1b6   :  { %645 = vrot.lane.b32.xlu1 %v617_v60, %s6502_s1  ;;  %753 = vrot.lane.b32.xlu0 %v738_v50, %s6493_s19  ;;  %v673_v50 = vrot.slane %v6980_v30, 2  ;;  %v629_v60 = vsel %vm598_vm4, %v624_v36, %v628_v57  ;;  %v709_v61 = vor.u32 %v708_v44, %v707_v41  ;;  %v637_v63 = vor.u32 %v636_v59, %v633_v58  ;;  %v7168_v30 = vld [vmem:[#allocation2] ss:$0 sm:$0xff] }
 0x1b8   :  { %1005 = vmatpush1.bf16.msra.mxu0 %v5788_v5  ;;  %v7019_v34 = vsel %vm657_vm5, %v671_v47, %v673_v50  ;;  %v710_v62 = vsel %vm675_vm2, %v705_v42, %v709_v61  ;;  %v638_v9 = vsel %vm598_vm4, %v628_v57, %v637_v63  ;;  %vm4809_vm2 = vcmask 402432  }
 0x1b9   :  { %1006 = vmatprep.subr.bf16.mxu0 %v6500_v0 }
 0x1ba   :  { %719 = vrot.lane.b32.xlu1 %v698_v14, %s6501_s28  ;;  %549 = vrot.lane.b32.xlu0 %v513_v15, %s6501_s28  ;;  %v661_v14 = vrot.slane %v6787_v2, 2  ;;  %v665_v15 = vrot.slane %v6833_v55, 2 }
 0x1bc   :  { %1007 = vmatpush1.bf16.msra.mxu0 %v5789_v29 }
 0x1bd   :  { %1008 = vmatprep.subr.bf16.mxu0 %v6500_v0 }
 0x1be   :  { %755 = vrot.lane.b32.xlu1 %v740_v19, %s6493_s19  ;;  %585 = vrot.lane.b32.xlu0 %v570_v20, %s6493_s19  ;;  %v660_v19 = vsel %vm657_vm5, %v658_v8, %v659_v12 }
 0x1c0   :  { %1009 = vmatpush1.bf16.msra.mxu0 %v5790_v37  ;;  %v6017_v37 = vld [vmem:[%s7802_s0 + $0x8] sm:$0xff]  }
 0x1c1   :  { %1010 = vmatprep.subr.bf16.mxu0 %v6500_v0 }
 0x1c2   :  { %551 = vrot.lane.b32.xlu1 %v521_v25, %s6501_s28  ;;  %647 = vrot.lane.b32.xlu0 %v621_v27, %s6502_s1 }
 0x1c4   :  { %1011 = vmatpush1.bf16.msra.mxu0 %v5791_v45 }
 0x1c5   :  { %1592 = vmatprep.subr.bf16.mxu0 %v6500_v0 }
 0x1c6   :  { %587 = vrot.lane.b32.xlu1 %v572_v33, %s6493_s19  ;;  %721 = vrot.lane.b32.xlu0 %v702_v35, %s6501_s28  ;;  %v662_v33 = vsel %vm657_vm5, %v659_v12, %v661_v14  ;;  %v668_v12 = vsel %vm657_vm5, %v665_v15, %v667_v6 }
 0x1ca   :  { %649 = vrot.lane.b32.xlu1 %v625_v39, %s6502_s1  ;;  %757 = vrot.lane.b32.xlu0 %v742_v40, %s6493_s19  ;;  %v664_v40 = vsel %vm657_vm5, %v661_v14, %v663_v3 }
 0x1ce   :  { %723 = vrot.lane.b32.xlu1 %v706_v51, %s6501_s28  ;;  %553 = vrot.lane.b32.xlu0 %v529_v31, %s6501_s28 }
 0x1d2   :  { %759 = vrot.lane.b32.xlu1 %v744_v53, %s6493_s19  ;;  %589 = vrot.lane.b32.xlu0 %v574_v54, %s6493_s19  ;;  %v6018_v54 = vld [vmem:[%s7802_s0 + $0x10] sm:$0xff]  }
 0x1d6   :  { %555 = vrot.lane.b32.xlu1 %v537_v52, %s6501_s28  ;;  %651 = vrot.lane.b32.xlu0 %v629_v60, %s6502_s1 }
 0x1da   :  { %591 = vrot.lane.b32.xlu1 %v576_v48, %s6493_s19  ;;  %725 = vrot.lane.b32.xlu0 %v710_v62, %s6501_s28  ;;  %v666_v62 = vsel %vm657_vm5, %v663_v3, %v665_v15 }
 0x1de   :  { %653 = vrot.lane.b32.xlu1 %v638_v9, %s6502_s1  ;;  %761 = vrot.lane.b32.xlu0 %v746_v10, %s6493_s19 }
 0x1e2   :  { %727 = vrot.lane.b32.xlu1 %v709_v61, %s6501_s28  ;;  %557 = vrot.lane.b32.xlu0 %v540_v7, %s6501_s28 }
 0x1e6   :  { %763 = vrot.lane.b32.xlu1 %v745_v46, %s6493_s19  ;;  %593 = vrot.lane.b32.xlu0 %v575_v28, %s6493_s19  ;;  %v6019_v46 = vld [vmem:[%s7802_s0 + $0x18] sm:$0xff]  }
 0x1ea   :  { %655 = vrot.lane.b32.xlu0 %v637_v63, %s6502_s1 }
 0x203   :  { %v750_v2 = vpop.permute.xlu0 %749 }
 0x204   :  { %v578_v17 = vpop.permute.xlu1 %577 }
 0x208   :  { %v748_v23 = vpop.permute.xlu1 %747  ;;  %v542_v18 = vpop.permute.xlu0 %541 }
 0x209   :  { %v767_v5 = vsel %vm765_vm6, %v6016_v24, %v542_v18 }
 0x20a   :  { %v786_v28 = vsel %vm784_vm8, %v767_v5, %v578_v17 }
 0x20c   :  { %v580_v20 = vpop.permute.xlu1 %579  ;;  %v712_v21 = vpop.permute.xlu0 %711 }
 0x20d   :  { %v833_v25 = vsel %vm765_vm6, %v660_v19, %v712_v21  ;;  %v6020_v19 = vld [vmem:[%s7802_s0 + $0x20] sm:$0xff]  }
 0x20e   :  { %v859_v27 = vsel %vm784_vm8, %v833_v25, %v748_v23 }
 0x20f   :  { %4898 = vmatprep.mubr.msk.bf16.mxu0 %vm803_vm7, %v859_v27  ;;  %v6021_v27 = vld [vmem:[%s7802_s0 + $0x28] sm:$0xff]  }
 0x210   :  { %v544_v13 = vpop.permute.xlu1 %543  ;;  %v640_v22 = vpop.permute.xlu0 %639 }
 0x211   :  { %v805_v29 = vsel %vm803_vm7, %v786_v28, %v640_v22  ;;  %v769_v32 = vsel %vm765_vm6, %v6017_v37, %v544_v13  ;;  %v670_v22 = vsel %vm657_vm5, %v667_v6, %v669_v1 }
 0x212   :  { %1017 = vmatmul.mubr.bf16.vlgmr.msra.gmra.mrb[0].mxu0 %v805_v29  ;;  %v788_v45 = vsel %vm784_vm8, %v769_v32, %v580_v20 }
 0x214   :  { %v642_v35 = vpop.permute.xlu1 %641  ;;  %v714_v36 = vpop.permute.xlu0 %713 }
 0x215   :  { %v836_v38 = vsel %vm765_vm6, %v662_v33, %v714_v36  ;;  %v808_v51 = vsel %vm803_vm7, %v788_v45, %v642_v35 }
 0x216   :  { %v861_v39 = vsel %vm784_vm8, %v836_v38, %v750_v2 }
 0x217   :  { %4899 = vmatprep.mubr.msk.bf16.mxu0 %vm803_vm7, %v861_v39 }
 0x218   :  { %v716_v42 = vpop.permute.xlu1 %715  ;;  %v546_v43 = vpop.permute.xlu0 %545 }
 0x219   :  { %v839_v31 = vsel %vm765_vm6, %v664_v40, %v716_v42  ;;  %v771_v56 = vsel %vm765_vm6, %v6018_v54, %v546_v43  ;;  %v6022_v43 = vld [vmem:[%s7802_s0 + $0x30] sm:$0xff]  }
 0x21a   :  { %1025 = vmatmul.mubr.bf16.gmra.mrb[4].mxu0 %v808_v51 }
 0x21c   :  { %v752_v41 = vpop.permute.xlu1 %751  ;;  %v582_v44 = vpop.permute.xlu0 %581 }
 0x21d   :  { %v863_v53 = vsel %vm784_vm8, %v839_v31, %v752_v41  ;;  %v790_v57 = vsel %vm784_vm8, %v771_v56, %v582_v44  ;;  %v6023_v41 = vld [vmem:[%s7802_s0 + $0x38] sm:$0xff]  }
 0x21e   :  { %4900 = vmatprep.mubr.msk.bf16.mxu0 %vm803_vm7, %v863_v53 }
 0x220   :  { %v548_v58 = vpop.permute.xlu1 %547  ;;  %v644_v59 = vpop.permute.xlu0 %643 }
 0x221   :  { %v811_v52 = vsel %vm803_vm7, %v790_v57, %v644_v59  ;;  %v773_v48 = vsel %vm765_vm6, %v6019_v46, %v548_v58 }
 0x222   :  { %1033 = vmatmul.mubr.bf16.gmra.mrb[8].mxu0 %v811_v52 }
 0x224   :  { %v584_v60 = vpop.permute.xlu1 %583  ;;  %v718_v61 = vpop.permute.xlu0 %717 }
 0x225   :  { %v792_v63 = vsel %vm784_vm8, %v773_v48, %v584_v60  ;;  %v842_v4 = vsel %vm765_vm6, %v666_v62, %v718_v61 }
 0x228   :  { %v646_v8 = vpop.permute.xlu1 %645  ;;  %v754_v9 = vpop.permute.xlu0 %753 }
 0x229   :  { %v865_v10 = vsel %vm784_vm8, %v842_v4, %v754_v9  ;;  %v814_v7 = vsel %vm803_vm7, %v792_v63, %v646_v8  ;;  %v5794_v9 = vld [vmem:[%s7804_s2 + $0x4] ss:$8 sps:$4 sm:$0xff]  }
 0x22a   :  { %4901 = vmatprep.mubr.msk.bf16.mxu0 %vm803_vm7, %v865_v10  ;;  %4913 = vmatprep.mubr.msk.bf16.mxu1 %vm1138_vm9, %v5794_v9 }
 0x22b   :  { %1041 = vmatmul.mubr.bf16.gmra.mrb[12].mxu0 %v814_v7 }
 0x22c   :  { %v720_v14 = vpop.permute.xlu1 %719  ;;  %v550_v3 = vpop.permute.xlu0 %549 }
 0x22d   :  { %v845_v2 = vsel %vm765_vm6, %v668_v12, %v720_v14  ;;  %v775_v20 = vsel %vm765_vm6, %v6020_v19, %v550_v3 }
 0x230   :  { %v756_v17 = vpop.permute.xlu1 %755  ;;  %v586_v23 = vpop.permute.xlu0 %585 }
 0x231   :  { %v867_v18 = vsel %vm784_vm8, %v845_v2, %v756_v17  ;;  %v794_v21 = vsel %vm784_vm8, %v775_v20, %v586_v23 }
 0x232   :  { %4902 = vmatprep.mubr.msk.bf16.mxu0 %vm803_vm7, %v867_v18 }
 0x234   :  { %v552_v24 = vpop.permute.xlu1 %551  ;;  %v648_v55 = vpop.permute.xlu0 %647 }
 0x235   :  { %v817_v15 = vsel %vm803_vm7, %v794_v21, %v648_v55  ;;  %v777_v13 = vsel %vm765_vm6, %v6021_v27, %v552_v24 }
 0x236   :  { %1049 = vmatmul.mubr.bf16.gmra.mrb[16].mxu0 %v817_v15 }
 0x238   :  { %v588_v5 = vpop.permute.xlu1 %587  ;;  %v722_v25 = vpop.permute.xlu0 %721 }
 0x239   :  { %v796_v28 = vsel %vm784_vm8, %v777_v13, %v588_v5  ;;  %v848_v29 = vsel %vm765_vm6, %v670_v22, %v722_v25 }
 0x23c   :  { %v650_v33 = vpop.permute.xlu1 %649  ;;  %v758_v35 = vpop.permute.xlu0 %757 }
 0x23d   :  { %v869_v36 = vsel %vm784_vm8, %v848_v29, %v758_v35  ;;  %v820_v37 = vsel %vm803_vm7, %v796_v28, %v650_v33 }
 0x23e   :  { %4903 = vmatprep.mubr.msk.bf16.mxu0 %vm803_vm7, %v869_v36 }
 0x23f   :  { %1057 = vmatmul.mubr.bf16.gmra.mrb[20].mxu0 %v820_v37 }
 0x240   :  { %v724_v6 = vpop.permute.xlu1 %723  ;;  %v554_v32 = vpop.permute.xlu0 %553 }
 0x241   :  { %v851_v38 = vsel %vm765_vm6, %v672_v11, %v724_v6  ;;  %v779_v45 = vsel %vm765_vm6, %v6022_v43, %v554_v32 }
 0x244   :  { %v760_v39 = vpop.permute.xlu1 %759  ;;  %v590_v40 = vpop.permute.xlu0 %589 }
 0x245   :  { %v871_v42 = vsel %vm784_vm8, %v851_v38, %v760_v39  ;;  %v798_v26 = vsel %vm784_vm8, %v779_v45, %v590_v40 }
 0x246   :  { %4904 = vmatprep.mubr.msk.bf16.mxu0 %vm803_vm7, %v871_v42 }
 0x248   :  { %v556_v51 = vpop.permute.xlu1 %555  ;;  %v652_v16 = vpop.permute.xlu0 %651 }
 0x249   :  { %v823_v47 = vsel %vm803_vm7, %v798_v26, %v652_v16  ;;  %v781_v44 = vsel %vm765_vm6, %v6023_v41, %v556_v51 }
 0x24a   :  { %1065 = vmatmul.mubr.bf16.gmra.mrb[24].mxu0 %v823_v47 }
 0x24c   :  { %v592_v1 = vpop.permute.xlu1 %591  ;;  %v726_v31 = vpop.permute.xlu0 %725 }
 0x24d   :  { %v800_v53 = vsel %vm784_vm8, %v781_v44, %v592_v1  ;;  %v854_v54 = vsel %vm765_vm6, %v7019_v34, %v726_v31 }
 0x250   :  { %v654_v56 = vpop.permute.xlu1 %653  ;;  %v762_v57 = vpop.permute.xlu0 %761 }
 0x251   :  { %v873_v58 = vsel %vm784_vm8, %v854_v54, %v762_v57  ;;  %v826_v59 = vsel %vm803_vm7, %v800_v53, %v654_v56 }
 0x252   :  { %4905 = vmatprep.mubr.msk.bf16.mxu0 %vm803_vm7, %v873_v58 }
 0x253   :  { %1073 = vmatmul.mubr.bf16.gmra.mrb[28].mxu0 %v826_v59 }
 0x254   :  { %v728_v52 = vpop.permute.xlu1 %727  ;;  %v558_v60 = vpop.permute.xlu0 %557 }
 0x255   :  { %v857_v61 = vsel %vm765_vm6, %v673_v50, %v728_v52  ;;  %v783_v62 = vsel %vm765_vm6, %v6918_v49, %v558_v60 }
 0x258   :  { %v764_v46 = vpop.permute.xlu1 %763  ;;  %v594_v48 = vpop.permute.xlu0 %593 }
 0x259   :  { %v875_v34 = vsel %vm784_vm8, %v857_v61, %v764_v46  ;;  %v802_v63 = vsel %vm784_vm8, %v783_v62, %v594_v48 }
 0x25a   :  { %4906 = vmatprep.mubr.msk.bf16.mxu0 %vm803_vm7, %v875_v34 }
 0x25c   :  { %v656_v4 = vpop.permute.xlu0 %655 }
 0x25d   :  { %v829_v8 = vsel %vm803_vm7, %v802_v63, %v656_v4 }
 0x25e   :  { %1081 = vmatmul.mubr.bf16.gmra.mrb[32].mxu0 %v829_v8 }
 0x2e5   :  { %v1018_v50 = vpop.f32.mrb[0].mxu0 }
 0x2e6   :  { %v1019_v10 = vadd.f32 %v7168_v30, %v1018_v50  ;;  %v1020_v7 = vpop.f32.mrb[1].mxu0 }
 0x2e7   :  { %v1021_v12 = vpop.f32.mrb[2].mxu0 }
 0x2e8   :  { %v1022_v14 = vadd.f32 %v7168_v30, %v1021_v12  ;;  %v1023_v49 = vpop.f32.mrb[3].mxu0  ;;  %v1088_v3 = vmax.f32 %v1019_v10, 0.0 }
 0x2ea   :  { %v1089_v2 = vmax.f32 %v1022_v14, 0.0 }
 0x2ec   :  { %v7172_v17 = vpack.c.bf16 %v1089_v2, %v1088_v3 }
 0x2ed   :  { %v1026_v23 = vpop.f32.mrb[4].mxu0 }
 0x2ee   :  { %v1027_v18 = vadd.f32 %v7168_v30, %v1026_v23  ;;  %v1028_v19 = vpop.f32.mrb[5].mxu0  ;;  %1153 = vmatpush1.bf16.msra.mxu1 %v7172_v17 }
 0x2ef   :  { %v1029_v20 = vpop.f32.mrb[6].mxu0  ;;  %1154 = vmatprep.subr.bf16.mxu1 %v6500_v0 }
 0x2f0   :  { %v1030_v21 = vadd.f32 %v7168_v30, %v1029_v20  ;;  %v1031_v24 = vpop.f32.mrb[7].mxu0  ;;  %v1090_v55 = vmax.f32 %v1027_v18, 0.0 }
 0x2f2   :  { %v1091_v15 = vmax.f32 %v1030_v21, 0.0 }
 0x2f4   :  { %v7178_v5 = vpack.c.bf16 %v1091_v15, %v1090_v55 }
 0x2f5   :  { %v1034_v25 = vpop.f32.mrb[8].mxu0 }
 0x2f6   :  { %v1035_v27 = vadd.f32 %v7168_v30, %v1034_v25  ;;  %v1036_v13 = vpop.f32.mrb[9].mxu0  ;;  %1155 = vmatpush1.bf16.msra.mxu1 %v7178_v5 }
 0x2f7   :  { %v1037_v22 = vpop.f32.mrb[10].mxu0  ;;  %1156 = vmatprep.subr.bf16.mxu1 %v6500_v0  ;;  %v5792_v13 = vld [vmem:[%s7804_s2] ss:$8 sps:$4 sm:$0xff]  }
 0x2f8   :  { %v1038_v28 = vadd.f32 %v7168_v30, %v1037_v22  ;;  %v1039_v29 = vpop.f32.mrb[11].mxu0  ;;  %v1092_v33 = vmax.f32 %v1035_v27, 0.0  ;;  %v5795_v22 = vld [vmem:[%s7804_s2 + $0x14] ss:$8 sps:$4 sm:$0xff]  }
 0x2fa   :  { %v1093_v35 = vmax.f32 %v1038_v28, 0.0  ;;  %v5797_v28 = vld [vmem:[%s7804_s2 + $0x10] ss:$8 sps:$4 sm:$0xff]  }
 0x2fc   :  { %v7184_v36 = vpack.c.bf16 %v1093_v35, %v1092_v33  ;;  %v5802_v35 = vld [vmem:[%s7805_s7 + $0x4] ss:$8 sps:$4 sm:$0xff]  }
 0x2fe   :  { %v1042_v37 = vpop.f32.mrb[12].mxu0  ;;  %1157 = vmatpush1.bf16.msra.mxu1 %v7184_v36 }
 0x2ff   :  { %v1043_v11 = vadd.f32 %v7168_v30, %v1042_v37  ;;  %v1044_v6 = vpop.f32.mrb[13].mxu0  ;;  %1158 = vmatprep.subr.bf16.mxu1 %v6500_v0  ;;  %v5800_v37 = vld [vmem:[%s7805_s7] ss:$8 sps:$4 sm:$0xff]  }
 0x300   :  { %v1045_v32 = vpop.f32.mrb[14].mxu0  ;;  %v420_v6 = vld [vmem:[%s7805_s7 + $0x20] sm:$0x33] }
 0x301   :  { %v1046_v38 = vadd.f32 %v7168_v30, %v1045_v32  ;;  %v1047_v39 = vpop.f32.mrb[15].mxu0  ;;  %v1094_v40 = vmax.f32 %v1043_v11, 0.0  ;;  %v5803_v11 = vld [vmem:[%s7805_s7 + $0x14] ss:$8 sps:$4 sm:$0xff]   ;;  %v5805_v32 = vld [vmem:[%s7805_s7 + $0x10] ss:$8 sps:$4 sm:$0xff]  }
 0x302   :  { %v4920_v39 = vcombine.low %v420_v6, %v420_v6 }
 0x303   :  { %v1095_v42 = vmax.f32 %v1046_v38, 0.0  ;;  %v4921_v38 = vcombine.high %v420_v6, %v420_v6 }
 0x305   :  { %v7190_v43 = vpack.c.bf16 %v1095_v42, %v1094_v40  ;;  %v425_v40 = vld [vmem:[#allocation5 + $0x20] sm:$0x33]  ;;  %v5813_v42 = vld [vmem:[#allocation5 + $0x10] ss:$8 sps:$4 sm:$0xff]  }
 0x307   :  { %1159 = vmatpush1.bf16.msra.mxu1 %v7190_v43 }
 0x308   :  { %1160 = vmatprep.subr.bf16.mxu1 %v6500_v0 }
 0x309   :  { %v1050_v45 = vpop.f32.mrb[16].mxu0 }
 0x30a   :  { %v1051_v26 = vadd.f32 %v7168_v30, %v1050_v45  ;;  %v1052_v51 = vpop.f32.mrb[17].mxu0  ;;  %v4929_v45 = vcombine.low %v425_v40, %v425_v40 }
 0x30b   :  { %v1053_v16 = vpop.f32.mrb[18].mxu0  ;;  %v5817_v51 = vld [vmem:[%s7806_s24 + $0x8] sm:$0xff]  }
 0x30c   :  { %v1054_v47 = vadd.f32 %v7168_v30, %v1053_v16  ;;  %v1055_v1 = vpop.f32.mrb[19].mxu0  ;;  %v1096_v31 = vmax.f32 %v1051_v26, 0.0  ;;  %v5816_v26 = vld [vmem:[%s7806_s24] sm:$0xff]   ;;  %v5818_v16 = vld [vmem:[%s7806_s24 + $0x10] sm:$0xff]  }
 0x30d   :  { %1593 = vmatpush1.bf16.msra.mxu0 %v5816_v26  ;;  %v5820_v1 = vld [vmem:[%s7806_s24 + $0x20] sm:$0xff]  }
 0x30e   :  { %v1097_v41 = vmax.f32 %v1054_v47, 0.0  ;;  %1594 = vmatprep.subr.bf16.mxu0 %v6500_v0  ;;  %v5819_v47 = vld [vmem:[%s7806_s24 + $0x18] sm:$0xff]  }
 0x310   :  { %v7196_v44 = vpack.c.bf16 %v1097_v41, %v1096_v31  ;;  %v5821_v31 = vld [vmem:[%s7806_s24 + $0x28] sm:$0xff]   ;;  %v5822_v41 = vld [vmem:[%s7806_s24 + $0x30] sm:$0xff]  }
 0x311   :  { %1595 = vmatpush1.bf16.msra.mxu0 %v5817_v51 }
 0x312   :  { %v1058_v53 = vpop.f32.mrb[20].mxu0  ;;  %1161 = vmatpush1.bf16.msra.mxu1 %v7196_v44  ;;  %1596 = vmatprep.subr.bf16.mxu0 %v6500_v0 }
 0x313   :  { %v1059_v54 = vadd.f32 %v7168_v30, %v1058_v53  ;;  %v1060_v56 = vpop.f32.mrb[21].mxu0  ;;  %1162 = vmatprep.subr.bf16.mxu1 %v6500_v0 }
 0x314   :  { %v1061_v57 = vpop.f32.mrb[22].mxu0  ;;  %v5824_v56 = vld [vmem:[%s7806_s24 + $0x40] sm:$0xff]  }
 0x315   :  { %v1062_v58 = vadd.f32 %v7168_v30, %v1061_v57  ;;  %v1063_v59 = vpop.f32.mrb[23].mxu0  ;;  %v1098_v52 = vmax.f32 %v1059_v54, 0.0  ;;  %1597 = vmatpush1.bf16.msra.mxu0 %v5818_v16 }
 0x316   :  { %1598 = vmatprep.subr.bf16.mxu0 %v6500_v0  ;;  %v5825_v59 = vld [vmem:[%s7806_s24 + $0x48] sm:$0xff]  }
 0x317   :  { %v1099_v60 = vmax.f32 %v1062_v58, 0.0 }
 0x319   :  { %v7202_v61 = vpack.c.bf16 %v1099_v60, %v1098_v52  ;;  %1599 = vmatpush1.bf16.msra.mxu0 %v5819_v47 }
 0x31a   :  { %1600 = vmatprep.subr.bf16.mxu0 %v6500_v0 }
 0x31b   :  { %1163 = vmatpush1.bf16.msra.mxu1 %v7202_v61 }
 0x31c   :  { %1164 = vmatprep.subr.bf16.mxu1 %v6500_v0 }
 0x31d   :  { %v1066_v46 = vpop.f32.mrb[24].mxu0  ;;  %1601 = vmatpush1.bf16.msra.mxu0 %v5820_v1 }
 0x31e   :  { %v1067_v48 = vadd.f32 %v7168_v30, %v1066_v46  ;;  %v1068_v34 = vpop.f32.mrb[25].mxu0  ;;  %1602 = vmatprep.subr.bf16.mxu0 %v6500_v0 }
 0x31f   :  { %v1069_v62 = vpop.f32.mrb[26].mxu0  ;;  %v5827_v34 = vld [vmem:[%s7806_s24 + $0x58] sm:$0xff]  }
 0x320   :  { %v1070_v63 = vadd.f32 %v7168_v30, %v1069_v62  ;;  %v1071_v4 = vpop.f32.mrb[27].mxu0  ;;  %v1100_v8 = vmax.f32 %v1067_v48, 0.0 }
 0x321   :  { %1603 = vmatpush1.bf16.msra.mxu0 %v5821_v31 }
 0x322   :  { %v1101_v9 = vmax.f32 %v1070_v63, 0.0  ;;  %1604 = vmatprep.subr.bf16.mxu0 %v6500_v0 }
 0x324   :  { %v7208_v50 = vpack.c.bf16 %v1101_v9, %v1100_v8 }
 0x325   :  { %1605 = vmatpush1.bf16.msra.mxu0 %v5822_v41 }
 0x326   :  { %v1074_v10 = vpop.f32.mrb[28].mxu0  ;;  %1165 = vmatpush1.bf16.msra.mxu1 %v7208_v50  ;;  %1606 = vmatprep.subr.bf16.mxu0 %v6500_v0 }
 0x327   :  { %v1075_v7 = vadd.f32 %v7168_v30, %v1074_v10  ;;  %v1076_v12 = vpop.f32.mrb[29].mxu0  ;;  %1166 = vmatprep.subr.bf16.mxu1 %v6500_v0 }
 0x328   :  { %v1077_v14 = vpop.f32.mrb[30].mxu0 }
 0x329   :  { %v1078_v49 = vadd.f32 %v7168_v30, %v1077_v14  ;;  %v1079_v3 = vpop.f32.mrb[31].mxu0  ;;  %v1102_v2 = vmax.f32 %v1075_v7, 0.0 }
 0x32b   :  { %v1103_v23 = vmax.f32 %v1078_v49, 0.0 }
 0x32d   :  { %v7214_v18 = vpack.c.bf16 %v1103_v23, %v1102_v2 }
 0x32f   :  { %1167 = vmatpush1.bf16.msra.mxu1 %v7214_v18 }
 0x330   :  { %1168 = vmatprep.subr.bf16.mxu1 %v6500_v0 }
 0x331   :  { %v1082_v19 = vpop.f32.mrb[32].mxu0 }
 0x332   :  { %v1083_v20 = vadd.f32 %v7168_v30, %v1082_v19  ;;  %v1084_v21 = vpop.f32.mrb[33].mxu0  ;;  %v415_v30 = vld [vmem:[%s7804_s2 + $0x20] sm:$0x33] }
 0x333   :  { %v1085_v24 = vpop.f32.mrb[34].mxu0  ;;  %v4912_v29 = vcombine.high %v415_v30, %v415_v30  ;;  %v4911_v33 = vcombine.low %v415_v30, %v415_v30 }
 0x334   :  { %v1104_v55 = vmax.f32 %v1083_v20, 0.0  ;;  %v1086_v15 = vpop.f32.mrb[35].mxu0 }
 0x336   :  { %v1113_v25 = vpack.c.bf16 %v1104_v55, %v1104_v55 }
 0x338   :  { %v7220_v27 = vsel %vm1148_vm10, %v1113_v25, 0 }
 0x339   :  { %1169 = vmatpush1.bf16.msra.mxu1 %v7220_v27 }
 0x33a   :  { %1241 = vmatprep.subr.bf16.mxu1 %v6500_v0 }
 0x33c   :  { %1185 = vmatmul.mubr.bf16.vlgmr.msra.gmra.mrb[0].mxu1 %v5792_v13 }
 0x33d   :  { %1242 = vmatpush1.bf16.msra.mxu1 %v7172_v17  ;;  %4914 = vmatprep.mubr.msk.bf16.mxu1 %vm1138_vm9, %v5795_v22 }
 0x33e   :  { %1243 = vmatprep.subr.bf16.mxu1 %v6500_v0 }
 0x341   :  { %1244 = vmatpush1.bf16.msra.mxu1 %v7178_v5 }
 0x342   :  { %1245 = vmatprep.subr.bf16.mxu1 %v6500_v0 }
 0x344   :  { %1193 = vmatmul.mubr.bf16.gmra.mrb[4].mxu1 %v5797_v28 }
 0x345   :  { %1246 = vmatpush1.bf16.msra.mxu1 %v7184_v36  ;;  %4915 = vmatprep.mubr.msk.bf16.mxu1 %vm1138_vm9, %v4912_v29 }
 0x346   :  { %1247 = vmatprep.subr.bf16.mxu1 %v6500_v0 }
 0x349   :  { %1248 = vmatpush1.bf16.msra.mxu1 %v7190_v43 }
 0x34a   :  { %1249 = vmatprep.subr.bf16.mxu1 %v6500_v0 }
 0x34c   :  { %1201 = vmatmul.mubr.bf16.gmra.mrb[8].mxu1 %v4911_v33 }
 0x34d   :  { %1250 = vmatpush1.bf16.msra.mxu1 %v7196_v44  ;;  %4922 = vmatprep.mubr.msk.bf16.mxu1 %vm1138_vm9, %v5802_v35 }
 0x34e   :  { %1251 = vmatprep.subr.bf16.mxu1 %v6500_v0 }
 0x351   :  { %1252 = vmatpush1.bf16.msra.mxu1 %v7202_v61 }
 0x352   :  { %1253 = vmatprep.subr.bf16.mxu1 %v6500_v0 }
 0x355   :  { %1254 = vmatpush1.bf16.msra.mxu1 %v7208_v50 }
 0x356   :  { %1255 = vmatprep.subr.bf16.mxu1 %v6500_v0 }
 0x359   :  { %1256 = vmatpush1.bf16.msra.mxu1 %v7214_v18 }
 0x35a   :  { %1257 = vmatprep.subr.bf16.mxu1 %v6500_v0 }
 0x35d   :  { %1258 = vmatpush1.bf16.msra.mxu1 %v7220_v27 }
 0x35e   :  { %1335 = vmatprep.subr.bf16.mxu1 %v6500_v0 }
 0x360   :  { %1274 = vmatmul.mubr.bf16.vlgmr.msra.gmra.mrb[12].mxu1 %v5800_v37 }
 0x361   :  { %1336 = vmatpush1.bf16.msra.mxu1 %v7172_v17  ;;  %4923 = vmatprep.mubr.msk.bf16.mxu1 %vm1138_vm9, %v5803_v11  ;;  %v5810_v17 = vld [vmem:[#allocation5 + $0x4] ss:$8 sps:$4 sm:$0xff]  }
 0x362   :  { %1337 = vmatprep.subr.bf16.mxu1 %v6500_v0 }
 0x365   :  { %1338 = vmatpush1.bf16.msra.mxu1 %v7178_v5  ;;  %v5808_v5 = vld [vmem:[#allocation5] ss:$8 sps:$4 sm:$0xff]  }
 0x366   :  { %1339 = vmatprep.subr.bf16.mxu1 %v6500_v0 }
 0x368   :  { %1282 = vmatmul.mubr.bf16.gmra.mrb[16].mxu1 %v5805_v32 }
 0x369   :  { %1340 = vmatpush1.bf16.msra.mxu1 %v7184_v36  ;;  %4924 = vmatprep.mubr.msk.bf16.mxu1 %vm1138_vm9, %v4921_v38  ;;  %v5811_v36 = vld [vmem:[#allocation5 + $0x14] ss:$8 sps:$4 sm:$0xff]  }
 0x36a   :  { %1341 = vmatprep.subr.bf16.mxu1 %v6500_v0 }
 0x36d   :  { %1342 = vmatpush1.bf16.msra.mxu1 %v7190_v43  ;;  %v4930_v43 = vcombine.high %v425_v40, %v425_v40 }
 0x36e   :  { %1343 = vmatprep.subr.bf16.mxu1 %v6500_v0 }
 0x370   :  { %1290 = vmatmul.mubr.bf16.gmra.mrb[20].mxu1 %v4920_v39 }
 0x371   :  { %1344 = vmatpush1.bf16.msra.mxu1 %v7196_v44  ;;  %4931 = vmatprep.mubr.msk.bf16.mxu1 %vm1138_vm9, %v5810_v17  ;;  %v5823_v44 = vld [vmem:[%s7806_s24 + $0x38] sm:$0xff]  }
 0x372   :  { %1345 = vmatprep.subr.bf16.mxu1 %v6500_v0  ;;  %1607 = vmatpush1.bf16.msra.mxu0 %v5823_v44 }
 0x373   :  { %1608 = vmatprep.subr.bf16.mxu0 %v6500_v0 }
 0x375   :  { %1346 = vmatpush1.bf16.msra.mxu1 %v7202_v61  ;;  %v5826_v61 = vld [vmem:[%s7806_s24 + $0x50] sm:$0xff]  }
 0x376   :  { %1347 = vmatprep.subr.bf16.mxu1 %v6500_v0  ;;  %1609 = vmatpush1.bf16.msra.mxu0 %v5824_v56 }
 0x377   :  { %1610 = vmatprep.subr.bf16.mxu0 %v6500_v0 }
 0x379   :  { %1348 = vmatpush1.bf16.msra.mxu1 %v7208_v50 }
 0x37a   :  { %1349 = vmatprep.subr.bf16.mxu1 %v6500_v0  ;;  %1611 = vmatpush1.bf16.msra.mxu0 %v5825_v59 }
 0x37b   :  { %1612 = vmatprep.subr.bf16.mxu0 %v6500_v0 }
 0x37d   :  { %1350 = vmatpush1.bf16.msra.mxu1 %v7214_v18 }
 0x37e   :  { %1351 = vmatprep.subr.bf16.mxu1 %v6500_v0  ;;  %1613 = vmatpush1.bf16.msra.mxu0 %v5826_v61 }
 0x37f   :  { %1614 = vmatprep.subr.bf16.mxu0 %v6500_v0 }
 0x381   :  { %1352 = vmatpush1.bf16.msra.mxu1 %v7220_v27 }
 0x382   :  { %1615 = vmatpush1.bf16.msra.mxu0 %v5827_v34 }
 0x383   :  { %1875 = vmatprep.subr.bf16.mxu0 %v6500_v0 }
 0x384   :  { %1368 = vmatmul.mubr.bf16.vlgmr.msra.gmra.mrb[24].mxu1 %v5808_v5 }
 0x385   :  { %4932 = vmatprep.mubr.msk.bf16.mxu1 %vm1138_vm9, %v5811_v36 }
 0x38c   :  { %1376 = vmatmul.mubr.bf16.gmra.mrb[28].mxu1 %v5813_v42 }
 0x38d   :  { %4933 = vmatprep.mubr.msk.bf16.mxu1 %vm1138_vm9, %v4930_v43 }
 0x394   :  { %1384 = vmatmul.mubr.bf16.gmra.mrb[32].mxu1 %v4929_v45 }
 0x40f   :  { %v1186_v53 = vpop.f32.mrb[0].mxu1 }
 0x410   :  { %v1188_v54 = vpop.f32.mrb[1].mxu1 }
 0x411   :  { %v1189_v57 = vpop.f32.mrb[2].mxu1 }
 0x412   :  { %v1191_v58 = vpop.f32.mrb[3].mxu1 }
 0x417   :  { %v1194_v52 = vpop.f32.mrb[4].mxu1 }
 0x418   :  { %v1196_v60 = vpop.f32.mrb[5].mxu1 }
 0x419   :  { %v1197_v46 = vpop.f32.mrb[6].mxu1 }
 0x41a   :  { %v1199_v48 = vpop.f32.mrb[7].mxu1 }
 0x41f   :  { %v1202_v62 = vpop.f32.mrb[8].mxu1 }
 0x420   :  { %v1204_v63 = vpop.f32.mrb[9].mxu1 }
 0x421   :  { %v1205_v4 = vpop.f32.mrb[10].mxu1 }
 0x422   :  { %v1206_v8 = vpop.f32.mrb[11].mxu1 }
 0x423   :  { %v6503_v8 = vmov 0.0  }
 0x424   :  { %5417 = vmatprep.subr.bf16.mxu1 %v6503_v8  ;;  %5423 = vmatprep.mubr.msk.bf16.mxu1 %vm6504_vm11, %v6503_v8 }
 0x433   :  { %v1275_v9 = vpop.f32.mrb[12].mxu1 }
 0x434   :  { %v1297_v50 = vmax.f32 %v1186_v53, %v1275_v9  ;;  %v1277_v10 = vpop.f32.mrb[13].mxu1  ;;  %v4934_v9 = vld [vmem:[#allocation7] ss:$0 sm:$0xff] }
 0x435   :  { %v1278_v7 = vpop.f32.mrb[14].mxu1 }
 0x436   :  { %v1298_v12 = vmax.f32 %v1189_v57, %v1278_v7  ;;  %v1280_v14 = vpop.f32.mrb[15].mxu1 }
 0x43b   :  { %v1283_v49 = vpop.f32.mrb[16].mxu1 }
 0x43c   :  { %v1299_v3 = vmax.f32 %v1194_v52, %v1283_v49  ;;  %v1285_v2 = vpop.f32.mrb[17].mxu1 }
 0x43d   :  { %v1286_v23 = vpop.f32.mrb[18].mxu1 }
 0x43e   :  { %v1300_v18 = vmax.f32 %v1197_v46, %v1286_v23  ;;  %v1288_v19 = vpop.f32.mrb[19].mxu1 }
 0x443   :  { %v1291_v20 = vpop.f32.mrb[20].mxu1 }
 0x444   :  { %v1301_v21 = vmax.f32 %v1202_v62, %v1291_v20  ;;  %v1293_v24 = vpop.f32.mrb[21].mxu1 }
 0x445   :  { %v1294_v55 = vpop.f32.mrb[22].mxu1 }
 0x446   :  { %v1295_v15 = vpop.f32.mrb[23].mxu1 }
 0x457   :  { %v1369_v25 = vpop.f32.mrb[24].mxu1 }
 0x458   :  { %v1391_v27 = vmax.f32 %v1297_v50, %v1369_v25  ;;  %v1371_v13 = vpop.f32.mrb[25].mxu1 }
 0x459   :  { %v1372_v22 = vpop.f32.mrb[26].mxu1 }
 0x45a   :  { %v1392_v30 = vmax.f32 %v1298_v12, %v1372_v22  ;;  %v1374_v28 = vpop.f32.mrb[27].mxu1 }
 0x45c   :  { %v7300_v29 = vpack.c.bf16 %v1392_v30, %v1391_v27 }
 0x45e   :  { %v1462_v11 = vshll.u32 %v7300_v29, 16  ;;  %v1491_v5 = vrot.slane %v7300_v29, 1  ;;  %v1460_v40 = vshrl.u32 %v7300_v29, 16 }
 0x45f   :  { %v1377_v33 = vpop.f32.mrb[28].mxu1 }
 0x460   :  { %v1393_v35 = vmax.f32 %v1299_v3, %v1377_v33  ;;  %v1379_v37 = vpop.f32.mrb[29].mxu1  ;;  %v1464_v17 = vrot.slane %v1462_v11, 1 }
 0x461   :  { %v1380_v6 = vpop.f32.mrb[30].mxu1 }
 0x462   :  { %v1394_v32 = vmax.f32 %v1300_v18, %v1380_v6  ;;  %v1382_v38 = vpop.f32.mrb[31].mxu1  ;;  %v1465_v16 = vor.u32 %v1464_v17, %v1460_v40  ;;  %v5828_v6 = vld [vmem:[%s7807_s20] sm:$0xff]   ;;  %v5834_v40 = vld [vmem:[%s7808_s27 + $0x18] sm:$0xff]  }
 0x463   :  { %v5830_v38 = vld [vmem:[%s7807_s20 + $0x10] ss:$0 sps:$4 sm:$0x33]   ;;  %v5831_v17 = vld [vmem:[%s7808_s27] sm:$0xff]  }
 0x464   :  { %v7303_v39 = vpack.c.bf16 %v1394_v32, %v1393_v35  ;;  %v5829_v32 = vld [vmem:[%s7807_s20 + $0x8] sm:$0xff]  }
 0x466   :  { %v1492_v36 = vrot.slane %v7303_v39, 1  ;;  %v1467_v42 = vshll.u32 %v7303_v39, 16  ;;  %v1471_v53 = vshrl.u32 %v7303_v39, 16 }
 0x467   :  { %v1385_v43 = vpop.f32.mrb[32].mxu1 }
 0x468   :  { %v1395_v45 = vmax.f32 %v1301_v21, %v1385_v43  ;;  %v1387_v26 = vpop.f32.mrb[33].mxu1  ;;  %v1493_v51 = vsel %vm559_vm3, %v1491_v5, %v1492_v36  ;;  %v1469_v47 = vrot.slane %v1467_v42, 1  ;;  %v5832_v5 = vld [vmem:[%s7808_s27 + $0x8] sm:$0xff]   ;;  %v5835_v42 = vld [vmem:[%s7808_s27 + $0x20] sm:$0xff]  }
 0x469   :  { %v1388_v1 = vpop.f32.mrb[34].mxu1  ;;  %4947 = vmatprep.mubr.msk.bf16.mxu0 %vm784_vm8, %v1493_v51  ;;  %v5836_v43 = vld [vmem:[%s7808_s27 + $0x28] sm:$0xff]   ;;  %v5838_v26 = vld [vmem:[%s7808_s27 + $0x38] sm:$0xff]   ;;  %v5839_v51 = vld [vmem:[%s7808_s27 + $0x40] sm:$0xff]  }
 0x46a   :  { %v7311_v31 = vpack.c.bf16 %v1395_v45, %v1395_v45  ;;  %v1389_v41 = vpop.f32.mrb[35].mxu1  ;;  %v1470_v44 = vsel %vm469_vm1, %v1465_v16, %v1469_v47  ;;  %v1473_v56 = vor.u32 %v1471_v53, %v1469_v47  ;;  %v5837_v45 = vld [vmem:[%s7808_s27 + $0x30] sm:$0xff]   ;;  %v5840_v16 = vld [vmem:[%s7808_s27 + $0x48] sm:$0xff]   ;;  %v5842_v1 = vld [vmem:[%s7808_s27 + $0x58] sm:$0xff]  }
 0x46b   :  { %1482 = vrot.lane.b32.xlu1 %v1470_v44, %s6493_s19  ;;  %v5841_v47 = vld [vmem:[%s7808_s27 + $0x50] sm:$0xff]  }
 0x46c   :  { %v1475_v54 = vshll.u32 %v7311_v31, 16  ;;  %v1479_v58 = vshrl.u32 %v7311_v31, 16  ;;  %v1494_v60 = vrot.slane %v7311_v31, 1 }
 0x46e   :  { %v1477_v57 = vrot.slane %v1475_v54, 1  ;;  %v1495_v48 = vsel %vm559_vm3, %v1492_v36, %v1494_v60  ;;  %v5833_v36 = vld [vmem:[%s7808_s27 + $0x10] sm:$0xff]  }
 0x470   :  { %v1478_v59 = vsel %vm469_vm1, %v1473_v56, %v1477_v57  ;;  %v1481_v52 = vor.u32 %v1479_v58, %v1477_v57 }
 0x471   :  { %1484 = vrot.lane.b32.xlu0 %v1478_v59, %s6493_s19 }
 0x472   :  { %1486 = vrot.lane.b32.xlu1 %v1481_v52, %s6493_s19 }
 0x4dd   :  { %v1483_v61 = vpop.permute.xlu1 %1482 }
 0x4de   :  { %v1497_v46 = vsel %vm784_vm8, %v7300_v29, %v1483_v61 }
 0x4df   :  { %1625 = vmatmul.mubr.bf16.vlgmr.msra.gmra.mrb[36].mxu0 %v1497_v46 }
 0x4e0   :  { %4948 = vmatprep.mubr.msk.bf16.mxu0 %vm784_vm8, %v1495_v48  ;;  %1876 = vmatpush1.bf16.msra.mxu0 %v5831_v17 }
 0x4e1   :  { %1877 = vmatprep.subr.bf16.mxu0 %v6500_v0 }
 0x4e3   :  { %v1485_v34 = vpop.permute.xlu0 %1484 }
 0x4e4   :  { %v1500_v62 = vsel %vm784_vm8, %v7303_v39, %v1485_v34  ;;  %v1487_v63 = vpop.permute.xlu1 %1486  ;;  %1878 = vmatpush1.bf16.msra.mxu0 %v5832_v5 }
 0x4e5   :  { %v1503_v4 = vsel %vm784_vm8, %v7311_v31, %v1487_v63  ;;  %1879 = vmatprep.subr.bf16.mxu0 %v6500_v0 }
 0x4e7   :  { %1633 = vmatmul.mubr.bf16.gmra.mrb[40].mxu0 %v1500_v62 }
 0x4e8   :  { %4949 = vmatprep.mubr.msk.bf16.mxu0 %vm784_vm8, %v1494_v60  ;;  %1880 = vmatpush1.bf16.msra.mxu0 %v5833_v36 }
 0x4e9   :  { %1881 = vmatprep.subr.bf16.mxu0 %v6500_v0 }
 0x4ec   :  { %1882 = vmatpush1.bf16.msra.mxu0 %v5834_v40 }
 0x4ed   :  { %1883 = vmatprep.subr.bf16.mxu0 %v6500_v0 }
 0x4ef   :  { %1641 = vmatmul.mubr.bf16.gmra.mrb[44].mxu0 %v1503_v4 }
 0x4f0   :  { %1884 = vmatpush1.bf16.msra.mxu0 %v5835_v42 }
 0x4f1   :  { %1885 = vmatprep.subr.bf16.mxu0 %v6500_v0 }
 0x4f4   :  { %1886 = vmatpush1.bf16.msra.mxu0 %v5836_v43  ;;  %v1934_v43 = vunpack.c.h.bf16 %v7303_v39 }
 0x4f5   :  { %1887 = vmatprep.subr.bf16.mxu0 %v6500_v0 }
 0x4f8   :  { %1888 = vmatpush1.bf16.msra.mxu0 %v5837_v45 }
 0x4f9   :  { %1889 = vmatprep.subr.bf16.mxu0 %v6500_v0 }
 0x4fc   :  { %1890 = vmatpush1.bf16.msra.mxu0 %v5838_v26 }
 0x4fd   :  { %1891 = vmatprep.subr.bf16.mxu0 %v6500_v0 }
 0x500   :  { %1892 = vmatpush1.bf16.msra.mxu0 %v5839_v51 }
 0x501   :  { %1893 = vmatprep.subr.bf16.mxu0 %v6500_v0 }
 0x504   :  { %1894 = vmatpush1.bf16.msra.mxu0 %v5840_v16 }
 0x505   :  { %1895 = vmatprep.subr.bf16.mxu0 %v6500_v0 }
 0x508   :  { %1896 = vmatpush1.bf16.msra.mxu0 %v5841_v47 }
 0x509   :  { %1897 = vmatprep.subr.bf16.mxu0 %v6500_v0 }
 0x50c   :  { %1898 = vmatpush1.bf16.msra.mxu0 %v5842_v1  ;;  %v1947_v1 = vrot.slane %v1934_v43, 1 }
 0x5b2   :  { %v1626_v50 = vpop.f32.mrb[36].mxu0 }
 0x5b3   :  { %v1627_v10 = vadd.f32 %v4934_v9, %v1626_v50  ;;  %v1628_v7 = vpop.f32.mrb[37].mxu0 }
 0x5b4   :  { %v1629_v12 = vpop.f32.mrb[38].mxu0 }
 0x5b5   :  { %v1630_v14 = vadd.f32 %v4934_v9, %v1629_v12  ;;  %v1631_v49 = vpop.f32.mrb[39].mxu0  ;;  %v1648_v3 = vmax.f32 %v1627_v10, 0.0 }
 0x5b7   :  { %v1649_v2 = vmax.f32 %v1630_v14, 0.0 }
 0x5b9   :  { %v1653_v23 = vpack.c.bf16 %v1649_v2, %v1648_v3 }
 0x5ba   :  { %v1634_v18 = vpop.f32.mrb[40].mxu0 }
 0x5bb   :  { %v1635_v19 = vadd.f32 %v4934_v9, %v1634_v18  ;;  %v1636_v20 = vpop.f32.mrb[41].mxu0  ;;  %5418 = vmatpush3.bf16.msra.mxu1 %v1653_v23 }
 0x5bc   :  { %v1637_v21 = vpop.f32.mrb[42].mxu0  ;;  %5419 = vmatprep.subr.bf16.mxu1 %v6503_v8 }
 0x5bd   :  { %v1638_v24 = vadd.f32 %v4934_v9, %v1637_v21  ;;  %v1639_v55 = vpop.f32.mrb[43].mxu0  ;;  %v1650_v15 = vmax.f32 %v1635_v19, 0.0 }
 0x5bf   :  { %v1651_v25 = vmax.f32 %v1638_v24, 0.0 }
 0x5c1   :  { %v1654_v27 = vpack.c.bf16 %v1651_v25, %v1650_v15 }
 0x5c2   :  { %v1642_v13 = vpop.f32.mrb[44].mxu0 }
 0x5c3   :  { %v1643_v22 = vadd.f32 %v4934_v9, %v1642_v13  ;;  %v1644_v30 = vpop.f32.mrb[45].mxu0  ;;  %5420 = vmatpush3.bf16.msra.mxu1 %v1654_v27 }
 0x5c4   :  { %v1645_v28 = vpop.f32.mrb[46].mxu0  ;;  %5421 = vmatprep.subr.bf16.mxu1 %v6503_v8 }
 0x5c5   :  { %v1652_v33 = vmax.f32 %v1643_v22, 0.0  ;;  %v1646_v35 = vpop.f32.mrb[47].mxu0 }
 0x5c6   :  { %v1932_v35 = vunpack.c.h.bf16 %v7300_v29 }
 0x5c7   :  { %v1655_v37 = vpack.c.bf16 %v1652_v33, %v1652_v33  ;;  %v1931_v33 = vunpack.c.l.bf16 %v7300_v29  ;;  %v1935_v29 = vunpack.c.l.bf16 %v7311_v31 }
 0x5c9   :  { %v1681_v11 = vsel %vm1679_vm12, %v1655_v37, 0  ;;  %v1933_v37 = vunpack.c.l.bf16 %v7303_v39 }
 0x5ca   :  { %5422 = vmatpush3.bf16.msra.mxu1 %v1681_v11  ;;  %v4956_v11 = vld [vmem:[#allocation8] ss:$0 sm:$0xff] }
 0x5cb   :  { %5435 = vmatprep.subr.bf16.mxu1 %v6503_v8  ;;  %v1945_v17 = vrot.slane %v1933_v37, 1 }
 0x5cd   :  { %5424 = vmatmul.mubr.msk.bf16.vlgmr.msra.gmra.mrb[36].mxu1 %vm1669_vm13, %v5828_v6  ;;  %v1942_v6 = vrot.slane %v1931_v33, 1 }
 0x5ce   :  { %5427 = vmatprep.mubr.msk.bf16.mxu1 %vm6504_vm11, %v6503_v8 }
 0x5d5   :  { %5428 = vmatmul.mubr.msk.bf16.gmra.mrb[40].mxu1 %vm1669_vm13, %v5829_v32  ;;  %v1943_v32 = vrot.slane %v1932_v35, 1 }
 0x5d6   :  { %5431 = vmatprep.mubr.msk.bf16.mxu1 %vm6504_vm11, %v6503_v8 }
 0x5d7   :  { %v1944_v40 = vsel %vm559_vm3, %v1942_v6, %v1943_v32  ;;  %v1946_v16 = vsel %vm559_vm3, %v1943_v32, %v1945_v17 }
 0x5dd   :  { %5432 = vmatmul.mubr.msk.bf16.gmra.mrb[44].mxu1 %vm1669_vm13, %v5830_v38 }
 0x5de   :  { %5441 = vmatprep.mubr.msk.bf16.mxu1 %vm6504_vm11, %v6503_v8 }
 0x6a0   :  { %v1717_v41 = vpop.f32.mrb[36].mxu1 }
 0x6a1   :  { %v5425_v44 = vpop.f32.mrb[37].mxu1 }
 0x6a2   :  { %v1720_v53 = vpop.f32.mrb[38].mxu1 }
 0x6a3   :  { %v1739_v54 = vpack.c.bf16 %v1720_v53, %v1717_v41  ;;  %v5426_v56 = vpop.f32.mrb[39].mxu1 }
 0x6a5   :  { %v1745_v57 = vshll.u32 %v1739_v54, 16  ;;  %v1774_v48 = vrot.slane %v1739_v54, 1  ;;  %v1743_v62 = vshrl.u32 %v1739_v54, 16 }
 0x6a7   :  { %v1747_v46 = vrot.slane %v1745_v57, 1 }
 0x6a8   :  { %v1725_v58 = vpop.f32.mrb[40].mxu1 }
 0x6a9   :  { %v5429_v59 = vpop.f32.mrb[41].mxu1  ;;  %v1748_v9 = vor.u32 %v1747_v46, %v1743_v62 }
 0x6aa   :  { %v1728_v52 = vpop.f32.mrb[42].mxu1  ;;  %v1948_v59 = vsel %vm559_vm3, %v1945_v17, %v1947_v1 }
 0x6ab   :  { %v1740_v60 = vpack.c.bf16 %v1728_v52, %v1725_v58  ;;  %v5430_v61 = vpop.f32.mrb[43].mxu1 }
 0x6ad   :  { %v1775_v34 = vrot.slane %v1740_v60, 1  ;;  %v1750_v63 = vshll.u32 %v1740_v60, 16  ;;  %v1754_v2 = vshrl.u32 %v1740_v60, 16 }
 0x6af   :  { %v1776_v4 = vsel %vm559_vm3, %v1774_v48, %v1775_v34  ;;  %v1752_v50 = vrot.slane %v1750_v63, 1 }
 0x6b0   :  { %v1733_v10 = vpop.f32.mrb[44].mxu1  ;;  %4969 = vmatprep.mubr.msk.bf16.mxu0 %vm784_vm8, %v1776_v4 }
 0x6b1   :  { %v1741_v7 = vpack.c.bf16 %v1733_v10, %v1733_v10  ;;  %v5433_v12 = vpop.f32.mrb[45].mxu1  ;;  %v1753_v14 = vsel %vm469_vm1, %v1748_v9, %v1752_v50  ;;  %v1756_v19 = vor.u32 %v1754_v2, %v1752_v50  ;;  %v5844_v2 = vld [vmem:[%s7809_s10 + $0x8] sm:$0xff]  }
 0x6b2   :  { %1765 = vrot.lane.b32.xlu0 %v1753_v14, %s6493_s19  ;;  %v1736_v49 = vpop.f32.mrb[46].mxu1 }
 0x6b3   :  { %v5434_v3 = vpop.f32.mrb[47].mxu1  ;;  %v1758_v23 = vshll.u32 %v1741_v7, 16  ;;  %v1762_v18 = vshrl.u32 %v1741_v7, 16  ;;  %v1777_v55 = vrot.slane %v1741_v7, 1 }
 0x6b4   :  { %v5843_v3 = vld [vmem:[%s7809_s10] sm:$0xff]  }
 0x6b5   :  { %v1760_v20 = vrot.slane %v1758_v23, 1  ;;  %v1778_v27 = vsel %vm559_vm3, %v1775_v34, %v1777_v55  ;;  %v5845_v23 = vld [vmem:[%s7809_s10 + $0x10] ss:$0 sps:$4 sm:$0x33]  }
 0x6b7   :  { %v1761_v21 = vsel %vm469_vm1, %v1756_v19, %v1760_v20  ;;  %v1764_v24 = vor.u32 %v1762_v18, %v1760_v20  ;;  %v5846_v18 = vld [vmem:[%s7810_s9] sm:$0xff]   ;;  %v5847_v19 = vld [vmem:[%s7810_s9 + $0x8] sm:$0xff]   ;;  %v5848_v20 = vld [vmem:[%s7810_s9 + $0x10] sm:$0xff]  }
 0x6b8   :  { %1767 = vrot.lane.b32.xlu1 %v1761_v21, %s6493_s19  ;;  %v5849_v21 = vld [vmem:[%s7810_s9 + $0x18] sm:$0xff]  }
 0x6b9   :  { %1769 = vrot.lane.b32.xlu0 %v1764_v24, %s6493_s19  ;;  %v5850_v24 = vld [vmem:[%s7810_s9 + $0x20] sm:$0xff]  }
 0x724   :  { %v1766_v15 = vpop.permute.xlu0 %1765 }
 0x725   :  { %v1780_v25 = vsel %vm784_vm8, %v1739_v54, %v1766_v15  ;;  %v1949_v54 = vrot.slane %v1935_v29, 1  ;;  %v5852_v15 = vld [vmem:[%s7810_s9 + $0x30] sm:$0xff]  }
 0x726   :  { %1908 = vmatmul.mubr.bf16.vlgmr.msra.gmra.mrb[48].mxu0 %v1780_v25  ;;  %v5853_v25 = vld [vmem:[%s7810_s9 + $0x38] sm:$0xff]  }
 0x727   :  { %4970 = vmatprep.mubr.msk.bf16.mxu0 %vm784_vm8, %v1778_v27  ;;  %v1950_v46 = vsel %vm559_vm3, %v1947_v1, %v1949_v54  ;;  %v5854_v27 = vld [vmem:[%s7810_s9 + $0x40] sm:$0xff]  }
 0x72a   :  { %v1768_v13 = vpop.permute.xlu1 %1767 }
 0x72b   :  { %v1783_v22 = vsel %vm784_vm8, %v1740_v60, %v1768_v13  ;;  %v1770_v30 = vpop.permute.xlu0 %1769  ;;  %v5855_v13 = vld [vmem:[%s7810_s9 + $0x48] sm:$0xff]  }
 0x72c   :  { %v1786_v28 = vsel %vm784_vm8, %v1741_v7, %v1770_v30  ;;  %v5857_v30 = vld [vmem:[%s7810_s9 + $0x58] sm:$0xff]  }
 0x72e   :  { %1916 = vmatmul.mubr.bf16.gmra.mrb[52].mxu0 %v1783_v22  ;;  %v5856_v22 = vld [vmem:[%s7810_s9 + $0x50] sm:$0xff]  }
 0x72f   :  { %4971 = vmatprep.mubr.msk.bf16.mxu0 %vm784_vm8, %v1777_v55  ;;  %v5851_v55 = vld [vmem:[%s7810_s9 + $0x28] sm:$0xff]  }
 0x736   :  { %1924 = vmatmul.mubr.bf16.gmra.mrb[56].mxu0 %v1786_v28 }
 0x7f9   :  { %v1909_v38 = vpop.f32.mrb[48].mxu0 }
 0x7fa   :  { %v1910_v5 = vadd.f32 %v4956_v11, %v1909_v38  ;;  %v1911_v36 = vpop.f32.mrb[49].mxu0 }
 0x7fb   :  { %v1912_v42 = vpop.f32.mrb[50].mxu0 }
 0x7fc   :  { %v1956_v45 = vadd.f32 %v1944_v40, %v1910_v5  ;;  %v1913_v26 = vadd.f32 %v4956_v11, %v1912_v42  ;;  %v1914_v51 = vpop.f32.mrb[51].mxu0 }
 0x7fe   :  { %v1957_v47 = vadd.f32 %v1946_v16, %v1913_v26  ;;  %v1961_v41 = vmax.f32 %v1956_v45, 0.0 }
 0x800   :  { %v1962_v44 = vmax.f32 %v1957_v47, 0.0 }
 0x801   :  { %v1917_v53 = vpop.f32.mrb[52].mxu0 }
 0x802   :  { %v1966_v56 = vpack.c.bf16 %v1962_v44, %v1961_v41  ;;  %v1918_v57 = vadd.f32 %v4956_v11, %v1917_v53  ;;  %v1919_v58 = vpop.f32.mrb[53].mxu0 }
 0x803   :  { %v1920_v52 = vpop.f32.mrb[54].mxu0 }
 0x804   :  { %v1958_v39 = vadd.f32 %v1948_v59, %v1918_v57  ;;  %v1921_v60 = vadd.f32 %v4956_v11, %v1920_v52  ;;  %v1922_v61 = vpop.f32.mrb[55].mxu0  ;;  %5436 = vmatpush3.bf16.msra.mxu1 %v1966_v56 }
 0x805   :  { %5437 = vmatprep.subr.bf16.mxu1 %v6503_v8 }
 0x806   :  { %v1959_v31 = vadd.f32 %v1950_v46, %v1921_v60  ;;  %v1963_v48 = vmax.f32 %v1958_v39, 0.0 }
 0x808   :  { %v1964_v34 = vmax.f32 %v1959_v31, 0.0 }
 0x809   :  { %v1925_v62 = vpop.f32.mrb[56].mxu0 }
 0x80a   :  { %v1967_v63 = vpack.c.bf16 %v1964_v34, %v1963_v48  ;;  %v1926_v4 = vadd.f32 %v4956_v11, %v1925_v62  ;;  %v1927_v9 = vpop.f32.mrb[57].mxu0 }
 0x80b   :  { %v1928_v50 = vpop.f32.mrb[58].mxu0  ;;  %v5876_v9 = vld [vmem:[%s7811_s11 + $0x80] sm:$0xff]  }
 0x80c   :  { %v1960_v10 = vadd.f32 %v1949_v54, %v1926_v4  ;;  %v1929_v7 = vpop.f32.mrb[59].mxu0  ;;  %5438 = vmatpush3.bf16.msra.mxu1 %v1967_v63  ;;  %v7454_v4 = vld [vmem:[#allocation13] sm:$0xff]  }
 0x80d   :  { %5439 = vmatprep.subr.bf16.mxu1 %v6503_v8  ;;  %5459 = vmatprep.mubr.msk.bf16.mxu0 %vm1669_vm13, %v7454_v4  ;;  %v5877_v50 = vld [vmem:[%s7811_s11 + $0x88] sm:$0xff]   ;;  %v5879_v7 = vld [vmem:[%s7811_s11 + $0x98] sm:$0xff]  }
 0x80e   :  { %v1965_v12 = vmax.f32 %v1960_v10, 0.0  ;;  %v5878_v10 = vld [vmem:[%s7811_s11 + $0x90] sm:$0xff]  }
 0x810   :  { %v1968_v14 = vpack.c.bf16 %v1965_v12, %v1965_v12  ;;  %v5880_v12 = vld [vmem:[%s7811_s11 + $0xa0] sm:$0xff]  }
 0x812   :  { %v1992_v49 = vsel %vm1679_vm12, %v1968_v14, 0  ;;  %v5881_v14 = vld [vmem:[%s7811_s11 + $0xa8] sm:$0xff]  }
 0x813   :  { %5440 = vmatpush3.bf16.msra.mxu1 %v1992_v49  ;;  %v4978_v49 = vld [vmem:[#allocation10] ss:$0 sm:$0xff] }
 0x814   :  { %2275 = vmatprep.subr.bf16.mxu1 %v6500_v0 }
 0x816   :  { %5442 = vmatmul.mubr.msk.bf16.vlgmr.msra.gmra.mrb[48].mxu1 %vm1669_vm13, %v5843_v3 }
 0x817   :  { %5445 = vmatprep.mubr.msk.bf16.mxu1 %vm6504_vm11, %v6503_v8  ;;  %2276 = vmatpush1.bf16.msra.mxu1 %v5846_v18 }
 0x818   :  { %2277 = vmatprep.subr.bf16.mxu1 %v6500_v0 }
 0x81b   :  { %2278 = vmatpush1.bf16.msra.mxu1 %v5847_v19 }
 0x81c   :  { %2279 = vmatprep.subr.bf16.mxu1 %v6500_v0 }
 0x81e   :  { %5446 = vmatmul.mubr.msk.bf16.gmra.mrb[52].mxu1 %vm1669_vm13, %v5844_v2 }
 0x81f   :  { %5449 = vmatprep.mubr.msk.bf16.mxu1 %vm6504_vm11, %v6503_v8  ;;  %2280 = vmatpush1.bf16.msra.mxu1 %v5848_v20 }
 0x820   :  { %2281 = vmatprep.subr.bf16.mxu1 %v6500_v0 }
 0x823   :  { %2282 = vmatpush1.bf16.msra.mxu1 %v5849_v21 }
 0x824   :  { %2283 = vmatprep.subr.bf16.mxu1 %v6500_v0 }
 0x826   :  { %5450 = vmatmul.mubr.msk.bf16.gmra.mrb[56].mxu1 %vm1669_vm13, %v5845_v23 }
 0x827   :  { %2284 = vmatpush1.bf16.msra.mxu1 %v5850_v24 }
 0x828   :  { %2285 = vmatprep.subr.bf16.mxu1 %v6500_v0 }
 0x82b   :  { %2286 = vmatpush1.bf16.msra.mxu1 %v5851_v55 }
 0x82c   :  { %2287 = vmatprep.subr.bf16.mxu1 %v6500_v0 }
 0x82f   :  { %2288 = vmatpush1.bf16.msra.mxu1 %v5852_v15 }
 0x830   :  { %2289 = vmatprep.subr.bf16.mxu1 %v6500_v0 }
 0x833   :  { %2290 = vmatpush1.bf16.msra.mxu1 %v5853_v25 }
 0x834   :  { %2291 = vmatprep.subr.bf16.mxu1 %v6500_v0 }
 0x837   :  { %2292 = vmatpush1.bf16.msra.mxu1 %v5854_v27 }
 0x838   :  { %2293 = vmatprep.subr.bf16.mxu1 %v6500_v0 }
 0x83b   :  { %2294 = vmatpush1.bf16.msra.mxu1 %v5855_v13 }
 0x83c   :  { %2295 = vmatprep.subr.bf16.mxu1 %v6500_v0 }
 0x83f   :  { %2296 = vmatpush1.bf16.msra.mxu1 %v5856_v22 }
 0x840   :  { %2297 = vmatprep.subr.bf16.mxu1 %v6500_v0 }
 0x843   :  { %2298 = vmatpush1.bf16.msra.mxu1 %v5857_v30 }
 0x844   :  { %5463 = vmatprep.subr.bf16.mxu1 %v5876_v9 }
 0x8e9   :  { %v2028_v28 = vpop.f32.mrb[48].mxu1 }
 0x8ea   :  { %v5443_v33 = vpop.f32.mrb[49].mxu1 }
 0x8eb   :  { %v2031_v35 = vpop.f32.mrb[50].mxu1 }
 0x8ec   :  { %v2050_v37 = vpack.c.bf16 %v2031_v35, %v2028_v28  ;;  %v5444_v11 = vpop.f32.mrb[51].mxu1 }
 0x8ee   :  { %v2145_v6 = vshll.u32 %v2050_v37, 16  ;;  %v2174_v42 = vrot.slane %v2050_v37, 1  ;;  %v2143_v45 = vshrl.u32 %v2050_v37, 16 }
 0x8f0   :  { %v2147_v40 = vrot.slane %v2145_v6, 1 }
 0x8f1   :  { %v2036_v32 = vpop.f32.mrb[52].mxu1 }
 0x8f2   :  { %v5447_v38 = vpop.f32.mrb[53].mxu1  ;;  %v2148_v0 = vor.u32 %v2147_v40, %v2143_v45  ;;  %v5862_v45 = vld [vmem:[%s7811_s11 + $0x48] sm:$0xff]  }
 0x8f3   :  { %v2039_v17 = vpop.f32.mrb[54].mxu1 }
 0x8f4   :  { %v2051_v5 = vpack.c.bf16 %v2039_v17, %v2036_v32  ;;  %v5448_v36 = vpop.f32.mrb[55].mxu1 }
 0x8f5   :  { %v5860_v36 = vld [vmem:[%s7811_s11 + $0x40] sm:$0xff]  }
 0x8f6   :  { %v2175_v43 = vrot.slane %v2051_v5, 1  ;;  %v2150_v26 = vshll.u32 %v2051_v5, 16  ;;  %v2154_v54 = vshrl.u32 %v2051_v5, 16 }
 0x8f8   :  { %v2176_v51 = vsel %vm559_vm3, %v2174_v42, %v2175_v43  ;;  %v2152_v16 = vrot.slane %v2150_v26, 1  ;;  %v7467_v42 = vld [vmem:[#allocation13 + $0x8] ss:$0 sps:$4 sm:$0x33]   ;;  %v5863_v26 = vld [vmem:[%s7811_s11 + $0x8] sm:$0xff]  }
 0x8f9   :  { %v2044_v29 = vpop.f32.mrb[56].mxu1  ;;  %4991 = vmatprep.mubr.msk.bf16.mxu1 %vm784_vm8, %v2176_v51  ;;  %v5864_v51 = vld [vmem:[%s7811_s11 + $0x50] sm:$0xff]  }
 0x8fa   :  { %v2052_v47 = vpack.c.bf16 %v2044_v29, %v2044_v29  ;;  %v5451_v1 = vpop.f32.mrb[57].mxu1  ;;  %v7435_v41 = vsel %vm469_vm1, %v2148_v0, %v2152_v16  ;;  %v2156_v58 = vor.u32 %v2154_v54, %v2152_v16  ;;  %v5865_v0 = vld [vmem:[%s7811_s11 + $0x10] sm:$0xff]   ;;  %v5866_v16 = vld [vmem:[%s7811_s11 + $0x58] sm:$0xff]  }
 0x8fb   :  { %2165 = vrot.lane.b32.xlu1 %v7435_v41, %s6493_s19  ;;  %v2047_v44 = vpop.f32.mrb[58].mxu1  ;;  %v5867_v29 = vld [vmem:[%s7811_s11 + $0x18] sm:$0xff]   ;;  %v5869_v1 = vld [vmem:[%s7811_s11 + $0x20] sm:$0xff]   ;;  %v5872_v54 = vld [vmem:[%s7811_s11 + $0x70] sm:$0xff]  }
 0x8fc   :  { %v5452_v53 = vpop.f32.mrb[59].mxu1  ;;  %v2158_v56 = vshll.u32 %v2052_v47, 16  ;;  %v2162_v57 = vshrl.u32 %v2052_v47, 16  ;;  %v2177_v60 = vrot.slane %v2052_v47, 1  ;;  %v5870_v44 = vld [vmem:[%s7811_s11 + $0x68] sm:$0xff]  }
 0x8fd   :  { %v5871_v53 = vld [vmem:[%s7811_s11 + $0x28] sm:$0xff]  }
 0x8fe   :  { %v2160_v59 = vrot.slane %v2158_v56, 1  ;;  %v2178_v31 = vsel %vm559_vm3, %v2175_v43, %v2177_v60  ;;  %v5861_v43 = vld [vmem:[%s7811_s11] sm:$0xff]   ;;  %v5873_v56 = vld [vmem:[%s7811_s11 + $0x30] sm:$0xff]  }
 0x900   :  { %v7440_v52 = vsel %vm469_vm1, %v2156_v58, %v2160_v59  ;;  %v7442_v39 = vor.u32 %v2162_v57, %v2160_v59  ;;  %v5874_v57 = vld [vmem:[%s7811_s11 + $0x78] sm:$0xff]   ;;  %v5882_v59 = vld [vmem:[%s7811_s11 + $0xb0] sm:$0xff]  }
 0x901   :  { %2167 = vrot.lane.b32.xlu0 %v7440_v52, %s6493_s19  ;;  %v5875_v58 = vld [vmem:[%s7811_s11 + $0x38] sm:$0xff]  }
 0x902   :  { %2169 = vrot.lane.b32.xlu1 %v7442_v39, %s6493_s19  ;;  %s7812_s19 = sld [smem:[#allocation51_spill]] }
 0x96d   :  { %v2166_v61 = vpop.permute.xlu1 %2165 }
 0x96e   :  { %v2180_v46 = vsel %vm784_vm8, %v2050_v37, %v2166_v61 }
 0x96f   :  { %2308 = vmatmul.mubr.bf16.vlgmr.msra.gmra.mrb[60].mxu1 %v2180_v46 }
 0x970   :  { %4992 = vmatprep.mubr.msk.bf16.mxu1 %vm784_vm8, %v2178_v31  ;;  %5464 = vmatpush3.bf16.msra.mxu1 %v5876_v9 }
 0x971   :  { %5465 = vmatprep.subr.bf16.mxu1 %v5877_v50 }
 0x973   :  { %v2168_v48 = vpop.permute.xlu0 %2167 }
 0x974   :  { %v2183_v34 = vsel %vm784_vm8, %v2051_v5, %v2168_v48  ;;  %v2170_v62 = vpop.permute.xlu1 %2169  ;;  %5466 = vmatpush3.bf16.msra.mxu1 %v5877_v50 }
 0x975   :  { %v2186_v63 = vsel %vm784_vm8, %v2052_v47, %v2170_v62  ;;  %5467 = vmatprep.subr.bf16.mxu1 %v5878_v10  ;;  %v5868_v47 = vld [vmem:[%s7811_s11 + $0x60] sm:$0xff]  }
 0x977   :  { %2316 = vmatmul.mubr.bf16.gmra.mrb[64].mxu1 %v2183_v34 }
 0x978   :  { %4993 = vmatprep.mubr.msk.bf16.mxu1 %vm784_vm8, %v2177_v60  ;;  %5468 = vmatpush3.bf16.msra.mxu1 %v5878_v10  ;;  %v5883_v60 = vld [vmem:[%s7811_s11 + $0xb8] sm:$0xff]  }
 0x979   :  { %5469 = vmatprep.subr.bf16.mxu1 %v5879_v7 }
 0x97c   :  { %5470 = vmatpush3.bf16.msra.mxu1 %v5879_v7 }
 0x97d   :  { %5471 = vmatprep.subr.bf16.mxu1 %v5880_v12 }
 0x97f   :  { %2324 = vmatmul.mubr.bf16.gmra.mrb[68].mxu1 %v2186_v63 }
 0x980   :  { %5472 = vmatpush3.bf16.msra.mxu1 %v5880_v12 }
 0x981   :  { %5473 = vmatprep.subr.bf16.mxu1 %v5881_v14 }
 0x984   :  { %5474 = vmatpush3.bf16.msra.mxu1 %v5881_v14 }
 0x985   :  { %5475 = vmatprep.subr.bf16.mxu1 %v5882_v59 }
 0x988   :  { %5476 = vmatpush3.bf16.msra.mxu1 %v5882_v59  ;;  %v5905_v59 = vld [vmem:[%s7814_s4 + $0x20] sm:$0xff]  }
 0x989   :  { %5477 = vmatprep.subr.bf16.mxu1 %v5883_v60 }
 0x98c   :  { %5478 = vmatpush3.bf16.msra.mxu1 %v5883_v60  ;;  %v5025_v60 = vld [vmem:[#allocation14] ss:$0 sm:$0xff] }
 0xa42   :  { %v2309_v3 = vpop.f32.mrb[60].mxu1 }
 0xa43   :  { %v2310_v2 = vadd.f32 %v4978_v49, %v2309_v3  ;;  %v2311_v23 = vpop.f32.mrb[61].mxu1 }
 0xa44   :  { %v2312_v18 = vpop.f32.mrb[62].mxu1 }
 0xa45   :  { %v2313_v19 = vadd.f32 %v4978_v49, %v2312_v18  ;;  %v2314_v20 = vpop.f32.mrb[63].mxu1  ;;  %v2331_v21 = vmax.f32 %v2310_v2, 0.0 }
 0xa46   :  { %v5885_v20 = vld [vmem:[%s7812_s19 + $0x8] sm:$0xff]  }
 0xa47   :  { %v2332_v24 = vmax.f32 %v2313_v19, 0.0  ;;  %v2679_v19 = vsel %vm1679_vm12, %v7442_v39, 0 }
 0xa49   :  { %v2336_v55 = vpack.c.bf16 %v2332_v24, %v2331_v21  ;;  %v5887_v21 = vld [vmem:[%s7812_s19 + $0x18] sm:$0xff]  }
 0xa4a   :  { %v2317_v15 = vpop.f32.mrb[64].mxu1 }
 0xa4b   :  { %v2318_v25 = vadd.f32 %v4978_v49, %v2317_v15  ;;  %v2319_v27 = vpop.f32.mrb[65].mxu1  ;;  %5453 = vmatprep.subr.bf16.mxu0 %v2336_v55 }
 0xa4c   :  { %v2320_v13 = vpop.f32.mrb[66].mxu1  ;;  %5454 = vmatpush3.bf16.msra.mxu0 %v2336_v55 }
 0xa4d   :  { %v2321_v22 = vadd.f32 %v4978_v49, %v2320_v13  ;;  %v2322_v30 = vpop.f32.mrb[67].mxu1  ;;  %v2333_v28 = vmax.f32 %v2318_v25, 0.0  ;;  %v4998_v25 = vld [vmem:[#allocation11] ss:$0 sm:$0xff] }
 0xa4f   :  { %v2334_v33 = vmax.f32 %v2321_v22, 0.0 }
 0xa51   :  { %v2337_v35 = vpack.c.bf16 %v2334_v33, %v2333_v28 }
 0xa52   :  { %v2325_v37 = vpop.f32.mrb[68].mxu1 }
 0xa53   :  { %v2326_v11 = vadd.f32 %v4978_v49, %v2325_v37  ;;  %v2327_v6 = vpop.f32.mrb[69].mxu1  ;;  %5455 = vmatprep.subr.bf16.mxu0 %v2337_v35 }
 0xa54   :  { %v2328_v32 = vpop.f32.mrb[70].mxu1  ;;  %5456 = vmatpush3.bf16.msra.mxu0 %v2337_v35 }
 0xa55   :  { %v2335_v38 = vmax.f32 %v2326_v11, 0.0  ;;  %v2329_v17 = vpop.f32.mrb[71].mxu1 }
 0xa57   :  { %v2338_v5 = vpack.c.bf16 %v2335_v38, %v2335_v38 }
 0xa59   :  { %5699 = vmatprep.subr.msk.bf16.mxu0 %vm1679_vm12, %v2338_v5  ;;  %v2354_v40 = vsel %vm1679_vm12, %v2338_v5, 0 }
 0xa5a   :  { %5458 = vmatpush3.bf16.msra.mxu0 %v2354_v40 }
 0xa5b   :  { %5190 = vmatprep.subr.bf16.mxu0 %v5860_v36 }
 0xa5d   :  { %5460 = vmatmul.mubr.msk.bf16.vlgmr.msra.gmra.mrb[60].mxu0 %vm1669_vm13, %v7467_v42 }
 0xa5e   :  { %5191 = vmatpush3.bf16.msra.mxu0 %v5861_v43 }
 0xa5f   :  { %5192 = vmatprep.subr.bf16.mxu0 %v5862_v45 }
 0xa62   :  { %5193 = vmatpush3.bf16.msra.mxu0 %v5863_v26 }
 0xa63   :  { %5194 = vmatprep.subr.bf16.mxu0 %v5864_v51 }
 0xa66   :  { %5195 = vmatpush3.bf16.msra.mxu0 %v5865_v0 }
 0xa67   :  { %5196 = vmatprep.subr.bf16.mxu0 %v5866_v16  ;;  %v5888_v16 = vld [vmem:[%s7813_s30] sm:$0xff]  }
 0xa6a   :  { %5197 = vmatpush3.bf16.msra.mxu0 %v5867_v29  ;;  %v5891_v29 = vld [vmem:[%s7814_s4 + $0x40] sm:$0xff]  }
 0xa6b   :  { %5198 = vmatprep.subr.bf16.mxu0 %v5868_v47  ;;  %v5893_v47 = vld [vmem:[%s7814_s4] sm:$0xff]  }
 0xa6e   :  { %5199 = vmatpush3.bf16.msra.mxu0 %v5869_v1  ;;  %v5894_v1 = vld [vmem:[%s7814_s4 + $0x48] sm:$0xff]  }
 0xa6f   :  { %5200 = vmatprep.subr.bf16.mxu0 %v5870_v44  ;;  %v5896_v44 = vld [vmem:[%s7814_s4 + $0x8] sm:$0xff]  }
 0xa72   :  { %5201 = vmatpush3.bf16.msra.mxu0 %v5871_v53  ;;  %v5897_v53 = vld [vmem:[%s7814_s4 + $0x50] sm:$0xff]  }
 0xa73   :  { %5202 = vmatprep.subr.bf16.mxu0 %v5872_v54  ;;  %v5899_v54 = vld [vmem:[%s7814_s4 + $0x10] sm:$0xff]  }
 0xa76   :  { %5203 = vmatpush3.bf16.msra.mxu0 %v5873_v56  ;;  %v5900_v56 = vld [vmem:[%s7814_s4 + $0x58] sm:$0xff]  }
 0xa77   :  { %5204 = vmatprep.subr.bf16.mxu0 %v5874_v57  ;;  %v5902_v57 = vld [vmem:[%s7814_s4 + $0x18] sm:$0xff]  }
 0xa7a   :  { %5205 = vmatpush3.bf16.msra.mxu0 %v5875_v58  ;;  %v5903_v58 = vld [vmem:[%s7814_s4 + $0x60] sm:$0xff]  }
 0xa7b   :  { %5483 = vmatprep.subr.bf16.mxu0 %v7435_v41 }
 0xb30   :  { %v5461_v61 = vpop.f32.mrb[60].mxu0 }
 0xb31   :  { %v2405_v46 = vpack.c.bf16 %v5461_v61, %v5461_v61  ;;  %v2390_v31 = vpop.f32.mrb[61].mxu0 }
 0xb32   :  { %v5462_v48 = vpop.f32.mrb[62].mxu0 }
 0xb33   :  { %v2393_v34 = vpop.f32.mrb[63].mxu0  ;;  %v2414_v63 = vshll.u32 %v2405_v46, 16  ;;  %v2426_v10 = vrot.slane %v2405_v46, 1  ;;  %v2418_v2 = vshrl.u32 %v2405_v46, 16 }
 0xb34   :  { %v2404_v62 = vpack.c.bf16 %v2393_v34, %v2390_v31 }
 0xb35   :  { %v2416_v49 = vrot.slane %v2414_v63, 1 }
 0xb36   :  { %v2409_v9 = vshll.u32 %v2404_v62, 16  ;;  %v2425_v50 = vrot.slane %v2404_v62, 1  ;;  %v2407_v12 = vshrl.u32 %v2404_v62, 16 }
 0xb37   :  { %v2420_v18 = vor.u32 %v2418_v2, %v2416_v49 }
 0xb38   :  { %v2427_v7 = vsel %vm559_vm3, %v2425_v50, %v2426_v10  ;;  %v2411_v14 = vrot.slane %v2409_v9, 1 }
 0xb39   :  { %5479 = vmatprep.mubr.bf16.mxu1 %v2427_v7 }
 0xb3a   :  { %5480 = vmatmul.mubr.bf16.vlgmr.msra.gmra.mrb[72].mxu1 %v2426_v10  ;;  %v2412_v3 = vor.u32 %v2411_v14, %v2407_v12 }
 0xb3c   :  { %v2417_v23 = vsel %vm469_vm1, %v2412_v3, %v2416_v49 }
 0xb3d   :  { %2612 = vmatprep.mubr.bf16.mxu0 %v2417_v23 }
 0xb3e   :  { %2613 = vmatmul.mubr.bf16.vlgmr.msra.gmra.mrb[64].mxu0 %v2404_v62 }
 0xb3f   :  { %5484 = vmatpush3.bf16.msra.mxu0 %v7435_v41  ;;  %2620 = vmatprep.mubr.bf16.mxu0 %v2420_v18  ;;  %v5884_v41 = vld [vmem:[%s7812_s19] sm:$0xff]  }
 0xb40   :  { %5485 = vmatprep.subr.bf16.mxu0 %v7440_v52  ;;  %5493 = vmatprep.subr.bf16.mxu1 %v5884_v41 }
 0xb41   :  { %5494 = vmatpush3.bf16.msra.mxu1 %v5884_v41 }
 0xb42   :  { %5495 = vmatprep.subr.bf16.mxu1 %v5885_v20 }
 0xb43   :  { %5486 = vmatpush3.bf16.msra.mxu0 %v7440_v52  ;;  %v5886_v52 = vld [vmem:[%s7812_s19 + $0x10] sm:$0xff]  }
 0xb44   :  { %5700 = vmatprep.subr.msk.bf16.mxu0 %vm1679_vm12, %v7442_v39 }
 0xb45   :  { %5496 = vmatpush3.bf16.msra.mxu1 %v5885_v20  ;;  %v5890_v20 = vld [vmem:[%s7814_s4 + $0x80] sm:$0xff]  }
 0xb46   :  { %2621 = vmatmul.mubr.bf16.gmra.mrb[68].mxu0 %v2405_v46  ;;  %5497 = vmatprep.subr.bf16.mxu1 %v5886_v52 }
 0xb47   :  { %5488 = vmatpush3.bf16.msra.mxu0 %v2679_v19  ;;  %5489 = vmatprep.mubr.msk.bf16.mxu0 %vm1669_vm13, %v7454_v4 }
 0xb49   :  { %5498 = vmatpush3.bf16.msra.mxu1 %v5886_v52 }
 0xb4a   :  { %5499 = vmatprep.subr.bf16.mxu1 %v5887_v21 }
 0xb4d   :  { %5500 = vmatpush3.bf16.msra.mxu1 %v5887_v21  ;;  %v5889_v21 = vld [vmem:[%s7813_s30 + $0x8] ss:$0 sps:$4 sm:$0x33]  }
 0xb4e   :  { %5490 = vmatmul.mubr.msk.bf16.vlgmr.msra.gmra.mrb[72].mxu0 %vm1669_vm13, %v7467_v42  ;;  %5243 = vmatprep.subr.bf16.mxu1 %v5891_v29 }
 0xb4f   :  { %5509 = vmatprep.mubr.msk.bf16.mxu0 %vm2842_vm14, %v5888_v16 }
 0xc0d   :  { %v5481_v39 = vpop.f32.mrb[72].mxu1 }
 0xc0e   :  { %v2662_v24 = vpop.f32.mrb[73].mxu1 }
 0xc0f   :  { %v5482_v55 = vpop.f32.mrb[74].mxu1 }
 0xc10   :  { %v2665_v15 = vpop.f32.mrb[75].mxu1  ;;  %v5898_v55 = vld [vmem:[%s7814_s4 + $0x98] sm:$0xff]  }
 0xc11   :  { %v5206_v4 = vpop.f32.mrb[64].mxu0 }
 0xc12   :  { %v5207_v27 = vpop.f32.mrb[65].mxu0 }
 0xc13   :  { %v5208_v13 = vadd.f32 %v5207_v27, %v5206_v4  ;;  %v5209_v22 = vpop.f32.mrb[66].mxu0  ;;  %v5904_v4 = vld [vmem:[%s7814_s4 + $0xa8] sm:$0xff]   ;;  %v5907_v27 = vld [vmem:[%s7814_s4 + $0xb0] sm:$0xff]  }
 0xc14   :  { %v5210_v30 = vpop.f32.mrb[67].mxu0 }
 0xc15   :  { %v2615_v28 = vadd.f32 %v5208_v13, %v4998_v25  ;;  %v5211_v33 = vadd.f32 %v5210_v30, %v5209_v22  ;;  %v5908_v13 = vld [vmem:[%s7814_s4 + $0x28] sm:$0xff]   ;;  %v5909_v22 = vld [vmem:[%s7814_s4 + $0x70] sm:$0xff]   ;;  %v5910_v30 = vld [vmem:[%s7814_s4 + $0xb8] sm:$0xff]  }
 0xc17   :  { %v2663_v35 = vadd.f32 %v2662_v24, %v2615_v28  ;;  %v2618_v37 = vadd.f32 %v5211_v33, %v4998_v25  ;;  %v5895_v24 = vld [vmem:[%s7814_s4 + $0x90] sm:$0xff]   ;;  %v5912_v33 = vld [vmem:[%s7814_s4 + $0x78] sm:$0xff]  }
 0xc18   :  { %v5911_v28 = vld [vmem:[%s7814_s4 + $0x30] sm:$0xff]  }
 0xc19   :  { %v2666_v11 = vadd.f32 %v2665_v15, %v2618_v37  ;;  %v5212_v6 = vpop.f32.mrb[68].mxu0  ;;  %v5901_v15 = vld [vmem:[%s7814_s4 + $0xa0] sm:$0xff]  }
 0xc1a   :  { %v5213_v32 = vpop.f32.mrb[69].mxu0 }
 0xc1b   :  { %v5214_v38 = vadd.f32 %v5213_v32, %v5212_v6  ;;  %v5215_v17 = vpop.f32.mrb[70].mxu0 }
 0xc1c   :  { %v5216_v5 = vpop.f32.mrb[71].mxu0 }
 0xc1d   :  { %v2623_v36 = vadd.f32 %v5214_v38, %v4998_v25  ;;  %v5906_v25 = vld [vmem:[%s7814_s4 + $0x68] sm:$0xff]  }
 0xc1f   :  { %v2671_v40 = vadd.f32 %v5481_v39, %v2623_v36  ;;  %v5892_v39 = vld [vmem:[%s7814_s4 + $0x88] sm:$0xff]  }
 0xc21   :  { %v5491_v42 = vpop.f32.mrb[72].mxu0 }
 0xc22   :  { %v2715_v43 = vpop.f32.mrb[73].mxu0  ;;  %v2730_v0 = vpack.c.bf16 %v5491_v42, %v5491_v42 }
 0xc23   :  { %v5492_v45 = vpop.f32.mrb[74].mxu0 }
 0xc24   :  { %v2718_v26 = vpop.f32.mrb[75].mxu0 }
 0xc25   :  { %v2729_v51 = vpack.c.bf16 %v2718_v26, %v2715_v43 }
 0xc27   :  { %5501 = vmatprep.mubr.msk.bf16.mxu1 %vm784_vm8, %v2729_v51 }
 0xc28   :  { %5502 = vmatmul.mubr.msk.bf16.vlgmr.msra.gmra.mrb[76].mxu1 %vm784_vm8, %v2730_v0 }
 0xc29   :  { %5244 = vmatpush3.bf16.msra.mxu1 %v5893_v47 }
 0xc2a   :  { %5245 = vmatprep.subr.bf16.mxu1 %v5894_v1  ;;  %v5917_v1 = vld [vmem:[%s7815_s15 + $0x40] sm:$0xff]  }
 0xc2d   :  { %5246 = vmatpush3.bf16.msra.mxu1 %v5896_v44  ;;  %v5918_v44 = vld [vmem:[%s7815_s15] sm:$0xff]  }
 0xc2e   :  { %5247 = vmatprep.subr.bf16.mxu1 %v5897_v53  ;;  %v5920_v53 = vld [vmem:[%s7815_s15 + $0x48] sm:$0xff]  }
 0xc31   :  { %5248 = vmatpush3.bf16.msra.mxu1 %v5899_v54  ;;  %v5921_v54 = vld [vmem:[%s7815_s15 + $0x8] sm:$0xff]  }
 0xc32   :  { %5249 = vmatprep.subr.bf16.mxu1 %v5900_v56  ;;  %v5923_v56 = vld [vmem:[%s7815_s15 + $0x50] sm:$0xff]  }
 0xc35   :  { %5250 = vmatpush3.bf16.msra.mxu1 %v5902_v57  ;;  %v5924_v57 = vld [vmem:[%s7815_s15 + $0x10] sm:$0xff]  }
 0xc36   :  { %5251 = vmatprep.subr.bf16.mxu1 %v5903_v58  ;;  %v5926_v58 = vld [vmem:[%s7815_s15 + $0x58] sm:$0xff]  }
 0xc39   :  { %5252 = vmatpush3.bf16.msra.mxu1 %v5905_v59  ;;  %v5927_v59 = vld [vmem:[%s7815_s15 + $0x18] sm:$0xff]  }
 0xc3a   :  { %5253 = vmatprep.subr.bf16.mxu1 %v5906_v25 }
 0xc3d   :  { %5254 = vmatpush3.bf16.msra.mxu1 %v5908_v13  ;;  %v5915_v13 = vld [vmem:[%s7815_s15 + $0x80] sm:$0xff]  }
 0xc3e   :  { %5255 = vmatprep.subr.bf16.mxu1 %v5909_v22  ;;  %v5916_v22 = vld [vmem:[%s7815_s15 + $0x88] sm:$0xff]  }
 0xc41   :  { %5256 = vmatpush3.bf16.msra.mxu1 %v5911_v28  ;;  %v5922_v28 = vld [vmem:[%s7815_s15 + $0x98] sm:$0xff]  }
 0xc42   :  { %5257 = vmatprep.subr.bf16.mxu1 %v5912_v33  ;;  %v5925_v33 = vld [vmem:[%s7815_s15 + $0xa0] sm:$0xff]  }
 0xcfb   :  { %v5503_v61 = vpop.f32.mrb[76].mxu1 }
 0xcfc   :  { %v2810_v46 = vadd.f32 %v5503_v61, %v5025_v60  ;;  %v2801_v31 = vpop.f32.mrb[77].mxu1  ;;  %v5930_v61 = vld [vmem:[%s7815_s15 + $0x20] sm:$0xff]  }
 0xcfd   :  { %v2802_v48 = vadd.f32 %v5025_v60, %v2801_v31  ;;  %v5504_v34 = vpop.f32.mrb[78].mxu1 }
 0xcfe   :  { %v2821_v62 = vrot.slane %v2810_v46, 1  ;;  %v2804_v63 = vpop.f32.mrb[79].mxu1 }
 0xcff   :  { %v2805_v9 = vadd.f32 %v5025_v60, %v2804_v63  ;;  %v2818_v10 = vrot.slane %v2802_v48, 1  ;;  %v5929_v60 = vld [vmem:[%s7815_s15 + $0x60] sm:$0xff]   ;;  %v5036_v63 = vld [vmem:[#allocation16] ss:$0 sm:$0xff] }
 0xd00   :  { %v2828_v50 = vadd.f32 %v2821_v62, %v2671_v40 }
 0xd01   :  { %v2819_v7 = vrot.slane %v2805_v9, 1 }
 0xd02   :  { %v2831_v2 = vmax.f32 %v2828_v50, 0.0 }
 0xd03   :  { %v2820_v12 = vsel %vm559_vm3, %v2818_v10, %v2819_v7  ;;  %v2822_v14 = vsel %vm559_vm3, %v2819_v7, %v2821_v62 }
 0xd04   :  { %v2826_v49 = vadd.f32 %v2820_v12, %v2663_v35  ;;  %v2827_v3 = vadd.f32 %v2822_v14, %v2666_v11  ;;  %v2833_v41 = vpack.c.bf16 %v2831_v2, %v2831_v2  ;;  %v5913_v35 = vld [vmem:[%s7814_s4 + $0x38] sm:$0xff]  }
 0xd05   :  { %5258 = vmatpush3.bf16.msra.mxu1 %v5913_v35  ;;  %v5928_v35 = vld [vmem:[%s7815_s15 + $0xa8] sm:$0xff]  }
 0xd06   :  { %v2829_v23 = vmax.f32 %v2826_v49, 0.0  ;;  %v2830_v18 = vmax.f32 %v2827_v3, 0.0  ;;  %v2850_v52 = vsel %vm1679_vm12, %v2833_v41, 0  ;;  %5284 = vmatprep.subr.bf16.mxu1 %v5917_v1 }
 0xd08   :  { %v2832_v19 = vpack.c.bf16 %v2830_v18, %v2829_v23 }
 0xd0a   :  { %5505 = vmatprep.subr.bf16.mxu0 %v2832_v19 }
 0xd0b   :  { %5506 = vmatpush3.bf16.msra.mxu0 %v2832_v19 }
 0xd0c   :  { %5701 = vmatprep.subr.msk.bf16.mxu0 %vm1679_vm12, %v2833_v41 }
 0xd0f   :  { %5508 = vmatpush3.bf16.msra.mxu0 %v2850_v52 }
 0xd10   :  { %5513 = vmatprep.subr.bf16.mxu0 %v5890_v20 }
 0xd12   :  { %5510 = vmatmul.mubr.msk.bf16.vlgmr.msra.gmra.mrb[76].mxu0 %vm2842_vm14, %v5889_v21 }
 0xd13   :  { %5514 = vmatpush3.bf16.msra.mxu0 %v5890_v20 }
 0xd14   :  { %5515 = vmatprep.subr.bf16.mxu0 %v5892_v39 }
 0xd17   :  { %5516 = vmatpush3.bf16.msra.mxu0 %v5892_v39 }
 0xd18   :  { %5517 = vmatprep.subr.bf16.mxu0 %v5895_v24 }
 0xd1b   :  { %5518 = vmatpush3.bf16.msra.mxu0 %v5895_v24 }
 0xd1c   :  { %5519 = vmatprep.subr.bf16.mxu0 %v5898_v55 }
 0xd1f   :  { %5520 = vmatpush3.bf16.msra.mxu0 %v5898_v55 }
 0xd20   :  { %5521 = vmatprep.subr.bf16.mxu0 %v5901_v15 }
 0xd23   :  { %5522 = vmatpush3.bf16.msra.mxu0 %v5901_v15 }
 0xd24   :  { %5523 = vmatprep.subr.bf16.mxu0 %v5904_v4 }
 0xd27   :  { %5524 = vmatpush3.bf16.msra.mxu0 %v5904_v4 }
 0xd28   :  { %5525 = vmatprep.subr.bf16.mxu0 %v5907_v27 }
 0xd2b   :  { %5526 = vmatpush3.bf16.msra.mxu0 %v5907_v27  ;;  %v7564_v27 = vld [vmem:[%s7816_s16] sm:$0x3f]  }
 0xd2c   :  { %5527 = vmatprep.subr.bf16.mxu0 %v5910_v30 }
 0xd2f   :  { %5528 = vmatpush3.bf16.msra.mxu0 %v5910_v30  ;;  %v5919_v30 = vld [vmem:[%s7815_s15 + $0x90] sm:$0xff]  }
 0xd30   :  { %5533 = vmatprep.subr.bf16.mxu0 %v6503_v8 }
 0xde5   :  { %v5511_v37 = vpop.f32.mrb[76].mxu0 }
 0xde6   :  { %v2901_v11 = vpack.c.bf16 %v5511_v37, %v5511_v37  ;;  %v2886_v6 = vpop.f32.mrb[77].mxu0  ;;  %v5931_v37 = vld [vmem:[%s7815_s15 + $0xb0] sm:$0xff]  }
 0xde7   :  { %v5512_v32 = vpop.f32.mrb[78].mxu0 }
 0xde8   :  { %v2889_v38 = vpop.f32.mrb[79].mxu0  ;;  %v3029_v5 = vshll.u32 %v2901_v11, 16  ;;  %v3041_v42 = vrot.slane %v2901_v11, 1  ;;  %v3033_v16 = vshrl.u32 %v2901_v11, 16  ;;  %v5934_v32 = vld [vmem:[%s7815_s15 + $0xb8] sm:$0xff]  }
 0xde9   :  { %v2900_v17 = vpack.c.bf16 %v2889_v38, %v2886_v6  ;;  %v5933_v6 = vld [vmem:[%s7815_s15 + $0x28] sm:$0xff]   ;;  %v5935_v38 = vld [vmem:[%s7815_s15 + $0x70] sm:$0xff]  }
 0xdea   :  { %v3031_v51 = vrot.slane %v3029_v5, 1  ;;  %v5937_v5 = vld [vmem:[%s7815_s15 + $0x78] sm:$0xff]  }
 0xdeb   :  { %v3024_v36 = vshll.u32 %v2900_v17, 16  ;;  %v3040_v40 = vrot.slane %v2900_v17, 1  ;;  %v3022_v45 = vshrl.u32 %v2900_v17, 16 }
 0xdec   :  { %v7548_v47 = vor.u32 %v3033_v16, %v3031_v51 }
 0xded   :  { %v3042_v43 = vsel %vm559_vm3, %v3040_v40, %v3041_v42  ;;  %v3026_v26 = vrot.slane %v3024_v36, 1  ;;  %v5938_v36 = vld [vmem:[%s7815_s15 + $0x38] sm:$0xff]  }
 0xdee   :  { %5529 = vmatprep.mubr.bf16.mxu0 %v3042_v43 }
 0xdef   :  { %5530 = vmatmul.mubr.bf16.vlgmr.msra.gmra.mrb[80].mxu0 %v3041_v42  ;;  %v3027_v0 = vor.u32 %v3026_v26, %v3022_v45 }
 0xdf0   :  { %5537 = vmatprep.mubr.msk.bf16.mxu0 %vm6504_vm11, %v6503_v8 }
 0xdf1   :  { %v7545_v29 = vsel %vm469_vm1, %v3027_v0, %v3031_v51  ;;  %vm4659_vm1 = vcmask 64512  }
 0xdf2   :  { %3227 = vmatprep.mubr.bf16.mxu1 %v7545_v29 }
 0xdf3   :  { %3228 = vmatmul.mubr.bf16.vlgmr.msra.gmra.mrb[80].mxu1 %v2900_v17  ;;  %v5936_v17 = vld [vmem:[%s7815_s15 + $0x30] sm:$0xff]  }
 0xdf4   :  { %3235 = vmatprep.mubr.bf16.mxu1 %v7548_v47  ;;  %5285 = vmatpush3.bf16.msra.mxu1 %v5918_v44 }
 0xdf5   :  { %5286 = vmatprep.subr.bf16.mxu1 %v5920_v53  ;;  %v5939_v53 = vld [vmem:[%s7817_s18] sm:$0xff]  }
 0xdf8   :  { %5287 = vmatpush3.bf16.msra.mxu1 %v5921_v54  ;;  %v3593_v54 = vsel %vm1679_vm12, %v7548_v47, 0  ;;  %v5942_v47 = vld [vmem:[%s7817_s18 + $0x18] sm:$0xff]  }
 0xdf9   :  { %5288 = vmatprep.subr.bf16.mxu1 %v5923_v56  ;;  %v5940_v56 = vld [vmem:[%s7817_s18 + $0x8] sm:$0xff]  }
 0xdfb   :  { %3236 = vmatmul.mubr.bf16.gmra.mrb[84].mxu1 %v2901_v11  ;;  %v5932_v11 = vld [vmem:[%s7815_s15 + $0x68] sm:$0xff]  }
 0xdfc   :  { %5289 = vmatpush3.bf16.msra.mxu1 %v5924_v57  ;;  %v5943_v57 = vld [vmem:[%s7817_s18 + $0x20] sm:$0xff]  }
 0xdfd   :  { %5290 = vmatprep.subr.bf16.mxu1 %v5926_v58  ;;  %v5944_v58 = vld [vmem:[%s7817_s18 + $0x28] sm:$0xff]  }
 0xe00   :  { %5291 = vmatpush3.bf16.msra.mxu1 %v5927_v59  ;;  %v5945_v59 = vld [vmem:[%s7817_s18 + $0x30] sm:$0xff]  }
 0xe01   :  { %5292 = vmatprep.subr.bf16.mxu1 %v5929_v60  ;;  %v5946_v60 = vld [vmem:[%s7817_s18 + $0x38] sm:$0xff]  }
 0xe04   :  { %5293 = vmatpush3.bf16.msra.mxu1 %v5930_v61 }
 0xe05   :  { %5294 = vmatprep.subr.bf16.mxu1 %v5932_v11 }
 0xe08   :  { %5295 = vmatpush3.bf16.msra.mxu1 %v5933_v6 }
 0xe09   :  { %5296 = vmatprep.subr.bf16.mxu1 %v5935_v38 }
 0xe0c   :  { %5297 = vmatpush3.bf16.msra.mxu1 %v5936_v17  ;;  %v5949_v17 = vld [vmem:[%s7818_s25 + $0x40] sm:$0xff]  }
 0xe0d   :  { %5298 = vmatprep.subr.bf16.mxu1 %v5937_v5 }
 0xe10   :  { %5299 = vmatpush3.bf16.msra.mxu1 %v5938_v36  ;;  %v5947_v36 = vld [vmem:[%s7819_s13] sm:$0x3f]  }
 0xe11   :  { %5569 = vmatprep.subr.bf16.mxu1 %v6503_v8 }
 0xec2   :  { %v5531_v46 = vpop.f32.mrb[80].mxu0 }
 0xec3   :  { %v3277_v31 = vpop.f32.mrb[81].mxu0 }
 0xec4   :  { %v5532_v48 = vpop.f32.mrb[82].mxu0 }
 0xec5   :  { %v3280_v34 = vpop.f32.mrb[83].mxu0 }
 0xec6   :  { %v5259_v62 = vpop.f32.mrb[80].mxu1 }
 0xec7   :  { %v5260_v9 = vpop.f32.mrb[81].mxu1 }
 0xec8   :  { %v5261_v50 = vadd.f32 %v5260_v9, %v5259_v62  ;;  %v5262_v10 = vpop.f32.mrb[82].mxu1  ;;  %v5063_v62 = vld [vmem:[#allocation17] ss:$0 sm:$0xff] }
 0xec9   :  { %v5263_v7 = vpop.f32.mrb[83].mxu1 }
 0xeca   :  { %v3230_v12 = vadd.f32 %v5261_v50, %v5036_v63  ;;  %v5264_v14 = vadd.f32 %v5263_v7, %v5262_v10 }
 0xecc   :  { %v3278_v49 = vadd.f32 %v3277_v31, %v3230_v12  ;;  %v3233_v3 = vadd.f32 %v5264_v14, %v5036_v63 }
 0xece   :  { %v3281_v2 = vadd.f32 %v3280_v34, %v3233_v3  ;;  %v5265_v23 = vpop.f32.mrb[84].mxu1  ;;  %v3291_v19 = vmax.f32 %v3278_v49, 0.0 }
 0xecf   :  { %v5266_v18 = vpop.f32.mrb[85].mxu1 }
 0xed0   :  { %v3292_v41 = vmax.f32 %v3281_v2, 0.0  ;;  %v5267_v20 = vadd.f32 %v5266_v18, %v5265_v23  ;;  %v5268_v52 = vpop.f32.mrb[86].mxu1 }
 0xed1   :  { %v5269_v21 = vpop.f32.mrb[87].mxu1  ;;  %v5950_v52 = vld [vmem:[%s7818_s25 + $0x88] sm:$0xff]  }
 0xed2   :  { %v3294_v39 = vpack.c.bf16 %v3292_v41, %v3291_v19  ;;  %v3238_v24 = vadd.f32 %v5267_v20, %v5036_v63  ;;  %v5948_v20 = vld [vmem:[%s7818_s25 + $0x80] sm:$0xff]   ;;  %v5953_v21 = vld [vmem:[%s7818_s25 + $0x90] sm:$0xff]  }
 0xed4   :  { %v3286_v55 = vadd.f32 %v5531_v46, %v3238_v24  ;;  %5534 = vmatpush3.bf16.msra.mxu0 %v3294_v39  ;;  %v5956_v39 = vld [vmem:[%s7818_s25 + $0x98] sm:$0xff]   ;;  %v5959_v24 = vld [vmem:[%s7818_s25 + $0xa0] sm:$0xff]  }
 0xed5   :  { %5535 = vmatprep.subr.bf16.mxu0 %v6503_v8 }
 0xed6   :  { %v3293_v15 = vmax.f32 %v3286_v55, 0.0  ;;  %v5962_v55 = vld [vmem:[%s7818_s25 + $0xa8] sm:$0xff]  }
 0xed8   :  { %v3295_v4 = vpack.c.bf16 %v3293_v15, %v3293_v15  ;;  %v5089_v15 = vld [vmem:[#allocation19] ss:$0 sm:$0xff] }
 0xeda   :  { %v3305_v25 = vsel %vm1679_vm12, %v3295_v4, 0 }
 0xedb   :  { %5536 = vmatpush3.bf16.msra.mxu0 %v3305_v25 }
 0xedc   :  { %5541 = vmatprep.subr.bf16.mxu0 %v6503_v8 }
 0xede   :  { %5538 = vmatmul.mubr.msk.bf16.vlgmr.msra.gmra.mrb[84].mxu0 %vm2842_vm14, %v7564_v27 }
 0xedf   :  { %5542 = vmatpush3.bf16.msra.mxu0 %v5915_v13  ;;  %5557 = vmatprep.mubr.msk.bf16.mxu0 %vm6504_vm11, %v6503_v8 }
 0xee0   :  { %5543 = vmatprep.subr.bf16.mxu0 %v6503_v8 }
 0xee3   :  { %5544 = vmatpush3.bf16.msra.mxu0 %v5916_v22 }
 0xee4   :  { %5545 = vmatprep.subr.bf16.mxu0 %v6503_v8 }
 0xee7   :  { %5546 = vmatpush3.bf16.msra.mxu0 %v5919_v30 }
 0xee8   :  { %5547 = vmatprep.subr.bf16.mxu0 %v6503_v8 }
 0xeeb   :  { %5548 = vmatpush3.bf16.msra.mxu0 %v5922_v28 }
 0xeec   :  { %5549 = vmatprep.subr.bf16.mxu0 %v6503_v8 }
 0xeef   :  { %5550 = vmatpush3.bf16.msra.mxu0 %v5925_v33 }
 0xef0   :  { %5551 = vmatprep.subr.bf16.mxu0 %v6503_v8 }
 0xef3   :  { %5552 = vmatpush3.bf16.msra.mxu0 %v5928_v35 }
 0xef4   :  { %5553 = vmatprep.subr.bf16.mxu0 %v6503_v8 }
 0xef7   :  { %5554 = vmatpush3.bf16.msra.mxu0 %v5931_v37 }
 0xef8   :  { %5555 = vmatprep.subr.bf16.mxu0 %v6503_v8 }
 0xefb   :  { %5556 = vmatpush3.bf16.msra.mxu0 %v5934_v32 }
 0xefc   :  { %5561 = vmatprep.subr.bf16.mxu0 %v6503_v8 }
 0xfb1   :  { %v3341_v40 = vpop.f32.mrb[84].mxu0 }
 0xfb2   :  { %v5539_v42 = vpop.f32.mrb[85].mxu0 }
 0xfb3   :  { %v3344_v43 = vpop.f32.mrb[86].mxu0  ;;  %v5952_v42 = vld [vmem:[%s7818_s25 + $0x48] sm:$0xff]  }
 0xfb4   :  { %v3348_v45 = vpack.c.bf16 %v3344_v43, %v3341_v40  ;;  %v5540_v26 = vpop.f32.mrb[87].mxu0  ;;  %v5951_v40 = vld [vmem:[%s7818_s25] sm:$0xff]   ;;  %v5954_v43 = vld [vmem:[%s7818_s25 + $0x8] sm:$0xff]  }
 0xfb5   :  { %v5957_v26 = vld [vmem:[%s7818_s25 + $0x10] sm:$0xff]  }
 0xfb6   :  { %v3358_v51 = vrot.slane %v3348_v45, 1  ;;  %v3352_v0 = vshll.u32 %v3348_v45, 16  ;;  %v3350_v16 = vshrl.u32 %v3348_v45, 16 }
 0xfb8   :  { %5558 = vmatmul.mubr.bf16.vlgmr.msra.gmra.mrb[88].mxu0 %v3358_v51  ;;  %v3354_v1 = vrot.slane %v3352_v0, 1  ;;  %v5958_v51 = vld [vmem:[%s7818_s25 + $0x58] sm:$0xff]  }
 0xfb9   :  { %5562 = vmatpush3.bf16.msra.mxu0 %v7545_v29  ;;  %5565 = vmatprep.mubr.msk.bf16.mxu0 %vm6504_vm11, %v6503_v8  ;;  %v5941_v29 = vld [vmem:[%s7817_s18 + $0x10] sm:$0xff]   ;;  %v5960_v0 = vld [vmem:[%s7818_s25 + $0x18] sm:$0xff]  }
 0xfba   :  { %5563 = vmatprep.subr.bf16.mxu0 %v6503_v8  ;;  %v3355_v44 = vor.u32 %v3354_v1, %v3350_v16  ;;  %v5961_v16 = vld [vmem:[%s7818_s25 + $0x60] sm:$0xff]  }
 0xfbb   :  { %v5963_v1 = vld [vmem:[%s7818_s25 + $0x20] sm:$0xff]  }
 0xfbc   :  { %3542 = vmatprep.mubr.bf16.mxu1 %v3355_v44  ;;  %v5964_v44 = vld [vmem:[%s7818_s25 + $0x68] sm:$0xff]  }
 0xfbd   :  { %5564 = vmatpush3.bf16.msra.mxu0 %v3593_v54  ;;  %3543 = vmatmul.mubr.bf16.vlgmr.msra.gmra.mrb[88].mxu1 %v3348_v45  ;;  %v5955_v45 = vld [vmem:[%s7818_s25 + $0x50] sm:$0xff]   ;;  %v5966_v54 = vld [vmem:[%s7818_s25 + $0x28] sm:$0xff]  }
 0xfbe   :  { %5570 = vmatpush3.bf16.msra.mxu1 %v5939_v53  ;;  %5585 = vmatprep.mubr.msk.bf16.mxu1 %vm6504_vm11, %v6503_v8  ;;  %v5965_v53 = vld [vmem:[%s7818_s25 + $0xb0] sm:$0xff]  }
 0xfbf   :  { %5571 = vmatprep.subr.bf16.mxu1 %v6503_v8  ;;  %5589 = vmatprep.subr.bf16.mxu0 %v6503_v8 }
 0xfc0   :  { %5566 = vmatmul.mubr.msk.bf16.vlgmr.msra.gmra.mrb[92].mxu0 %vm2842_vm14, %v7564_v27 }
 0xfc1   :  { %5591 = vmatprep.mubr.msk.bf16.mxu0 %vm6504_vm11, %v6503_v8 }
 0xfc2   :  { %5572 = vmatpush3.bf16.msra.mxu1 %v5940_v56  ;;  %v5967_v56 = vld [vmem:[%s7818_s25 + $0x70] sm:$0xff]  }
 0xfc3   :  { %5573 = vmatprep.subr.bf16.mxu1 %v6503_v8 }
 0xfc6   :  { %5574 = vmatpush3.bf16.msra.mxu1 %v5941_v29  ;;  %v5968_v29 = vld [vmem:[%s7818_s25 + $0xb8] sm:$0xff]  }
 0xfc7   :  { %5575 = vmatprep.subr.bf16.mxu1 %v6503_v8 }
 0xfca   :  { %5576 = vmatpush3.bf16.msra.mxu1 %v5942_v47  ;;  %v5969_v47 = vld [vmem:[%s7818_s25 + $0x30] sm:$0xff]  }
 0xfcb   :  { %5577 = vmatprep.subr.bf16.mxu1 %v6503_v8 }
 0xfce   :  { %5578 = vmatpush3.bf16.msra.mxu1 %v5943_v57  ;;  %v5970_v57 = vld [vmem:[%s7818_s25 + $0x78] sm:$0xff]  }
 0xfcf   :  { %5579 = vmatprep.subr.bf16.mxu1 %v6503_v8 }
 0xfd2   :  { %5580 = vmatpush3.bf16.msra.mxu1 %v5944_v58  ;;  %v5971_v58 = vld [vmem:[%s7818_s25 + $0x38] sm:$0xff]  }
 0xfd3   :  { %5581 = vmatprep.subr.bf16.mxu1 %v6503_v8 }
 0xfd6   :  { %5582 = vmatpush3.bf16.msra.mxu1 %v5945_v59 }
 0xfd7   :  { %5583 = vmatprep.subr.bf16.mxu1 %v6503_v8 }
 0xfda   :  { %5584 = vmatpush3.bf16.msra.mxu1 %v5946_v60 }
 0xfdb   :  { %5595 = vmatprep.subr.bf16.mxu1 %v6503_v8 }
0x108b   :  { %v3585_v61 = vpop.f32.mrb[88].mxu0 }
0x108c   :  { %v5559_v46 = vpop.f32.mrb[89].mxu0 }
0x108d   :  { %v3588_v31 = vpop.f32.mrb[90].mxu0 }
0x108e   :  { %v5560_v48 = vpop.f32.mrb[91].mxu0 }
0x1090   :  { %v5300_v34 = vpop.f32.mrb[88].mxu1 }
0x1091   :  { %v5301_v63 = vpop.f32.mrb[89].mxu1 }
0x1092   :  { %v5302_v9 = vadd.f32 %v5301_v63, %v5300_v34  ;;  %v5303_v50 = vpop.f32.mrb[90].mxu1 }
0x1093   :  { %v5304_v10 = vpop.f32.mrb[91].mxu1  ;;  %v3629_v7 = vpop.f32.mrb[92].mxu0 }
0x1094   :  { %v3545_v12 = vadd.f32 %v5302_v9, %v5063_v62  ;;  %v5305_v14 = vadd.f32 %v5304_v10, %v5303_v50  ;;  %v5567_v49 = vpop.f32.mrb[93].mxu0  ;;  %v5972_v50 = vld [vmem:[%s7820_s29 + $0x80] sm:$0xff]   ;;  %v5975_v10 = vld [vmem:[%s7820_s29 + $0x88] sm:$0xff]  }
0x1095   :  { %v3632_v3 = vpop.f32.mrb[94].mxu0  ;;  %v5987_v49 = vld [vmem:[%s7820_s29 + $0xa8] sm:$0xff]  }
0x1096   :  { %v3586_v2 = vadd.f32 %v3585_v61, %v3545_v12  ;;  %v3548_v23 = vadd.f32 %v5305_v14, %v5063_v62  ;;  %v3636_v18 = vpack.c.bf16 %v3632_v3, %v3629_v7  ;;  %v5568_v19 = vpop.f32.mrb[95].mxu0  ;;  %v5978_v7 = vld [vmem:[%s7820_s29 + $0x90] sm:$0xff]   ;;  %v5981_v12 = vld [vmem:[%s7820_s29 + $0x98] sm:$0xff]   ;;  %v5984_v14 = vld [vmem:[%s7820_s29 + $0xa0] sm:$0xff]  }
0x1097   :  { %v5990_v3 = vld [vmem:[%s7820_s29 + $0xb0] sm:$0xff]  }
0x1098   :  { %v3589_v41 = vadd.f32 %v3588_v31, %v3548_v23  ;;  %5586 = vmatmul.mubr.bf16.vlgmr.msra.gmra.mrb[92].mxu1 %v3636_v18 }
0x1099   :  { %5611 = vmatprep.mubr.msk.bf16.mxu1 %vm6504_vm11, %v6503_v8  ;;  %5596 = vmatpush3.bf16.msra.mxu1 %v5948_v20  ;;  %v5100_v20 = vld [vmem:[#allocation20] ss:$0 sm:$0xff] }
0x109a   :  { %5597 = vmatprep.subr.bf16.mxu1 %v6503_v8 }
0x109d   :  { %5598 = vmatpush3.bf16.msra.mxu1 %v5950_v52 }
0x109e   :  { %5599 = vmatprep.subr.bf16.mxu1 %v6503_v8 }
0x10a1   :  { %5600 = vmatpush3.bf16.msra.mxu1 %v5953_v21 }
0x10a2   :  { %5601 = vmatprep.subr.bf16.mxu1 %v6503_v8 }
0x10a5   :  { %5602 = vmatpush3.bf16.msra.mxu1 %v5956_v39 }
0x10a6   :  { %5603 = vmatprep.subr.bf16.mxu1 %v6503_v8 }
0x10a9   :  { %5604 = vmatpush3.bf16.msra.mxu1 %v5959_v24 }
0x10aa   :  { %5605 = vmatprep.subr.bf16.mxu1 %v6503_v8 }
0x10ad   :  { %5606 = vmatpush3.bf16.msra.mxu1 %v5962_v55 }
0x10ae   :  { %5607 = vmatprep.subr.bf16.mxu1 %v6503_v8 }
0x10b1   :  { %5608 = vmatpush3.bf16.msra.mxu1 %v5965_v53 }
0x10b2   :  { %5609 = vmatprep.subr.bf16.mxu1 %v6503_v8 }
0x10b5   :  { %5610 = vmatpush3.bf16.msra.mxu1 %v5968_v29 }
0x10b6   :  { %5621 = vmatprep.subr.bf16.mxu1 %v6503_v8 }
0x116b   :  { %v3725_v4 = vpop.f32.mrb[92].mxu1 }
0x116c   :  { %v3726_v25 = vadd.f32 %v5089_v15, %v3725_v4  ;;  %v5587_v27 = vpop.f32.mrb[93].mxu1 }
0x116d   :  { %v3728_v13 = vpop.f32.mrb[94].mxu1 }
0x116e   :  { %v3729_v22 = vadd.f32 %v5089_v15, %v3728_v13  ;;  %v5588_v30 = vpop.f32.mrb[95].mxu1  ;;  %v3734_v28 = vrot.slane %v3726_v25, 1 }
0x1170   :  { %v3735_v33 = vrot.slane %v3729_v22, 1 }
0x1172   :  { %v3736_v35 = vsel %vm559_vm3, %v3734_v28, %v3735_v33  ;;  %v3740_v37 = vadd.f32 %v3735_v33, %v3589_v41  ;;  %v5973_v28 = vld [vmem:[%s7820_s29 + $0x40] sm:$0xff]  }
0x1173   :  { %v3739_v11 = vadd.f32 %v3736_v35, %v3586_v2  ;;  %v3897_v35 = vld [vmem:[#allocation23] sm:$0xf] }
0x1174   :  { %v3742_v6 = vmax.f32 %v3740_v37, 0.0  ;;  %v5974_v37 = vld [vmem:[%s7820_s29] sm:$0xff]  }
0x1175   :  { %v3741_v32 = vmax.f32 %v3739_v11, 0.0  ;;  %v5976_v11 = vld [vmem:[%s7820_s29 + $0x48] sm:$0xff]  }
0x1177   :  { %v3743_v38 = vpack.c.bf16 %v3742_v6, %v3741_v32  ;;  %v5977_v6 = vld [vmem:[%s7820_s29 + $0x8] sm:$0xff]   ;;  %v5979_v32 = vld [vmem:[%s7820_s29 + $0x50] sm:$0xff]  }
0x1179   :  { %v3755_v5 = vsel %vm729_vm0, %v3743_v38, 0  ;;  %v5980_v38 = vld [vmem:[%s7820_s29 + $0x10] sm:$0xff]  }
0x117a   :  { %5590 = vmatpush3.bf16.msra.mxu0 %v3755_v5  ;;  %v5983_v5 = vld [vmem:[%s7820_s29 + $0x18] sm:$0xff]  }
0x117b   :  { %5329 = vmatprep.subr.bf16.mxu0 %v5949_v17  ;;  %v5982_v17 = vld [vmem:[%s7820_s29 + $0x58] sm:$0xff]  }
0x117d   :  { %5592 = vmatmul.mubr.msk.bf16.vlgmr.msra.gmra.mrb[96].mxu0 %vm3749_vm15, %v5947_v36  ;;  %v5985_v36 = vld [vmem:[%s7820_s29 + $0x60] sm:$0xff]  }
0x117e   :  { %5330 = vmatpush3.bf16.msra.mxu0 %v5951_v40  ;;  %v5986_v40 = vld [vmem:[%s7820_s29 + $0x20] sm:$0xff]  }
0x117f   :  { %5331 = vmatprep.subr.bf16.mxu0 %v5952_v42  ;;  %v5988_v42 = vld [vmem:[%s7820_s29 + $0x68] sm:$0xff]  }
0x1182   :  { %5332 = vmatpush3.bf16.msra.mxu0 %v5954_v43  ;;  %v5989_v43 = vld [vmem:[%s7820_s29 + $0x28] sm:$0xff]  }
0x1183   :  { %5333 = vmatprep.subr.bf16.mxu0 %v5955_v45  ;;  %v5991_v45 = vld [vmem:[%s7820_s29 + $0x70] sm:$0xff]  }
0x1186   :  { %5334 = vmatpush3.bf16.msra.mxu0 %v5957_v26  ;;  %v5992_v26 = vld [vmem:[%s7820_s29 + $0x30] sm:$0xff]  }
0x1187   :  { %5335 = vmatprep.subr.bf16.mxu0 %v5958_v51  ;;  %v5993_v51 = vld [vmem:[%s7820_s29 + $0xb8] sm:$0xff]  }
0x118a   :  { %5336 = vmatpush3.bf16.msra.mxu0 %v5960_v0  ;;  %v5994_v0 = vld [vmem:[%s7820_s29 + $0x78] sm:$0xff]  }
0x118b   :  { %5337 = vmatprep.subr.bf16.mxu0 %v5961_v16  ;;  %v5995_v16 = vld [vmem:[%s7820_s29 + $0x38] sm:$0xff]  }
0x118e   :  { %5338 = vmatpush3.bf16.msra.mxu0 %v5963_v1 }
0x118f   :  { %5339 = vmatprep.subr.bf16.mxu0 %v5964_v44 }
0x1192   :  { %5340 = vmatpush3.bf16.msra.mxu0 %v5966_v54 }
0x1193   :  { %5341 = vmatprep.subr.bf16.mxu0 %v5967_v56 }
0x1196   :  { %5342 = vmatpush3.bf16.msra.mxu0 %v5969_v47 }
0x1197   :  { %5343 = vmatprep.subr.bf16.mxu0 %v5970_v57 }
0x119a   :  { %5344 = vmatpush3.bf16.msra.mxu0 %v5971_v58 }
0x119b   :  { %5615 = vmatprep.subr.bf16.mxu0 %v6503_v8 }
0x1250   :  { %v3791_v59 = vpop.f32.mrb[96].mxu0 }
0x1251   :  { %v5593_v60 = vpop.f32.mrb[97].mxu0 }
0x1252   :  { %v3794_v61 = vpop.f32.mrb[98].mxu0 }
0x1253   :  { %v3798_v46 = vpack.c.bf16 %v3794_v61, %v3791_v59  ;;  %v5594_v31 = vpop.f32.mrb[99].mxu0  ;;  %v5996_v61 = vld [vmem:[%s7821_s22] sm:$0xff]  }
0x1254   :  { %v5998_v31 = vld [vmem:[%s7821_s22 + $0x10] sm:$0xff]  }
0x1255   :  { %v3925_v48 = vrot.slane %v3798_v46, 1  ;;  %v3919_v34 = vshll.u32 %v3798_v46, 16  ;;  %v3917_v62 = vshrl.u32 %v3798_v46, 16 }
0x1257   :  { %5612 = vmatmul.mubr.bf16.vlgmr.msra.gmra.mrb[96].mxu1 %v3925_v48  ;;  %v3921_v63 = vrot.slane %v3919_v34, 1  ;;  %v5999_v48 = vld [vmem:[%s7821_s22 + $0x18] sm:$0xff]   ;;  %v6000_v34 = vld [vmem:[%s7821_s22 + $0x20] sm:$0xff]  }
0x1258   :  { %5637 = vmatprep.mubr.msk.bf16.mxu1 %vm6504_vm11, %v6503_v8  ;;  %5622 = vmatpush3.bf16.msra.mxu1 %v5972_v50 }
0x1259   :  { %v7664_v9 = vor.u32 %v3921_v63, %v3917_v62  ;;  %5623 = vmatprep.subr.bf16.mxu1 %v6503_v8  ;;  %v6001_v62 = vld [vmem:[%s7821_s22 + $0x28] sm:$0xff]   ;;  %v6002_v63 = vld [vmem:[%s7821_s22 + $0x30] sm:$0xff]  }
0x125b   :  { %4109 = vmatprep.mubr.bf16.mxu0 %v7664_v9  ;;  %v4451_v60 = vsel %vm729_vm0, %v7664_v9, 0  ;;  %v6003_v9 = vld [vmem:[%s7821_s22 + $0x38] sm:$0xff]  }
0x125c   :  { %4110 = vmatmul.mubr.bf16.vlgmr.msra.gmra.mrb[100].mxu0 %v3798_v46  ;;  %5624 = vmatpush3.bf16.msra.mxu1 %v5975_v10  ;;  %v5997_v46 = vld [vmem:[%s7821_s22 + $0x8] sm:$0xff]  }
0x125d   :  { %5617 = vmatprep.mubr.msk.bf16.mxu0 %vm6504_vm11, %v6503_v8  ;;  %5625 = vmatprep.subr.bf16.mxu1 %v6503_v8 }
0x1260   :  { %5626 = vmatpush3.bf16.msra.mxu1 %v5978_v7 }
0x1261   :  { %5627 = vmatprep.subr.bf16.mxu1 %v6503_v8 }
0x1264   :  { %5628 = vmatpush3.bf16.msra.mxu1 %v5981_v12 }
0x1265   :  { %5629 = vmatprep.subr.bf16.mxu1 %v6503_v8 }
0x1268   :  { %5630 = vmatpush3.bf16.msra.mxu1 %v5984_v14 }
0x1269   :  { %5631 = vmatprep.subr.bf16.mxu1 %v6503_v8 }
0x126c   :  { %5632 = vmatpush3.bf16.msra.mxu1 %v5987_v49  ;;  %v5126_v49 = vld [vmem:[#allocation22] ss:$0 sm:$0xff] }
0x126d   :  { %5633 = vmatprep.subr.bf16.mxu1 %v6503_v8 }
0x1270   :  { %5634 = vmatpush3.bf16.msra.mxu1 %v5990_v3 }
0x1271   :  { %5635 = vmatprep.subr.bf16.mxu1 %v6503_v8 }
0x1274   :  { %5636 = vmatpush3.bf16.msra.mxu1 %v5993_v51  ;;  %v6009_v51 = vld [vmem:[%s6699_s17 + $0x28] sm:$0xff]  }
0x1275   :  { %5667 = vmatprep.subr.bf16.mxu1 %v6503_v8 }
0x132a   :  { %v4152_v2 = vpop.f32.mrb[96].mxu1 }
0x132b   :  { %v5613_v23 = vpop.f32.mrb[97].mxu1 }
0x132c   :  { %v4155_v18 = vpop.f32.mrb[98].mxu1 }
0x132d   :  { %v5614_v19 = vpop.f32.mrb[99].mxu1 }
0x132f   :  { %v5345_v41 = vpop.f32.mrb[100].mxu0 }
0x1330   :  { %v5346_v52 = vpop.f32.mrb[101].mxu0 }
0x1331   :  { %v5347_v21 = vadd.f32 %v5346_v52, %v5345_v41  ;;  %v5348_v39 = vpop.f32.mrb[102].mxu0 }
0x1332   :  { %v5349_v24 = vpop.f32.mrb[103].mxu0 }
0x1333   :  { %v4112_v55 = vadd.f32 %v5347_v21, %v5100_v20  ;;  %v5350_v15 = vadd.f32 %v5349_v24, %v5348_v39 }
0x1335   :  { %v4153_v4 = vadd.f32 %v4152_v2, %v4112_v55  ;;  %v4115_v25 = vadd.f32 %v5350_v15, %v5100_v20  ;;  %v5152_v55 = vld [vmem:[#allocation26] ss:$0 sm:$0xff] }
0x1337   :  { %v4156_v27 = vadd.f32 %v4155_v18, %v4115_v25  ;;  %v4159_v13 = vmax.f32 %v4153_v4, 0.0 }
0x1339   :  { %v4160_v22 = vmax.f32 %v4156_v27, 0.0 }
0x133b   :  { %v4161_v30 = vpack.c.bf16 %v4160_v22, %v4159_v13 }
0x133d   :  { %v4166_v33 = vsel %vm729_vm0, %v4161_v30, 0  ;;  %vm4663_vm0 = vcmask 1043456  }
0x133e   :  { %5616 = vmatpush3.bf16.msra.mxu0 %v4166_v33 }
0x133f   :  { %5362 = vmatprep.subr.bf16.mxu0 %v5973_v28 }
0x1341   :  { %5618 = vmatmul.mubr.msk.bf16.vlgmr.msra.gmra.mrb[104].mxu0 %vm3749_vm15, %v3897_v35 }
0x1342   :  { %5363 = vmatpush3.bf16.msra.mxu0 %v5974_v37  ;;  %v3898_v37 = vld [vmem:[#allocation25] sm:$0xf] }
0x1343   :  { %5364 = vmatprep.subr.bf16.mxu0 %v5976_v11 }
0x1346   :  { %5365 = vmatpush3.bf16.msra.mxu0 %v5977_v6 }
0x1347   :  { %5366 = vmatprep.subr.bf16.mxu0 %v5979_v32 }
0x134a   :  { %5367 = vmatpush3.bf16.msra.mxu0 %v5980_v38 }
0x134b   :  { %5368 = vmatprep.subr.bf16.mxu0 %v5982_v17 }
0x134e   :  { %5369 = vmatpush3.bf16.msra.mxu0 %v5983_v5 }
0x134f   :  { %5370 = vmatprep.subr.bf16.mxu0 %v5985_v36  ;;  %v4641_v36 = vld [vmem:[#allocation28] sm:$0x1] }
0x1352   :  { %5371 = vmatpush3.bf16.msra.mxu0 %v5986_v40  ;;  %v6004_v40 = vld [vmem:[%s6699_s17] sm:$0xff]  }
0x1353   :  { %5372 = vmatprep.subr.bf16.mxu0 %v5988_v42  ;;  %v6005_v42 = vld [vmem:[%s6699_s17 + $0x8] sm:$0xff]  }
0x1356   :  { %5373 = vmatpush3.bf16.msra.mxu0 %v5989_v43  ;;  %v6006_v43 = vld [vmem:[%s6699_s17 + $0x10] sm:$0xff]  }
0x1357   :  { %5374 = vmatprep.subr.bf16.mxu0 %v5991_v45  ;;  %v6007_v45 = vld [vmem:[%s6699_s17 + $0x18] sm:$0xff]  }
0x135a   :  { %5375 = vmatpush3.bf16.msra.mxu0 %v5992_v26  ;;  %v6008_v26 = vld [vmem:[%s6699_s17 + $0x20] sm:$0xff]  }
0x135b   :  { %5376 = vmatprep.subr.bf16.mxu0 %v5994_v0  ;;  %v6010_v0 = vld [vmem:[%s6699_s17 + $0x30] sm:$0xff]  }
0x135e   :  { %5377 = vmatpush3.bf16.msra.mxu0 %v5995_v16  ;;  %v6011_v16 = vld [vmem:[%s6699_s17 + $0x38] sm:$0xff]   ;;  %s6505_s17 = smov [#allocation29]  }
0x135f   :  { %5641 = vmatprep.subr.bf16.mxu0 %v6503_v8  ;;  %s4817_s23 = sshll.u32 %s6505_s17, 4  ;;  %s4818_s23 = int_to_ptr.vmem [resolvable:$true] %s4817_s23 }
0x1360   :  { %s6398_s3 = scalar_lea.vmem %s4818_s23, 32  ;;  %p6403_p11 = scmp.lt.s32.totalorder %s4818_s23, %s4818_s23 }
0x1361   :  { %p6399_p10 = scmp.ne.s32.totalorder %s4818_s23, %s6398_s3  ;;  %p6404_p12 = scmp.lt.s32.totalorder %s6398_s3, %s6398_s3 }
0x1363   :  { %p6405_p13 = por %p6404_p12, %p6403_p11 }
0x1365   :  { %p6406_p0 = pnand %p6405_p13, %p6399_p10 }
0x1414   :  { %v4202_v1 = vpop.f32.mrb[104].mxu0 }
0x1415   :  { %v4208_v44 = vpack.c.bf16 %v4202_v1, %v4202_v1  ;;  %v5619_v53 = vpop.f32.mrb[105].mxu0 }
0x1416   :  { %v4205_v54 = vpop.f32.mrb[106].mxu0 }
0x1417   :  { %v5620_v56 = vpop.f32.mrb[107].mxu0  ;;  %v4218_v29 = vrot.slane %v4208_v44, 1  ;;  %v4212_v47 = vshll.u32 %v4208_v44, 16  ;;  %v4210_v57 = vshrl.u32 %v4208_v44, 16 }
0x1419   :  { %5638 = vmatmul.mubr.bf16.vlgmr.msra.gmra.mrb[100].mxu1 %v4218_v29  ;;  %v4214_v58 = vrot.slane %v4212_v47, 1  ;;  %v5163_v47 = vld [vmem:[%s6704_s12] ss:$0 sm:$0xff] }
0x141a   :  { %5669 = vmatprep.mubr.msk.bf16.mxu1 %vm6504_vm11, %v6503_v8 }
0x141b   :  { %v4215_v59 = vor.u32 %v4214_v58, %v4210_v57 }
0x141d   :  { %4402 = vmatprep.mubr.bf16.mxu0 %v4215_v59 }
0x141e   :  { %4403 = vmatmul.mubr.bf16.vlgmr.msra.gmra.mrb[108].mxu0 %v4208_v44 }
0x141f   :  { %5642 = vmatpush3.bf16.msra.mxu0 %v4451_v60  ;;  %5643 = vmatprep.mubr.msk.bf16.mxu0 %vm6504_vm11, %v6503_v8 }
0x1420   :  { %5647 = vmatprep.subr.bf16.mxu0 %v6503_v8 }
0x1426   :  { %5644 = vmatmul.mubr.msk.bf16.vlgmr.msra.gmra.mrb[112].mxu0 %vm3749_vm15, %v3897_v35 }
0x1427   :  { %5648 = vmatpush3.bf16.msra.mxu0 %v5996_v61  ;;  %5663 = vmatprep.mubr.msk.bf16.mxu0 %vm6504_vm11, %v6503_v8 }
0x1428   :  { %5649 = vmatprep.subr.bf16.mxu0 %v6503_v8 }
0x142b   :  { %5650 = vmatpush3.bf16.msra.mxu0 %v5997_v46 }
0x142c   :  { %5651 = vmatprep.subr.bf16.mxu0 %v6503_v8 }
0x142f   :  { %5652 = vmatpush3.bf16.msra.mxu0 %v5998_v31 }
0x1430   :  { %5653 = vmatprep.subr.bf16.mxu0 %v6503_v8 }
0x1433   :  { %5654 = vmatpush3.bf16.msra.mxu0 %v5999_v48 }
0x1434   :  { %5655 = vmatprep.subr.bf16.mxu0 %v6503_v8 }
0x1437   :  { %5656 = vmatpush3.bf16.msra.mxu0 %v6000_v34 }
0x1438   :  { %5657 = vmatprep.subr.bf16.mxu0 %v6503_v8 }
0x143b   :  { %5658 = vmatpush3.bf16.msra.mxu0 %v6001_v62 }
0x143c   :  { %5659 = vmatprep.subr.bf16.mxu0 %v6503_v8 }
0x143f   :  { %5660 = vmatpush3.bf16.msra.mxu0 %v6002_v63 }
0x1440   :  { %5661 = vmatprep.subr.bf16.mxu0 %v6503_v8 }
0x1443   :  { %5662 = vmatpush3.bf16.msra.mxu0 %v6003_v9 }
0x14ec   :  { %v4444_v50 = vpop.f32.mrb[100].mxu1 }
0x14ed   :  { %v5639_v10 = vpop.f32.mrb[101].mxu1 }
0x14ee   :  { %v4447_v7 = vpop.f32.mrb[102].mxu1 }
0x14ef   :  { %v5640_v12 = vpop.f32.mrb[103].mxu1 }
0x14f1   :  { %v5378_v14 = vpop.f32.mrb[108].mxu0 }
0x14f2   :  { %v5379_v3 = vpop.f32.mrb[109].mxu0 }
0x14f3   :  { %v5380_v2 = vadd.f32 %v5379_v3, %v5378_v14  ;;  %v5381_v23 = vpop.f32.mrb[110].mxu0 }
0x14f4   :  { %v5382_v18 = vpop.f32.mrb[111].mxu0 }
0x14f5   :  { %v4405_v19 = vadd.f32 %v5380_v2, %v5126_v49 }
0x14f7   :  { %v4445_v41 = vadd.f32 %v4444_v50, %v4405_v19 }
0x14f9   :  { %v4487_v20 = vpop.f32.mrb[112].mxu0 }
0x14fa   :  { %v4493_v52 = vpack.c.bf16 %v4487_v20, %v4487_v20  ;;  %v5645_v21 = vpop.f32.mrb[113].mxu0 }
0x14fb   :  { %v4490_v39 = vpop.f32.mrb[114].mxu0 }
0x14fc   :  { %v5646_v24 = vpop.f32.mrb[115].mxu0  ;;  %5664 = vmatmul.mubr.bf16.vlgmr.msra.gmra.mrb[116].mxu0 %v4493_v52 }
0x15cf   :  { %v4582_v15 = vpop.f32.mrb[116].mxu0 }
0x15d0   :  { %v4583_v4 = vadd.f32 %v5152_v55, %v4582_v15  ;;  %v5665_v25 = vpop.f32.mrb[117].mxu0 }
0x15d1   :  { %v4585_v27 = vpop.f32.mrb[118].mxu0 }
0x15d2   :  { %v4589_v13 = vrot.slane %v4583_v4, 1  ;;  %v5666_v22 = vpop.f32.mrb[119].mxu0 }
0x15d4   :  { %v4591_v30 = vadd.f32 %v4589_v13, %v4445_v41 }
0x15d6   :  { %v4592_v28 = vmax.f32 %v4591_v30, 0.0 }
0x15d8   :  { %v4593_v33 = vpack.c.bf16 %v4592_v28, %v4592_v28 }
0x15da   :  { %v4598_v35 = vsel %vm1148_vm10, %v4593_v33, 0 }
0x15db   :  { %5668 = vmatpush3.bf16.msra.mxu1 %v4598_v35 }
0x15dc   :  { %5673 = vmatprep.subr.bf16.mxu1 %v6503_v8 }
0x15de   :  { %5670 = vmatmul.mubr.msk.bf16.vlgmr.msra.gmra.mrb[104].mxu1 %vm1138_vm9, %v3898_v37 }
0x15df   :  { %5675 = vmatprep.mubr.msk.bf16.mxu1 %vm6504_vm11, %v6503_v8 }
0x16b1   :  { %v4634_v11 = vpop.f32.mrb[104].mxu1 }
0x16b2   :  { %v4640_v6 = vpack.c.bf16 %v4634_v11, %v4634_v11  ;;  %v5671_v32 = vpop.f32.mrb[105].mxu1 }
0x16b3   :  { %v4637_v38 = vpop.f32.mrb[106].mxu1 }
0x16b4   :  { %v4665_v17 = vsel %vm4663_vm0, %v4640_v6, 0  ;;  %v5672_v5 = vpop.f32.mrb[107].mxu1 }
0x16b5   :  { %5674 = vmatpush3.bf16.msra.mxu1 %v4665_v17 }
0x16b6   :  { %5679 = vmatprep.subr.bf16.mxu1 %v6503_v8 }
0x16b8   :  { %5676 = vmatmul.mubr.msk.bf16.vlgmr.msra.gmra.mrb[108].mxu1 %vm4659_vm1, %v4641_v36 }
0x16b9   :  { %5680 = vmatpush3.bf16.msra.mxu1 %v6004_v40  ;;  %5695 = vmatprep.mubr.msk.bf16.mxu1 %vm6504_vm11, %v6503_v8 }
0x16ba   :  { %5681 = vmatprep.subr.bf16.mxu1 %v6503_v8 }
0x16bd   :  { %5682 = vmatpush3.bf16.msra.mxu1 %v6005_v42 }
0x16be   :  { %5683 = vmatprep.subr.bf16.mxu1 %v6503_v8 }
0x16c1   :  { %5684 = vmatpush3.bf16.msra.mxu1 %v6006_v43 }
0x16c2   :  { %5685 = vmatprep.subr.bf16.mxu1 %v6503_v8 }
0x16c5   :  { %5686 = vmatpush3.bf16.msra.mxu1 %v6007_v45 }
0x16c6   :  { %5687 = vmatprep.subr.bf16.mxu1 %v6503_v8 }
0x16c9   :  { %5688 = vmatpush3.bf16.msra.mxu1 %v6008_v26 }
0x16ca   :  { %5689 = vmatprep.subr.bf16.mxu1 %v6503_v8 }
0x16cd   :  { %5690 = vmatpush3.bf16.msra.mxu1 %v6009_v51 }
0x16ce   :  { %5691 = vmatprep.subr.bf16.mxu1 %v6503_v8 }
0x16d1   :  { %5692 = vmatpush3.bf16.msra.mxu1 %v6010_v0 }
0x16d2   :  { %5693 = vmatprep.subr.bf16.mxu1 %v6503_v8 }
0x16d5   :  { %5694 = vmatpush3.bf16.msra.mxu1 %v6011_v16 }
0x178b   :  { %v4701_v1 = vpop.f32.mrb[108].mxu1 }
0x178c   :  { %v4707_v44 = vmax.f32 %v4701_v1, 0.0  ;;  %v5677_v53 = vpop.f32.mrb[109].mxu1 }
0x178d   :  { %v4704_v54 = vpop.f32.mrb[110].mxu1 }
0x178e   :  { %v4708_v56 = vpack.c.bf16 %v4707_v44, %v4707_v44  ;;  %v5678_v29 = vpop.f32.mrb[111].mxu1 }
0x1790   :  { %5696 = vmatmul.mubr.bf16.vlgmr.msra.gmra.mrb[112].mxu1 %v4708_v56 }
0x1863   :  { %v4797_v57 = vpop.f32.mrb[112].mxu1 }
0x1864   :  { %v4798_v58 = vadd.f32 %v5163_v47, %v4797_v57  ;;  %v5697_v59 = vpop.f32.mrb[113].mxu1 }
0x1865   :  { %v4800_v60 = vpop.f32.mrb[114].mxu1 }
0x1866   :  { %v5172_v61 = vmul.f32 -1.442695, %v4798_v58  ;;  %v5698_v46 = vpop.f32.mrb[115].mxu1 }
0x1868   :  { %6012 = vpow2.f32 %v5172_v61 }
0x1872   :  { %v6013_v31 = vpop.eup %6012 }
0x1873   :  { %v4806_v48 = vadd.f32 1.0, %v6013_v31 }
0x1875   :  { %6014 = vrcp.f32 %v4806_v48 }
0x187f   :  { %v6015_v8 = vpop.eup %6014 }
0x1880   :  { %4810 = vst.msk [vmem:[#allocation29] sm:$0x3] %vm4809_vm2, %v6015_v8 }
0x1881   :  { %6409 = shalt.err (!%p6406_p0)
}
0x1882   :  { %s6410_s12 = scalar_lea.hbm %s6709_s21, 32 }
0x1883   :  { %p6411_p1 = scmp.ne.s32.totalorder %s6709_s21, %s6410_s12  ;;  %p6414_p2 = scmp.lt.u32.totalorder %s6410_s12, %s6709_s21 }
0x1885   :  { %p6416_p3 = pnand %p6414_p2, %p6411_p1 }
0x1887   :  { %6419 = shalt.err (!%p6416_p3)
}
0x1888   :  { %4820 = dma.vmem_to_hbm [thread:$0]  %s4818_s23, 32, %s6709_s21, [#allocation4]  }
0x1889   :  { %6438 = dma.done.wait [#allocation4], 32  }
0x188a   :  { %6439 = vsyncadd [#allocation4], 4294967264 }
0x188b   :  { %4824 = vsyncpa [#allocation3], 1 }
0x188c   :  { %4825 = vsyncpa [#allocation6], 1 }
0x188d   :  { %4826 = vsyncpa [#allocation9], 1 }
0x188e   :  { %4827 = vsyncpa [#allocation12], 1 }
0x188f   :  { %4828 = vsyncpa [#allocation15], 1 }
0x1890   :  { %4829 = vsyncpa [#allocation18], 1 }
0x1891   :  { %4830 = vsyncpa [#allocation21], 1 }
0x1892   :  { %4831 = vsyncpa [#allocation24], 1 }
0x1893   :  { %4832 = vsyncpa [#allocation27], 1 }
0x1894   :  { %4833 = vsyncpa [#allocation4], 1 }

</bundles_post_ra>
